<compile_context>
chip_gen: v7x
topology: tpu7x:2x2x1
jax: 0.10.0
libtpu: 0.0.40
codegen_flags: <defaults>
</compile_context>

<pallas_src>
import jax
import jax.numpy as jnp
from jax.experimental import pallas as pl
from jax.experimental.pallas import tpu as pltpu

# CASA_Block hyperparameters (from the module spec)
IMG = 11                     # image_size
PATCH = 3                    # patch_size
GRID = IMG // PATCH          # 3 patches per spatial dim (stride-3 conv drops border)
NPATCH = GRID * GRID         # 9 patches
PIX = PATCH * PATCH          # 9 pixels per patch
CH = 64                      # channels
PATCH_DIM = PIX * CH         # 576
TOK_HID = 32                 # tokens_hidden_dim
CHAN_HID = 256               # channels_hidden_dim
NUM_CLASSES = 18
HSI_CH = 330                 # resnext50_330 input bands
MSI_CH = 4                   # resnext50_4 input bands
CIN = HSI_CH + MSI_CH        # 334 fused per-pixel channels (no lane zero-pad)
OUT_PAD = 128                # lane-dense padded logits width
MAX_B_TILE = 32              # samples per grid step for large batches
TOK_SUB = 16                 # fixed sub-tile for the kron token-mixing weights


# ----------------------------- in-kernel helpers -----------------------------
def _gelu(x):
    # TODO(synk): tanh-approx GELU; PyTorch nn.GELU default is the exact erf form.
    c = jnp.float32(0.7978845608028654)  # sqrt(2/pi)
    return 0.5 * x * (1.0 + jnp.tanh(c * (x + 0.044715 * x * x * x)))


def _layernorm(x, g, b, eps=1e-5):
    mu = jnp.mean(x, axis=-1, keepdims=True)
    var = jnp.mean((x - mu) ** 2, axis=-1, keepdims=True)
    return (x - mu) * jax.lax.rsqrt(var + eps) * g + b


# ------------------------------ fused CASA kernel -----------------------------
def casanet_kernel(x_ref, wbd_ref, bbd_ref, wemb_ref, bemb_ref,
                   ln1g_ref, ln1b_ref, wt1_ref, bt1_ref, wt2_ref, bt2_ref,
                   ln2g_ref, ln2b_ref, wc1_ref, bc1_ref, wc2_ref, bc2_ref,
                   ln3g_ref, ln3b_ref, pool_ref, wh_ref, bh_ref,
                   o_ref):
    pix, rows, cin = x_ref.shape              # (9, B_TILE*NPATCH, 334)

    # Fused dual-backbone 1x1-conv stand-in + ReLU: one big matmul over all
    # patch pixels (leading-dim merge of the block is free; rows % 8 == 0).
    x_all = x_ref[...].reshape(pix * rows, cin)
    feat = jnp.dot(x_all, wbd_ref[...],
                   preferred_element_type=jnp.float32) + bbd_ref[...]
    feat = jnp.maximum(feat, 0.0).astype(jnp.bfloat16)   # (pix*rows, 128): [hsi|msi]

    # Patch embedding: per-pixel accumulation into the tokens (static unroll).
    tokens = jnp.zeros((rows, CH), jnp.float32)
    for p in range(pix):
        fp = feat[p * rows:(p + 1) * rows]               # free sublane slice
        tokens = tokens + jnp.dot(fp, wemb_ref[p],
                                  preferred_element_type=jnp.float32)
    x = tokens + bemb_ref[...]                           # (rows, CH)

    # Token-mixing MLP: kron(I_tok_sub, w) block-diag weights applied per
    # fixed-size sample sub-tile -> VMEM / wasted FLOPs stay constant in b_tile.
    y = _layernorm(x, ln1g_ref[...], ln1b_ref[...])
    sub_rows = wt2_ref.shape[0]                          # tok_sub * NPATCH
    n_sub = rows // sub_rows
    parts = []
    for s in range(n_sub):
        ys = y[s * sub_rows:(s + 1) * sub_rows]
        h = _gelu(jnp.dot(wt1_ref[...], ys, preferred_element_type=jnp.float32)
                  + bt1_ref[...])                        # (tok_sub*TOK_HID, CH)
        parts.append(jnp.dot(wt2_ref[...], h, preferred_element_type=jnp.float32)
                     + bt2_ref[...])
    x = x + (parts[0] if n_sub == 1 else jnp.concatenate(parts, axis=0))

    # Channel-mixing MLP (token-independent -> plain 2-D matmuls, M = rows).
    y = _layernorm(x, ln2g_ref[...], ln2b_ref[...])
    h = _gelu(jnp.dot(y, wc1_ref[...], preferred_element_type=jnp.float32)
              + bc1_ref[...])                            # (rows, CHAN_HID)
    x = x + jnp.dot(h, wc2_ref[...], preferred_element_type=jnp.float32) + bc2_ref[...]

    # Head: LN -> per-sample mean over patches (pooling matmul) -> linear,
    # written as a lane-dense (B_TILE, 128) slab.
    y = _layernorm(x, ln3g_ref[...], ln3b_ref[...])
    pooled = jnp.dot(pool_ref[...], y, preferred_element_type=jnp.float32)
    o_ref[...] = jnp.dot(pooled, wh_ref[...],
                         preferred_element_type=jnp.float32) + bh_ref[...]


_W_NAMES = ('wbd', 'bbd', 'wemb', 'bemb', 'ln1g', 'ln1b', 'wt1b', 'bt1b',
            'wt2b', 'bt2b', 'ln2g', 'ln2b', 'wc1', 'bc1', 'wc2', 'bc2',
            'ln3g', 'ln3b', 'pool', 'whp', 'bhp')


# --------------------------------- tiling -------------------------------------
def _ceil_to(a, m):
    return -(-a // m) * m


def _tiling(batch):
    """Return (b_tile, n_tiles, tok_sub) for a given batch size."""
    if batch <= MAX_B_TILE:
        n_tiles = 1
    else:
        n_tiles = -(-batch // MAX_B_TILE)
        n_tiles += n_tiles % 2            # even tile count -> clean v7x 2-core split
    b_tile = max(_ceil_to(-(-batch // n_tiles), 8), 8)   # multiple of 8 keeps merges free
    tok_sub = TOK_SUB if b_tile % TOK_SUB == 0 else 8    # always divides b_tile
    return b_tile, n_tiles, tok_sub


# ------------------------------ fused weights ---------------------------------
def _fused_weights(params, b_tile, tok_sub):
    """Kernel-side fused / padded / kron-expanded weights (built ONCE)."""
    f32 = jnp.float32
    # Block-diagonal dual backbone: [hsi 330 -> 64 | msi 4 -> 64], K = 334.
    wbd = jnp.zeros((CIN, 2 * CH), f32)
    wbd = wbd.at[:HSI_CH, :CH].set(params['w_back_h'])
    wbd = wbd.at[HSI_CH:, CH:].set(params['w_back_m'])
    bbd = jnp.concatenate([params['b_back_h'], params['b_back_m']], axis=1)

    # Stacked patch embedding: per pixel p, (128 -> 64) weight = [wph_p ; wpm_p].
    wph = params['wph'].reshape(PIX, CH, CH)
    wpm = params['wpm'].reshape(PIX, CH, CH)
    wemb = jnp.concatenate([wph, wpm], axis=1)            # (PIX, 2*CH, CH)
    bemb = params['bph'] + params['bpm']                  # th + tm adds both biases

    eye_s = jnp.eye(tok_sub, dtype=f32)
    eye_b = jnp.eye(b_tile, dtype=f32)
    return {
        'wbd': wbd.astype(jnp.bfloat16),
        'bbd': bbd,
        'wemb': wemb.astype(jnp.bfloat16),
        'bemb': bemb,
        'ln1g': params['ln1g'], 'ln1b': params['ln1b'],
        'wt1b': jnp.kron(eye_s, params['wt1']),            # (tok_sub*32, tok_sub*9)
        'bt1b': jnp.tile(params['bt1'], (tok_sub, 1)),     # (tok_sub*32, 1)
        'wt2b': jnp.kron(eye_s, params['wt2']),            # (tok_sub*9, tok_sub*32)
        'bt2b': jnp.tile(params['bt2'], (tok_sub, 1)),     # (tok_sub*9, 1)
        'ln2g': params['ln2g'], 'ln2b': params['ln2b'],
        'wc1': params['wc1'], 'bc1': params['bc1'],
        'wc2': params['wc2'], 'bc2': params['bc2'],
        'ln3g': params['ln3g'], 'ln3b': params['ln3b'],
        'pool': jnp.kron(eye_b, jnp.full((1, NPATCH), 1.0 / NPATCH, f32)),
        'whp': jnp.zeros((CH, OUT_PAD), f32).at[:, :NUM_CLASSES].set(params['wh']),
        'bhp': jnp.zeros((1, OUT_PAD), f32).at[:, :NUM_CLASSES].set(params['bh']),
    }


def prepare_weights(params, batch_size):
    """One-time fused-weight build, hoisted off the per-call hot path."""
    b_tile, _, tok_sub = _tiling(batch_size)
    return _fused_weights(params, b_tile, tok_sub)


def _const_spec(w):
    nd = w.ndim
    return pl.BlockSpec(w.shape, lambda i, _nd=nd: (0,) * _nd)


# ----------------------------------- forward ----------------------------------
@jax.jit
def casanet_forward(hsi, msi, fused):
    """hsi: (B, 330, 11, 11) NCHW f32, msi: (B, 4, 11, 11) NCHW f32.
    `fused` must come from prepare_weights(params, B)."""
    B = hsi.shape[0]
    b_tile, n_tiles, tok_sub = _tiling(B)
    assert fused['pool'].shape[0] == b_tile and \
        fused['wt1b'].shape[0] == tok_sub * TOK_HID, (
        "fused weights were prepared for a different batch size; "
        "re-run prepare_weights(params, B)")
    b_pad = b_tile * n_tiles

    # Single XLA rearrangement of the raw NCHW inputs: concat modalities along
    # channels, crop to the 9x9 patch-covered region (stride-3 conv semantics),
    # unfold 3x3 patches, and lay rows out as (pixel, sample*patch, channel).
    # allow_input_fusion lets XLA fuse this chain into the pallas_call operand.
    x = jnp.concatenate([hsi, msi], axis=1)                       # (B, 334, 11, 11)
    x = x[:, :, :GRID * PATCH, :GRID * PATCH]                     # (B, 334, 9, 9)
    x = x.reshape(B, CIN, GRID, PATCH, GRID, PATCH)               # (B, C, pi, u, pj, v)
    x = jnp.transpose(x, (3, 5, 0, 2, 4, 1))                      # (u, v, B, pi, pj, C)
    x = x.reshape(PIX, B * NPATCH, CIN).astype(jnp.bfloat16)
    if b_pad != B:
        x = jnp.pad(x, ((0, 0), (0, (b_pad - B) * NPATCH), (0, 0)))

    weights = [fused[n] for n in _W_NAMES]

    out = pl.pallas_call(
        casanet_kernel,
        out_shape=jax.ShapeDtypeStruct((b_pad, OUT_PAD), jnp.float32),
        grid=(n_tiles,),
        in_specs=[pl.BlockSpec((PIX, b_tile * NPATCH, CIN), lambda i: (0, i, 0))]
                 + [_const_spec(w) for w in weights],
        out_specs=pl.BlockSpec((b_tile, OUT_PAD), lambda i: (i, 0)),
        compiler_params=pltpu.CompilerParams(
            dimension_semantics=("parallel",),
            allow_input_fusion=[True] + [False] * len(weights),
            vmem_limit_bytes=32 * 1024 * 1024),
    )(x, *weights)

    logits = out[:B, :NUM_CLASSES]
    return logits, logits                      # module returns the pair


# ------------------------------------ params ----------------------------------
def init_params(key):
    ks = jax.random.split(key, 9)

    def dense(k, shape, scale=0.02):
        return (scale * jax.random.normal(k, shape)).astype(jnp.float32)

    z = lambda s: jnp.zeros(s, jnp.float32)
    o = lambda s: jnp.ones(s, jnp.float32)
    return {
        # backbone stand-ins (resnext50_330 / resnext50_4)
        'w_back_h': dense(ks[0], (HSI_CH, CH)), 'b_back_h': z((1, CH)),
        'w_back_m': dense(ks[1], (MSI_CH, CH)), 'b_back_m': z((1, CH)),
        # CASA_Block patch embeddings (3x3 stride-3 conv as matmul on unfolded patches)
        'wph': dense(ks[2], (PATCH_DIM, CH)), 'bph': z((1, CH)),
        'wpm': dense(ks[3], (PATCH_DIM, CH)), 'bpm': z((1, CH)),
        # token-mixing MLP (weights stored pre-transposed for left matmuls)
        'ln1g': o((1, CH)), 'ln1b': z((1, CH)),
        'wt1': dense(ks[4], (TOK_HID, NPATCH)), 'bt1': z((TOK_HID, 1)),
        'wt2': dense(ks[5], (NPATCH, TOK_HID)), 'bt2': z((NPATCH, 1)),
        # channel-mixing MLP
        'ln2g': o((1, CH)), 'ln2b': z((1, CH)),
        'wc1': dense(ks[6], (CH, CHAN_HID)), 'bc1': z((1, CHAN_HID)),
        'wc2': dense(ks[7], (CHAN_HID, CH)), 'bc2': z((1, CH)),
        # classifier head
        'ln3g': o((1, CH)), 'ln3b': z((1, CH)),
        'wh': dense(ks[8], (CH, NUM_CLASSES)), 'bh': z((1, NUM_CLASSES)),
    }


if __name__ == "__main__":
    key = jax.random.PRNGKey(0)
    kp, kh, km = jax.random.split(key, 3)
    params = init_params(kp)

    B = 2
    hsi = jax.random.normal(kh, (B, HSI_CH, IMG, IMG), jnp.float32)
    msi = jax.random.normal(km, (B, MSI_CH, IMG, IMG), jnp.float32)

    fused = prepare_weights(params, B)          # one-time, off the hot path
    out1, out2 = casanet_forward(hsi, msi, fused)
    jax.block_until_ready(out1)
    assert out1.shape == (B, NUM_CLASSES) and out2.shape == (B, NUM_CLASSES)
    assert bool(jnp.all(jnp.isfinite(out1)))
    print("KERNEL_OK")
</pallas_src>

<mosaic_0001>
module attributes {stable_mosaic.version = 11 : i64} {
  func.func @casanet_kernel(%arg0: i32, %arg1: memref<9x72x334xbf16, #tpu.memory_space<vmem>>, %arg2: memref<334x128xbf16, #tpu.memory_space<vmem>>, %arg3: memref<1x128xf32, #tpu.memory_space<vmem>>, %arg4: memref<9x128x64xbf16, #tpu.memory_space<vmem>>, %arg5: memref<1x64xf32, #tpu.memory_space<vmem>>, %arg6: memref<1x64xf32, #tpu.memory_space<vmem>>, %arg7: memref<1x64xf32, #tpu.memory_space<vmem>>, %arg8: memref<256x72xf32, #tpu.memory_space<vmem>>, %arg9: memref<256x1xf32, #tpu.memory_space<vmem>>, %arg10: memref<72x256xf32, #tpu.memory_space<vmem>>, %arg11: memref<72x1xf32, #tpu.memory_space<vmem>>, %arg12: memref<1x64xf32, #tpu.memory_space<vmem>>, %arg13: memref<1x64xf32, #tpu.memory_space<vmem>>, %arg14: memref<64x256xf32, #tpu.memory_space<vmem>>, %arg15: memref<1x256xf32, #tpu.memory_space<vmem>>, %arg16: memref<256x64xf32, #tpu.memory_space<vmem>>, %arg17: memref<1x64xf32, #tpu.memory_space<vmem>>, %arg18: memref<1x64xf32, #tpu.memory_space<vmem>>, %arg19: memref<1x64xf32, #tpu.memory_space<vmem>>, %arg20: memref<8x72xf32, #tpu.memory_space<vmem>>, %arg21: memref<64x128xf32, #tpu.memory_space<vmem>>, %arg22: memref<1x128xf32, #tpu.memory_space<vmem>>, %arg23: memref<8x128xf32, #tpu.memory_space<vmem>>) attributes {dimension_semantics = [#tpu.dimension_semantics<parallel>], iteration_bounds = array<i64: 1>, scalar_prefetch = 0 : i64, scratch_operands = 0 : i64, tpu.core_type = #tpu.core_type<tc>, window_params = [{transform_indices = @transform_0, window_bounds = array<i64: 9, 72, 334>}, {pipeline_mode = #tpu.pipeline_mode<synchronous>, transform_indices = @transform_1, window_bounds = array<i64: 334, 128>}, {pipeline_mode = #tpu.pipeline_mode<synchronous>, transform_indices = @transform_2, window_bounds = array<i64: 1, 128>}, {pipeline_mode = #tpu.pipeline_mode<synchronous>, transform_indices = @transform_3, window_bounds = array<i64: 9, 128, 64>}, {pipeline_mode = #tpu.pipeline_mode<synchronous>, transform_indices = @transform_4, window_bounds = array<i64: 1, 64>}, {pipeline_mode = #tpu.pipeline_mode<synchronous>, transform_indices = @transform_5, window_bounds = array<i64: 1, 64>}, {pipeline_mode = #tpu.pipeline_mode<synchronous>, transform_indices = @transform_6, window_bounds = array<i64: 1, 64>}, {pipeline_mode = #tpu.pipeline_mode<synchronous>, transform_indices = @transform_7, window_bounds = array<i64: 256, 72>}, {pipeline_mode = #tpu.pipeline_mode<synchronous>, transform_indices = @transform_8, window_bounds = array<i64: 256, 1>}, {pipeline_mode = #tpu.pipeline_mode<synchronous>, transform_indices = @transform_9, window_bounds = array<i64: 72, 256>}, {pipeline_mode = #tpu.pipeline_mode<synchronous>, transform_indices = @transform_10, window_bounds = array<i64: 72, 1>}, {pipeline_mode = #tpu.pipeline_mode<synchronous>, transform_indices = @transform_11, window_bounds = array<i64: 1, 64>}, {pipeline_mode = #tpu.pipeline_mode<synchronous>, transform_indices = @transform_12, window_bounds = array<i64: 1, 64>}, {pipeline_mode = #tpu.pipeline_mode<synchronous>, transform_indices = @transform_13, window_bounds = array<i64: 64, 256>}, {pipeline_mode = #tpu.pipeline_mode<synchronous>, transform_indices = @transform_14, window_bounds = array<i64: 1, 256>}, {pipeline_mode = #tpu.pipeline_mode<synchronous>, transform_indices = @transform_15, window_bounds = array<i64: 256, 64>}, {pipeline_mode = #tpu.pipeline_mode<synchronous>, transform_indices = @transform_16, window_bounds = array<i64: 1, 64>}, {pipeline_mode = #tpu.pipeline_mode<synchronous>, transform_indices = @transform_17, window_bounds = array<i64: 1, 64>}, {pipeline_mode = #tpu.pipeline_mode<synchronous>, transform_indices = @transform_18, window_bounds = array<i64: 1, 64>}, {pipeline_mode = #tpu.pipeline_mode<synchronous>, transform_indices = @transform_19, window_bounds = array<i64: 8, 72>}, {pipeline_mode = #tpu.pipeline_mode<synchronous>, transform_indices = @transform_20, window_bounds = array<i64: 64, 128>}, {pipeline_mode = #tpu.pipeline_mode<synchronous>, transform_indices = @transform_21, window_bounds = array<i64: 1, 128>}, {transform_indices = @transform_22, window_bounds = array<i64: 8, 128>}]} {
    %c0 = arith.constant 0 : index
    %c0_0 = arith.constant 0 : index
    %c0_1 = arith.constant 0 : index
    %0 = vector.load %arg1[%c0, %c0_0, %c0_1] : memref<9x72x334xbf16, #tpu.memory_space<vmem>>, vector<9x72x334xbf16>
    %1 = vector.shape_cast %0 : vector<9x72x334xbf16> to vector<648x334xbf16>
    %c0_2 = arith.constant 0 : index
    %c0_3 = arith.constant 0 : index
    %2 = vector.load %arg2[%c0_2, %c0_3] : memref<334x128xbf16, #tpu.memory_space<vmem>>, vector<334x128xbf16>
    %cst = arith.constant dense<0.000000e+00> : vector<648x128xf32>
    %3 = tpu.matmul %1, %2, %cst {dimension_numbers = #tpu.dot_dimension_numbers<[1], [0], [0], [1], [0, 0, 1, 1], [], []>} : vector<648x334xbf16>, vector<334x128xbf16>, vector<648x128xf32> -> vector<648x128xf32>
    %c0_4 = arith.constant 0 : index
    %c0_5 = arith.constant 0 : index
    %4 = vector.load %arg3[%c0_4, %c0_5] : memref<1x128xf32, #tpu.memory_space<vmem>>, vector<1x128xf32>
    %5 = vector.broadcast %4 : vector<1x128xf32> to vector<648x128xf32>
    %6 = arith.addf %3, %5 : vector<648x128xf32>
    %cst_6 = arith.constant 0.000000e+00 : f32
    %7 = vector.broadcast %cst_6 : f32 to vector<648x128xf32>
    %8 = arith.maximumf %6, %7 : vector<648x128xf32>
    %9 = arith.truncf %8 : vector<648x128xf32> to vector<648x128xbf16>
    %cst_7 = arith.constant 0.000000e+00 : f32
    %10 = vector.broadcast %cst_7 : f32 to vector<72x64xf32>
    %11 = vector.extract_strided_slice %9 {offsets = [0, 0], sizes = [72, 128], strides = [1, 1]} : vector<648x128xbf16> to vector<72x128xbf16>
    %c0_8 = arith.constant 0 : index
    %c0_9 = arith.constant 0 : index
    %c0_10 = arith.constant 0 : index
    %12 = vector.load %arg4[%c0_8, %c0_9, %c0_10] : memref<9x128x64xbf16, #tpu.memory_space<vmem>>, vector<1x128x64xbf16>
    %13 = vector.shape_cast %12 : vector<1x128x64xbf16> to vector<128x64xbf16>
    %cst_11 = arith.constant dense<0.000000e+00> : vector<72x64xf32>
    %14 = tpu.matmul %11, %13, %cst_11 {dimension_numbers = #tpu.dot_dimension_numbers<[1], [0], [0], [1], [0, 0, 1, 1], [], []>} : vector<72x128xbf16>, vector<128x64xbf16>, vector<72x64xf32> -> vector<72x64xf32>
    %15 = arith.addf %10, %14 : vector<72x64xf32>
    %16 = vector.extract_strided_slice %9 {offsets = [72, 0], sizes = [72, 128], strides = [1, 1]} : vector<648x128xbf16> to vector<72x128xbf16>
    %c1 = arith.constant 1 : index
    %c0_12 = arith.constant 0 : index
    %c0_13 = arith.constant 0 : index
    %17 = vector.load %arg4[%c1, %c0_12, %c0_13] : memref<9x128x64xbf16, #tpu.memory_space<vmem>>, vector<1x128x64xbf16>
    %18 = vector.shape_cast %17 : vector<1x128x64xbf16> to vector<128x64xbf16>
    %cst_14 = arith.constant dense<0.000000e+00> : vector<72x64xf32>
    %19 = tpu.matmul %16, %18, %cst_14 {dimension_numbers = #tpu.dot_dimension_numbers<[1], [0], [0], [1], [0, 0, 1, 1], [], []>} : vector<72x128xbf16>, vector<128x64xbf16>, vector<72x64xf32> -> vector<72x64xf32>
    %20 = arith.addf %15, %19 : vector<72x64xf32>
    %21 = vector.extract_strided_slice %9 {offsets = [144, 0], sizes = [72, 128], strides = [1, 1]} : vector<648x128xbf16> to vector<72x128xbf16>
    %c2 = arith.constant 2 : index
    %c0_15 = arith.constant 0 : index
    %c0_16 = arith.constant 0 : index
    %22 = vector.load %arg4[%c2, %c0_15, %c0_16] : memref<9x128x64xbf16, #tpu.memory_space<vmem>>, vector<1x128x64xbf16>
    %23 = vector.shape_cast %22 : vector<1x128x64xbf16> to vector<128x64xbf16>
    %cst_17 = arith.constant dense<0.000000e+00> : vector<72x64xf32>
    %24 = tpu.matmul %21, %23, %cst_17 {dimension_numbers = #tpu.dot_dimension_numbers<[1], [0], [0], [1], [0, 0, 1, 1], [], []>} : vector<72x128xbf16>, vector<128x64xbf16>, vector<72x64xf32> -> vector<72x64xf32>
    %25 = arith.addf %20, %24 : vector<72x64xf32>
    %26 = vector.extract_strided_slice %9 {offsets = [216, 0], sizes = [72, 128], strides = [1, 1]} : vector<648x128xbf16> to vector<72x128xbf16>
    %c3 = arith.constant 3 : index
    %c0_18 = arith.constant 0 : index
    %c0_19 = arith.constant 0 : index
    %27 = vector.load %arg4[%c3, %c0_18, %c0_19] : memref<9x128x64xbf16, #tpu.memory_space<vmem>>, vector<1x128x64xbf16>
    %28 = vector.shape_cast %27 : vector<1x128x64xbf16> to vector<128x64xbf16>
    %cst_20 = arith.constant dense<0.000000e+00> : vector<72x64xf32>
    %29 = tpu.matmul %26, %28, %cst_20 {dimension_numbers = #tpu.dot_dimension_numbers<[1], [0], [0], [1], [0, 0, 1, 1], [], []>} : vector<72x128xbf16>, vector<128x64xbf16>, vector<72x64xf32> -> vector<72x64xf32>
    %30 = arith.addf %25, %29 : vector<72x64xf32>
    %31 = vector.extract_strided_slice %9 {offsets = [288, 0], sizes = [72, 128], strides = [1, 1]} : vector<648x128xbf16> to vector<72x128xbf16>
    %c4 = arith.constant 4 : index
    %c0_21 = arith.constant 0 : index
    %c0_22 = arith.constant 0 : index
    %32 = vector.load %arg4[%c4, %c0_21, %c0_22] : memref<9x128x64xbf16, #tpu.memory_space<vmem>>, vector<1x128x64xbf16>
    %33 = vector.shape_cast %32 : vector<1x128x64xbf16> to vector<128x64xbf16>
    %cst_23 = arith.constant dense<0.000000e+00> : vector<72x64xf32>
    %34 = tpu.matmul %31, %33, %cst_23 {dimension_numbers = #tpu.dot_dimension_numbers<[1], [0], [0], [1], [0, 0, 1, 1], [], []>} : vector<72x128xbf16>, vector<128x64xbf16>, vector<72x64xf32> -> vector<72x64xf32>
    %35 = arith.addf %30, %34 : vector<72x64xf32>
    %36 = vector.extract_strided_slice %9 {offsets = [360, 0], sizes = [72, 128], strides = [1, 1]} : vector<648x128xbf16> to vector<72x128xbf16>
    %c5 = arith.constant 5 : index
    %c0_24 = arith.constant 0 : index
    %c0_25 = arith.constant 0 : index
    %37 = vector.load %arg4[%c5, %c0_24, %c0_25] : memref<9x128x64xbf16, #tpu.memory_space<vmem>>, vector<1x128x64xbf16>
    %38 = vector.shape_cast %37 : vector<1x128x64xbf16> to vector<128x64xbf16>
    %cst_26 = arith.constant dense<0.000000e+00> : vector<72x64xf32>
    %39 = tpu.matmul %36, %38, %cst_26 {dimension_numbers = #tpu.dot_dimension_numbers<[1], [0], [0], [1], [0, 0, 1, 1], [], []>} : vector<72x128xbf16>, vector<128x64xbf16>, vector<72x64xf32> -> vector<72x64xf32>
    %40 = arith.addf %35, %39 : vector<72x64xf32>
    %41 = vector.extract_strided_slice %9 {offsets = [432, 0], sizes = [72, 128], strides = [1, 1]} : vector<648x128xbf16> to vector<72x128xbf16>
    %c6 = arith.constant 6 : index
    %c0_27 = arith.constant 0 : index
    %c0_28 = arith.constant 0 : index
    %42 = vector.load %arg4[%c6, %c0_27, %c0_28] : memref<9x128x64xbf16, #tpu.memory_space<vmem>>, vector<1x128x64xbf16>
    %43 = vector.shape_cast %42 : vector<1x128x64xbf16> to vector<128x64xbf16>
    %cst_29 = arith.constant dense<0.000000e+00> : vector<72x64xf32>
    %44 = tpu.matmul %41, %43, %cst_29 {dimension_numbers = #tpu.dot_dimension_numbers<[1], [0], [0], [1], [0, 0, 1, 1], [], []>} : vector<72x128xbf16>, vector<128x64xbf16>, vector<72x64xf32> -> vector<72x64xf32>
    %45 = arith.addf %40, %44 : vector<72x64xf32>
    %46 = vector.extract_strided_slice %9 {offsets = [504, 0], sizes = [72, 128], strides = [1, 1]} : vector<648x128xbf16> to vector<72x128xbf16>
    %c7 = arith.constant 7 : index
    %c0_30 = arith.constant 0 : index
    %c0_31 = arith.constant 0 : index
    %47 = vector.load %arg4[%c7, %c0_30, %c0_31] : memref<9x128x64xbf16, #tpu.memory_space<vmem>>, vector<1x128x64xbf16>
    %48 = vector.shape_cast %47 : vector<1x128x64xbf16> to vector<128x64xbf16>
    %cst_32 = arith.constant dense<0.000000e+00> : vector<72x64xf32>
    %49 = tpu.matmul %46, %48, %cst_32 {dimension_numbers = #tpu.dot_dimension_numbers<[1], [0], [0], [1], [0, 0, 1, 1], [], []>} : vector<72x128xbf16>, vector<128x64xbf16>, vector<72x64xf32> -> vector<72x64xf32>
    %50 = arith.addf %45, %49 : vector<72x64xf32>
    %51 = vector.extract_strided_slice %9 {offsets = [576, 0], sizes = [72, 128], strides = [1, 1]} : vector<648x128xbf16> to vector<72x128xbf16>
    %c8 = arith.constant 8 : index
    %c0_33 = arith.constant 0 : index
    %c0_34 = arith.constant 0 : index
    %52 = vector.load %arg4[%c8, %c0_33, %c0_34] : memref<9x128x64xbf16, #tpu.memory_space<vmem>>, vector<1x128x64xbf16>
    %53 = vector.shape_cast %52 : vector<1x128x64xbf16> to vector<128x64xbf16>
    %cst_35 = arith.constant dense<0.000000e+00> : vector<72x64xf32>
    %54 = tpu.matmul %51, %53, %cst_35 {dimension_numbers = #tpu.dot_dimension_numbers<[1], [0], [0], [1], [0, 0, 1, 1], [], []>} : vector<72x128xbf16>, vector<128x64xbf16>, vector<72x64xf32> -> vector<72x64xf32>
    %55 = arith.addf %50, %54 : vector<72x64xf32>
    %c0_36 = arith.constant 0 : index
    %c0_37 = arith.constant 0 : index
    %56 = vector.load %arg5[%c0_36, %c0_37] : memref<1x64xf32, #tpu.memory_space<vmem>>, vector<1x64xf32>
    %57 = vector.broadcast %56 : vector<1x64xf32> to vector<72x64xf32>
    %58 = arith.addf %55, %57 : vector<72x64xf32>
    %c0_38 = arith.constant 0 : index
    %c0_39 = arith.constant 0 : index
    %59 = vector.load %arg6[%c0_38, %c0_39] : memref<1x64xf32, #tpu.memory_space<vmem>>, vector<1x64xf32>
    %c0_40 = arith.constant 0 : index
    %c0_41 = arith.constant 0 : index
    %60 = vector.load %arg7[%c0_40, %c0_41] : memref<1x64xf32, #tpu.memory_space<vmem>>, vector<1x64xf32>
    %cst_42 = arith.constant dense<0.000000e+00> : vector<72xf32>
    %61 = vector.multi_reduction <add>, %58, %cst_42 [1] : vector<72x64xf32> to vector<72xf32>
    %62 = vector.shape_cast %61 : vector<72xf32> to vector<72x1xf32>
    %cst_43 = arith.constant 6.400000e+01 : f32
    %63 = vector.broadcast %cst_43 : f32 to vector<72x1xf32>
    %64 = arith.divf %62, %63 : vector<72x1xf32>
    %65 = vector.broadcast %64 : vector<72x1xf32> to vector<72x64xf32>
    %66 = arith.subf %58, %65 : vector<72x64xf32>
    %67 = arith.mulf %66, %66 : vector<72x64xf32>
    %cst_44 = arith.constant dense<0.000000e+00> : vector<72xf32>
    %68 = vector.multi_reduction <add>, %67, %cst_44 [1] : vector<72x64xf32> to vector<72xf32>
    %69 = vector.shape_cast %68 : vector<72xf32> to vector<72x1xf32>
    %cst_45 = arith.constant 6.400000e+01 : f32
    %70 = vector.broadcast %cst_45 : f32 to vector<72x1xf32>
    %71 = arith.divf %69, %70 : vector<72x1xf32>
    %72 = vector.broadcast %64 : vector<72x1xf32> to vector<72x64xf32>
    %73 = arith.subf %58, %72 : vector<72x64xf32>
    %cst_46 = arith.constant 9.99999974E-6 : f32
    %74 = vector.broadcast %cst_46 : f32 to vector<72x1xf32>
    %75 = arith.addf %71, %74 : vector<72x1xf32>
    %76 = math.rsqrt %75 : vector<72x1xf32>
    %77 = vector.broadcast %76 : vector<72x1xf32> to vector<72x64xf32>
    %78 = arith.mulf %73, %77 : vector<72x64xf32>
    %79 = vector.broadcast %59 : vector<1x64xf32> to vector<72x64xf32>
    %80 = arith.mulf %78, %79 : vector<72x64xf32>
    %81 = vector.broadcast %60 : vector<1x64xf32> to vector<72x64xf32>
    %82 = arith.addf %80, %81 : vector<72x64xf32>
    %c0_47 = arith.constant 0 : index
    %c0_48 = arith.constant 0 : index
    %83 = vector.load %arg8[%c0_47, %c0_48] : memref<256x72xf32, #tpu.memory_space<vmem>>, vector<256x72xf32>
    %cst_49 = arith.constant dense<0.000000e+00> : vector<256x64xf32>
    %84 = tpu.matmul %83, %82, %cst_49 {dimension_numbers = #tpu.dot_dimension_numbers<[1], [0], [0], [1], [0, 0, 1, 1], [], []>} : vector<256x72xf32>, vector<72x64xf32>, vector<256x64xf32> -> vector<256x64xf32>
    %c0_50 = arith.constant 0 : index
    %c0_51 = arith.constant 0 : index
    %85 = vector.load %arg9[%c0_50, %c0_51] : memref<256x1xf32, #tpu.memory_space<vmem>>, vector<256x1xf32>
    %86 = vector.broadcast %85 : vector<256x1xf32> to vector<256x64xf32>
    %87 = arith.addf %84, %86 : vector<256x64xf32>
    %cst_52 = arith.constant 5.000000e-01 : f32
    %88 = vector.broadcast %cst_52 : f32 to vector<256x64xf32>
    %89 = arith.mulf %88, %87 : vector<256x64xf32>
    %cst_53 = arith.constant 4.471500e-02 : f32
    %90 = vector.broadcast %cst_53 : f32 to vector<256x64xf32>
    %91 = arith.mulf %90, %87 : vector<256x64xf32>
    %92 = arith.mulf %91, %87 : vector<256x64xf32>
    %93 = arith.mulf %92, %87 : vector<256x64xf32>
    %94 = arith.addf %87, %93 : vector<256x64xf32>
    %cst_54 = arith.constant 0.797884583 : f32
    %95 = vector.broadcast %cst_54 : f32 to vector<256x64xf32>
    %96 = arith.mulf %95, %94 : vector<256x64xf32>
    %97 = math.tanh %96 : vector<256x64xf32>
    %cst_55 = arith.constant 1.000000e+00 : f32
    %98 = vector.broadcast %cst_55 : f32 to vector<256x64xf32>
    %99 = arith.addf %98, %97 : vector<256x64xf32>
    %100 = arith.mulf %89, %99 : vector<256x64xf32>
    %c0_56 = arith.constant 0 : index
    %c0_57 = arith.constant 0 : index
    %101 = vector.load %arg10[%c0_56, %c0_57] : memref<72x256xf32, #tpu.memory_space<vmem>>, vector<72x256xf32>
    %cst_58 = arith.constant dense<0.000000e+00> : vector<72x64xf32>
    %102 = tpu.matmul %101, %100, %cst_58 {dimension_numbers = #tpu.dot_dimension_numbers<[1], [0], [0], [1], [0, 0, 1, 1], [], []>} : vector<72x256xf32>, vector<256x64xf32>, vector<72x64xf32> -> vector<72x64xf32>
    %c0_59 = arith.constant 0 : index
    %c0_60 = arith.constant 0 : index
    %103 = vector.load %arg11[%c0_59, %c0_60] : memref<72x1xf32, #tpu.memory_space<vmem>>, vector<72x1xf32>
    %104 = vector.broadcast %103 : vector<72x1xf32> to vector<72x64xf32>
    %105 = arith.addf %102, %104 : vector<72x64xf32>
    %106 = arith.addf %58, %105 : vector<72x64xf32>
    %c0_61 = arith.constant 0 : index
    %c0_62 = arith.constant 0 : index
    %107 = vector.load %arg12[%c0_61, %c0_62] : memref<1x64xf32, #tpu.memory_space<vmem>>, vector<1x64xf32>
    %c0_63 = arith.constant 0 : index
    %c0_64 = arith.constant 0 : index
    %108 = vector.load %arg13[%c0_63, %c0_64] : memref<1x64xf32, #tpu.memory_space<vmem>>, vector<1x64xf32>
    %cst_65 = arith.constant dense<0.000000e+00> : vector<72xf32>
    %109 = vector.multi_reduction <add>, %106, %cst_65 [1] : vector<72x64xf32> to vector<72xf32>
    %110 = vector.shape_cast %109 : vector<72xf32> to vector<72x1xf32>
    %cst_66 = arith.constant 6.400000e+01 : f32
    %111 = vector.broadcast %cst_66 : f32 to vector<72x1xf32>
    %112 = arith.divf %110, %111 : vector<72x1xf32>
    %113 = vector.broadcast %112 : vector<72x1xf32> to vector<72x64xf32>
    %114 = arith.subf %106, %113 : vector<72x64xf32>
    %115 = arith.mulf %114, %114 : vector<72x64xf32>
    %cst_67 = arith.constant dense<0.000000e+00> : vector<72xf32>
    %116 = vector.multi_reduction <add>, %115, %cst_67 [1] : vector<72x64xf32> to vector<72xf32>
    %117 = vector.shape_cast %116 : vector<72xf32> to vector<72x1xf32>
    %cst_68 = arith.constant 6.400000e+01 : f32
    %118 = vector.broadcast %cst_68 : f32 to vector<72x1xf32>
    %119 = arith.divf %117, %118 : vector<72x1xf32>
    %120 = vector.broadcast %112 : vector<72x1xf32> to vector<72x64xf32>
    %121 = arith.subf %106, %120 : vector<72x64xf32>
    %cst_69 = arith.constant 9.99999974E-6 : f32
    %122 = vector.broadcast %cst_69 : f32 to vector<72x1xf32>
    %123 = arith.addf %119, %122 : vector<72x1xf32>
    %124 = math.rsqrt %123 : vector<72x1xf32>
    %125 = vector.broadcast %124 : vector<72x1xf32> to vector<72x64xf32>
    %126 = arith.mulf %121, %125 : vector<72x64xf32>
    %127 = vector.broadcast %107 : vector<1x64xf32> to vector<72x64xf32>
    %128 = arith.mulf %126, %127 : vector<72x64xf32>
    %129 = vector.broadcast %108 : vector<1x64xf32> to vector<72x64xf32>
    %130 = arith.addf %128, %129 : vector<72x64xf32>
    %c0_70 = arith.constant 0 : index
    %c0_71 = arith.constant 0 : index
    %131 = vector.load %arg14[%c0_70, %c0_71] : memref<64x256xf32, #tpu.memory_space<vmem>>, vector<64x256xf32>
    %cst_72 = arith.constant dense<0.000000e+00> : vector<72x256xf32>
    %132 = tpu.matmul %130, %131, %cst_72 {dimension_numbers = #tpu.dot_dimension_numbers<[1], [0], [0], [1], [0, 0, 1, 1], [], []>} : vector<72x64xf32>, vector<64x256xf32>, vector<72x256xf32> -> vector<72x256xf32>
    %c0_73 = arith.constant 0 : index
    %c0_74 = arith.constant 0 : index
    %133 = vector.load %arg15[%c0_73, %c0_74] : memref<1x256xf32, #tpu.memory_space<vmem>>, vector<1x256xf32>
    %134 = vector.broadcast %133 : vector<1x256xf32> to vector<72x256xf32>
    %135 = arith.addf %132, %134 : vector<72x256xf32>
    %cst_75 = arith.constant 5.000000e-01 : f32
    %136 = vector.broadcast %cst_75 : f32 to vector<72x256xf32>
    %137 = arith.mulf %136, %135 : vector<72x256xf32>
    %cst_76 = arith.constant 4.471500e-02 : f32
    %138 = vector.broadcast %cst_76 : f32 to vector<72x256xf32>
    %139 = arith.mulf %138, %135 : vector<72x256xf32>
    %140 = arith.mulf %139, %135 : vector<72x256xf32>
    %141 = arith.mulf %140, %135 : vector<72x256xf32>
    %142 = arith.addf %135, %141 : vector<72x256xf32>
    %cst_77 = arith.constant 0.797884583 : f32
    %143 = vector.broadcast %cst_77 : f32 to vector<72x256xf32>
    %144 = arith.mulf %143, %142 : vector<72x256xf32>
    %145 = math.tanh %144 : vector<72x256xf32>
    %cst_78 = arith.constant 1.000000e+00 : f32
    %146 = vector.broadcast %cst_78 : f32 to vector<72x256xf32>
    %147 = arith.addf %146, %145 : vector<72x256xf32>
    %148 = arith.mulf %137, %147 : vector<72x256xf32>
    %c0_79 = arith.constant 0 : index
    %c0_80 = arith.constant 0 : index
    %149 = vector.load %arg16[%c0_79, %c0_80] : memref<256x64xf32, #tpu.memory_space<vmem>>, vector<256x64xf32>
    %cst_81 = arith.constant dense<0.000000e+00> : vector<72x64xf32>
    %150 = tpu.matmul %148, %149, %cst_81 {dimension_numbers = #tpu.dot_dimension_numbers<[1], [0], [0], [1], [0, 0, 1, 1], [], []>} : vector<72x256xf32>, vector<256x64xf32>, vector<72x64xf32> -> vector<72x64xf32>
    %151 = arith.addf %106, %150 : vector<72x64xf32>
    %c0_82 = arith.constant 0 : index
    %c0_83 = arith.constant 0 : index
    %152 = vector.load %arg17[%c0_82, %c0_83] : memref<1x64xf32, #tpu.memory_space<vmem>>, vector<1x64xf32>
    %153 = vector.broadcast %152 : vector<1x64xf32> to vector<72x64xf32>
    %154 = arith.addf %151, %153 : vector<72x64xf32>
    %c0_84 = arith.constant 0 : index
    %c0_85 = arith.constant 0 : index
    %155 = vector.load %arg18[%c0_84, %c0_85] : memref<1x64xf32, #tpu.memory_space<vmem>>, vector<1x64xf32>
    %c0_86 = arith.constant 0 : index
    %c0_87 = arith.constant 0 : index
    %156 = vector.load %arg19[%c0_86, %c0_87] : memref<1x64xf32, #tpu.memory_space<vmem>>, vector<1x64xf32>
    %cst_88 = arith.constant dense<0.000000e+00> : vector<72xf32>
    %157 = vector.multi_reduction <add>, %154, %cst_88 [1] : vector<72x64xf32> to vector<72xf32>
    %158 = vector.shape_cast %157 : vector<72xf32> to vector<72x1xf32>
    %cst_89 = arith.constant 6.400000e+01 : f32
    %159 = vector.broadcast %cst_89 : f32 to vector<72x1xf32>
    %160 = arith.divf %158, %159 : vector<72x1xf32>
    %161 = vector.broadcast %160 : vector<72x1xf32> to vector<72x64xf32>
    %162 = arith.subf %154, %161 : vector<72x64xf32>
    %163 = arith.mulf %162, %162 : vector<72x64xf32>
    %cst_90 = arith.constant dense<0.000000e+00> : vector<72xf32>
    %164 = vector.multi_reduction <add>, %163, %cst_90 [1] : vector<72x64xf32> to vector<72xf32>
    %165 = vector.shape_cast %164 : vector<72xf32> to vector<72x1xf32>
    %cst_91 = arith.constant 6.400000e+01 : f32
    %166 = vector.broadcast %cst_91 : f32 to vector<72x1xf32>
    %167 = arith.divf %165, %166 : vector<72x1xf32>
    %168 = vector.broadcast %160 : vector<72x1xf32> to vector<72x64xf32>
    %169 = arith.subf %154, %168 : vector<72x64xf32>
    %cst_92 = arith.constant 9.99999974E-6 : f32
    %170 = vector.broadcast %cst_92 : f32 to vector<72x1xf32>
    %171 = arith.addf %167, %170 : vector<72x1xf32>
    %172 = math.rsqrt %171 : vector<72x1xf32>
    %173 = vector.broadcast %172 : vector<72x1xf32> to vector<72x64xf32>
    %174 = arith.mulf %169, %173 : vector<72x64xf32>
    %175 = vector.broadcast %155 : vector<1x64xf32> to vector<72x64xf32>
    %176 = arith.mulf %174, %175 : vector<72x64xf32>
    %177 = vector.broadcast %156 : vector<1x64xf32> to vector<72x64xf32>
    %178 = arith.addf %176, %177 : vector<72x64xf32>
    %c0_93 = arith.constant 0 : index
    %c0_94 = arith.constant 0 : index
    %179 = vector.load %arg20[%c0_93, %c0_94] : memref<8x72xf32, #tpu.memory_space<vmem>>, vector<8x72xf32>
    %cst_95 = arith.constant dense<0.000000e+00> : vector<8x64xf32>
    %180 = tpu.matmul %179, %178, %cst_95 {dimension_numbers = #tpu.dot_dimension_numbers<[1], [0], [0], [1], [0, 0, 1, 1], [], []>} : vector<8x72xf32>, vector<72x64xf32>, vector<8x64xf32> -> vector<8x64xf32>
    %c0_96 = arith.constant 0 : index
    %c0_97 = arith.constant 0 : index
    %181 = vector.load %arg21[%c0_96, %c0_97] : memref<64x128xf32, #tpu.memory_space<vmem>>, vector<64x128xf32>
    %cst_98 = arith.constant dense<0.000000e+00> : vector<8x128xf32>
    %182 = tpu.matmul %180, %181, %cst_98 {dimension_numbers = #tpu.dot_dimension_numbers<[1], [0], [0], [1], [0, 0, 1, 1], [], []>} : vector<8x64xf32>, vector<64x128xf32>, vector<8x128xf32> -> vector<8x128xf32>
    %c0_99 = arith.constant 0 : index
    %c0_100 = arith.constant 0 : index
    %183 = vector.load %arg22[%c0_99, %c0_100] : memref<1x128xf32, #tpu.memory_space<vmem>>, vector<1x128xf32>
    %184 = vector.broadcast %183 : vector<1x128xf32> to vector<8x128xf32>
    %185 = arith.addf %182, %184 : vector<8x128xf32>
    %c0_101 = arith.constant 0 : index
    %c0_102 = arith.constant 0 : index
    %186 = vector.load %arg23[%c0_101, %c0_102] : memref<8x128xf32, #tpu.memory_space<vmem>>, vector<8x128xf32>
    tpu.vector_store %arg23[%c0_101, %c0_102], %185 {strides = array<i32>} : memref<8x128xf32, #tpu.memory_space<vmem>>, vector<8x128xf32>,
    return
  }
  func.func @transform_0(%arg0: i32) -> (i32, i32, i32) {
    %c0_i32 = arith.constant 0 : i32
    %c0_i32_0 = arith.constant 0 : i32
    %c0_i32_1 = arith.constant 0 : i32
    return %c0_i32, %arg0, %c0_i32_0 : i32, i32, i32
  }
  func.func @transform_1(%arg0: i32) -> (i32, i32) {
    %c0_i32 = arith.constant 0 : i32
    %c0_i32_0 = arith.constant 0 : i32
    %c0_i32_1 = arith.constant 0 : i32
    return %c0_i32, %c0_i32_0 : i32, i32
  }
  func.func @transform_2(%arg0: i32) -> (i32, i32) {
    %c0_i32 = arith.constant 0 : i32
    %c0_i32_0 = arith.constant 0 : i32
    %c0_i32_1 = arith.constant 0 : i32
    return %c0_i32, %c0_i32_0 : i32, i32
  }
  func.func @transform_3(%arg0: i32) -> (i32, i32, i32) {
    %c0_i32 = arith.constant 0 : i32
    %c0_i32_0 = arith.constant 0 : i32
    %c0_i32_1 = arith.constant 0 : i32
    %c0_i32_2 = arith.constant 0 : i32
    return %c0_i32, %c0_i32_0, %c0_i32_1 : i32, i32, i32
  }
  func.func @transform_4(%arg0: i32) -> (i32, i32) {
    %c0_i32 = arith.constant 0 : i32
    %c0_i32_0 = arith.constant 0 : i32
    %c0_i32_1 = arith.constant 0 : i32
    return %c0_i32, %c0_i32_0 : i32, i32
  }
  func.func @transform_5(%arg0: i32) -> (i32, i32) {
    %c0_i32 = arith.constant 0 : i32
    %c0_i32_0 = arith.constant 0 : i32
    %c0_i32_1 = arith.constant 0 : i32
    return %c0_i32, %c0_i32_0 : i32, i32
  }
  func.func @transform_6(%arg0: i32) -> (i32, i32) {
    %c0_i32 = arith.constant 0 : i32
    %c0_i32_0 = arith.constant 0 : i32
    %c0_i32_1 = arith.constant 0 : i32
    return %c0_i32, %c0_i32_0 : i32, i32
  }
  func.func @transform_7(%arg0: i32) -> (i32, i32) {
    %c0_i32 = arith.constant 0 : i32
    %c0_i32_0 = arith.constant 0 : i32
    %c0_i32_1 = arith.constant 0 : i32
    return %c0_i32, %c0_i32_0 : i32, i32
  }
  func.func @transform_8(%arg0: i32) -> (i32, i32) {
    %c0_i32 = arith.constant 0 : i32
    %c0_i32_0 = arith.constant 0 : i32
    %c0_i32_1 = arith.constant 0 : i32
    return %c0_i32, %c0_i32_0 : i32, i32
  }
  func.func @transform_9(%arg0: i32) -> (i32, i32) {
    %c0_i32 = arith.constant 0 : i32
    %c0_i32_0 = arith.constant 0 : i32
    %c0_i32_1 = arith.constant 0 : i32
    return %c0_i32, %c0_i32_0 : i32, i32
  }
  func.func @transform_10(%arg0: i32) -> (i32, i32) {
    %c0_i32 = arith.constant 0 : i32
    %c0_i32_0 = arith.constant 0 : i32
    %c0_i32_1 = arith.constant 0 : i32
    return %c0_i32, %c0_i32_0 : i32, i32
  }
  func.func @transform_11(%arg0: i32) -> (i32, i32) {
    %c0_i32 = arith.constant 0 : i32
    %c0_i32_0 = arith.constant 0 : i32
    %c0_i32_1 = arith.constant 0 : i32
    return %c0_i32, %c0_i32_0 : i32, i32
  }
  func.func @transform_12(%arg0: i32) -> (i32, i32) {
    %c0_i32 = arith.constant 0 : i32
    %c0_i32_0 = arith.constant 0 : i32
    %c0_i32_1 = arith.constant 0 : i32
    return %c0_i32, %c0_i32_0 : i32, i32
  }
  func.func @transform_13(%arg0: i32) -> (i32, i32) {
    %c0_i32 = arith.constant 0 : i32
    %c0_i32_0 = arith.constant 0 : i32
    %c0_i32_1 = arith.constant 0 : i32
    return %c0_i32, %c0_i32_0 : i32, i32
  }
  func.func @transform_14(%arg0: i32) -> (i32, i32) {
    %c0_i32 = arith.constant 0 : i32
    %c0_i32_0 = arith.constant 0 : i32
    %c0_i32_1 = arith.constant 0 : i32
    return %c0_i32, %c0_i32_0 : i32, i32
  }
  func.func @transform_15(%arg0: i32) -> (i32, i32) {
    %c0_i32 = arith.constant 0 : i32
    %c0_i32_0 = arith.constant 0 : i32
    %c0_i32_1 = arith.constant 0 : i32
    return %c0_i32, %c0_i32_0 : i32, i32
  }
  func.func @transform_16(%arg0: i32) -> (i32, i32) {
    %c0_i32 = arith.constant 0 : i32
    %c0_i32_0 = arith.constant 0 : i32
    %c0_i32_1 = arith.constant 0 : i32
    return %c0_i32, %c0_i32_0 : i32, i32
  }
  func.func @transform_17(%arg0: i32) -> (i32, i32) {
    %c0_i32 = arith.constant 0 : i32
    %c0_i32_0 = arith.constant 0 : i32
    %c0_i32_1 = arith.constant 0 : i32
    return %c0_i32, %c0_i32_0 : i32, i32
  }
  func.func @transform_18(%arg0: i32) -> (i32, i32) {
    %c0_i32 = arith.constant 0 : i32
    %c0_i32_0 = arith.constant 0 : i32
    %c0_i32_1 = arith.constant 0 : i32
    return %c0_i32, %c0_i32_0 : i32, i32
  }
  func.func @transform_19(%arg0: i32) -> (i32, i32) {
    %c0_i32 = arith.constant 0 : i32
    %c0_i32_0 = arith.constant 0 : i32
    %c0_i32_1 = arith.constant 0 : i32
    return %c0_i32, %c0_i32_0 : i32, i32
  }
  func.func @transform_20(%arg0: i32) -> (i32, i32) {
    %c0_i32 = arith.constant 0 : i32
    %c0_i32_0 = arith.constant 0 : i32
    %c0_i32_1 = arith.constant 0 : i32
    return %c0_i32, %c0_i32_0 : i32, i32
  }
  func.func @transform_21(%arg0: i32) -> (i32, i32) {
    %c0_i32 = arith.constant 0 : i32
    %c0_i32_0 = arith.constant 0 : i32
    %c0_i32_1 = arith.constant 0 : i32
    return %c0_i32, %c0_i32_0 : i32, i32
  }
  func.func @transform_22(%arg0: i32) -> (i32, i32) {
    %c0_i32 = arith.constant 0 : i32
    %c0_i32_0 = arith.constant 0 : i32
    return %arg0, %c0_i32 : i32, i32
  }
}

</mosaic_0001>

<bundles_post_ra>
// kernel: casanet_forward.2
= control target key start
LH: loop header
LB: loop body
LE: loop exit
PB: predicated region body
PF: predicated region fallthrough
CT: control target
= control target key end

     0   :  { %s13900_s0 = inlined_call_operand.vmem [shape: bf16[334,128], index: 0, kind: input, shape index: {}]   ;;  %s13901_s1 = inlined_call_operand.vmem [shape: f32[1,128], index: 1, kind: input, shape index: {}]   ;;  %s13902_s2 = inlined_call_operand.vmem [shape: bf16[9,128,64], index: 2, kind: input, shape index: {}]   ;;  %s13903_s3 = inlined_call_operand.vmem [shape: f32[1,64], index: 3, kind: input, shape index: {}]   ;;  %s13904_s4 = inlined_call_operand.vmem [shape: f32[1,64], index: 4, kind: input, shape index: {}]   ;;  %s13905_s5 = inlined_call_operand.vmem [shape: f32[1,64], index: 5, kind: input, shape index: {}]   ;;  %s13906_s6 = inlined_call_operand.vmem [shape: f32[256,72], index: 6, kind: input, shape index: {}]   ;;  %s13907_s7 = inlined_call_operand.vmem [shape: f32[256,1], index: 7, kind: input, shape index: {}]   ;;  %s13908_s8 = inlined_call_operand.vmem [shape: f32[72,256], index: 8, kind: input, shape index: {}]   ;;  %s13909_s9 = inlined_call_operand.vmem [shape: f32[72,1], index: 9, kind: input, shape index: {}]   ;;  %s13910_s10 = inlined_call_operand.vmem [shape: f32[1,64], index: 10, kind: input, shape index: {}]   ;;  %s13911_s11 = inlined_call_operand.vmem [shape: f32[1,64], index: 11, kind: input, shape index: {}]   ;;  %s13912_s12 = inlined_call_operand.vmem [shape: f32[64,256], index: 12, kind: input, shape index: {}]   ;;  %s13913_s13 = inlined_call_operand.vmem [shape: f32[1,256], index: 13, kind: input, shape index: {}]   ;;  %s13914_s14 = inlined_call_operand.vmem [shape: f32[256,64], index: 14, kind: input, shape index: {}]   ;;  %s13915_s15 = inlined_call_operand.vmem [shape: f32[1,64], index: 15, kind: input, shape index: {}]   ;;  %s13916_s16 = inlined_call_operand.vmem [shape: f32[1,64], index: 16, kind: input, shape index: {}]   ;;  %s13917_s17 = inlined_call_operand.vmem [shape: f32[1,64], index: 17, kind: input, shape index: {}]   ;;  %s13918_s18 = inlined_call_operand.vmem [shape: f32[8,72], index: 18, kind: input, shape index: {}]   ;;  %s13919_s19 = inlined_call_operand.vmem [shape: f32[64,128], index: 19, kind: input, shape index: {}]   ;;  %s13920_s20 = inlined_call_operand.vmem [shape: f32[1,128], index: 20, kind: input, shape index: {}]   ;;  %s13921_s21 = inlined_call_operand.vmem [shape: bf16[9,18,334], index: 21, kind: input, shape index: {}]   ;;  %s13922_s22 = inlined_call_operand.<no memory space> [shape: bf16[], index: 22, kind: input, shape index: {}]   ;;  %s13923_s23 = inlined_call_operand.vmem [shape: f32[8,128], index: 23, kind: output, shape index: {}]  }
   0x1   :  { %13942 = sst [smem:[#allocation18_spill]] %s13900_s0  ;;  %v28_v0 = vstv %s13922_s22 }
   0x2   :  { %13943 = sst [smem:[#allocation19_spill]] %s13901_s1  ;;  %v11130_v1 = vunpack.i.l.bf16 %v28_v0 }
   0x3   :  { %13944 = sst [smem:[#allocation20_spill]] %s13902_s2 }
   0x4   :  { %13945 = sst [smem:[#allocation21_spill]] %s13903_s3 }
   0x5   :  { %13946 = sst [smem:[#allocation22_spill]] %s13904_s4 }
   0x6   :  { %13947 = sst [smem:[#allocation23_spill]] %s13905_s5 }
   0x7   :  { %13948 = sst [smem:[#allocation24_spill]] %s13906_s6 }
   0x8   :  { %13949 = sst [smem:[#allocation25_spill]] %s13907_s7 }
   0x9   :  { %s13950_s5 = sld [smem:[#allocation18_spill]]  ;;  %v11137_v3 = vpack.c.bf16 %v11130_v1, %v11130_v1  ;;  %v11003_v4 = vmov 0   ;;  %v13929_v6 = vmov 0.0   ;;  %v147_v7 = vlaneseq  ;;  %v86_v15 = vld [vmem:[%s13921_s21] sm:$0xff]   ;;  %v8360_v16 = vld [vmem:[%s13921_s21 + $0x8] sm:$0xff]   ;;  %v8364_v20 = vld [vmem:[%s13921_s21 + $0x18] sm:$0xff]  }
   0xa   :  { %3985 = vmatprep.subr.bf16.mxu0 %v11003_v4  ;;  %10681 = vset.pattern.permute.xlu1 %v11003_v4  ;;  %v8362_v17 = vld [vmem:[%s13921_s21 + $0x10] sm:$0xf]  ;;  %101 = vst [vmem:[#allocation7] sm:$0xff] %v86_v15   ;;  %v140_v18 = vunpack.c.l.bf16 %v8360_v16  ;;  %v8879_v19 = vunpack.c.h.bf16 %v8360_v16  ;;  %v8366_v21 = vld [vmem:[%s13921_s21 + $0x20] sm:$0xff]   ;;  %v248_v23 = vunpack.c.l.bf16 %v8364_v20  ;;  %v275_v24 = vunpack.c.h.bf16 %v8364_v20  ;;  %v8368_v26 = vld [vmem:[%s13921_s21 + $0x28] sm:$0xf] }
   0xb   :  { %8891 = vst [vmem:[#allocation7 + $0x28] sm:$0xff] %v11137_v3   ;;  %8901 = vst [vmem:[#allocation7 + $0x38] sm:$0xff] %v11137_v3   ;;  %10440 = vmatprep.subr.bf16.mxu1 %v13929_v6  ;;  %10680 = vset.pattern.permute.xlu0 %v11003_v4  ;;  %v148_v9 = vand.u32 127, %v147_v7  ;;  %v11202_v10 = vshrl.u32 %v147_v7, 7  ;;  %v302_v25 = vunpack.c.l.bf16 %v8366_v21  ;;  %v11261_v33 = vld [vmem:[%s13921_s21 + $0x30] sm:$0xff]   ;;  %v8373_v34 = vld [vmem:[%s13921_s21 + $0x3c] sm:$0xff]   ;;  %v8929_v39 = vunpack.c.h.bf16 %v8366_v21 }
   0xc   :  { %8906 = vst [vmem:[#allocation7 + $0x40] sm:$0xff] %v11137_v3   ;;  %8916 = vst [vmem:[#allocation7 + $0x50] sm:$0xff] %v11137_v3   ;;  %v563_v41 = vunpack.c.l.bf16 %v8373_v34  ;;  %v590_v42 = vunpack.c.h.bf16 %v8373_v34  ;;  %v11279_v43 = vld [vmem:[%s13921_s21 + $0x48] sm:$0xff]   ;;  %v8378_v45 = vld [vmem:[%s13921_s21 + $0x50] sm:$0xff]   ;;  %vm3981_vm2 = vcmask 1046528   ;;  %vm3857_vm3 = vcmask 637952  }
   0xd   :  { %8921 = vst [vmem:[#allocation7 + $0x58] sm:$0xff] %v11137_v3   ;;  %8946 = vst [vmem:[#allocation7 + $0x98] sm:$0xff] %v11137_v3   ;;  %v11208_v12 = vadd.s32 256, %v148_v9  ;;  %v11211_v13 = vadd.s32 16, %v11202_v10  ;;  %v8930_v44 = vpack.c.bf16 %v8929_v39, %v11130_v1  ;;  %v8380_v46 = vld [vmem:[%s13921_s21 + $0x58] sm:$0xf]  ;;  %v770_v54 = vunpack.c.l.bf16 %v8378_v45 }
   0xe   :  { %8951 = vst [vmem:[#allocation7 + $0xa0] sm:$0xff] %v11137_v3   ;;  %8961 = vst [vmem:[#allocation7 + $0xb0] sm:$0xff] %v11137_v3   ;;  %v8382_v47 = vld [vmem:[%s13921_s21 + $0x60] sm:$0xff]   ;;  %v8384_v50 = vld [vmem:[%s13921_s21 + $0x68] sm:$0xff]   ;;  %v8989_v55 = vunpack.c.h.bf16 %v8378_v45  ;;  %vm11005_vm4 = vmmov 0   ;;  %s13952_s3 = sld [smem:[#allocation20_spill]] }
   0xf   :  { %v10682_v2 = vld [vmem:[%s13950_s5] sm:$0xff]   ;;  %v10683_v5 = vld [vmem:[%s13950_s5 + $0x8] sm:$0xff]   ;;  %8966 = vst [vmem:[#allocation7 + $0xb8] sm:$0xff] %v11137_v3   ;;  %8976 = vst [vmem:[#allocation7 + $0xc8] sm:$0xff] %v11137_v3   ;;  %vm150_vm0 = vcmp.lt.s32.totalorder %v11208_v12, 334  ;;  %vm253_vm1 = vcmp.lt.s32.totalorder %v11211_v13, 18  ;;  %v878_v56 = vunpack.c.l.bf16 %v8382_v47  ;;  %v905_v57 = vunpack.c.h.bf16 %v8382_v47  ;;  %9854 = vmatprep.mubr.msk.bf16.mxu1 %vm11005_vm4, %v13929_v6 }
  0x10   :  { %3986 = vmatpush1.bf16.msra.mxu0 %v10682_v2  ;;  %8981 = vst [vmem:[#allocation7 + $0xd0] sm:$0xff] %v11137_v3   ;;  %9001 = vst [vmem:[#allocation7 + $0x100] sm:$0xff] %v11137_v3   ;;  %v10684_v8 = vld [vmem:[%s13950_s5 + $0x10] sm:$0xff]   ;;  %v10685_v11 = vld [vmem:[%s13950_s5 + $0x18] sm:$0xff]   ;;  %v151_v27 = vsel %vm150_vm0, %v140_v18, %v11130_v1  ;;  %v254_v30 = vsel %vm253_vm1, %v248_v23, %v11130_v1  ;;  %v281_v31 = vsel %vm253_vm1, %v275_v24, %v11130_v1  ;;  %s13953_s0 = sld [smem:[#allocation19_spill]]  ;;  %vm4865_vm5 = vcmask 1043456  }
  0x11   :  { %9011 = vst [vmem:[#allocation7 + $0x110] sm:$0xff] %v11137_v3   ;;  %9016 = vst [vmem:[#allocation7 + $0x118] sm:$0xff] %v11137_v3   ;;  %3987 = vmatprep.subr.bf16.mxu0 %v11003_v4  ;;  %v10686_v14 = vld [vmem:[%s13950_s5 + $0x20] sm:$0xff]   ;;  %v10687_v22 = vld [vmem:[%s13950_s5 + $0x28] sm:$0xff]   ;;  %v8880_v29 = vpack.c.bf16 %v8879_v19, %v151_v27  ;;  %v308_v32 = vsel %vm253_vm1, %v302_v25, %v11130_v1  ;;  %v261_v36 = vpack.c.bf16 %v13929_v6, %v254_v30  ;;  %s13954_s26 = sld [smem:[#allocation21_spill]]  ;;  %vm6217_vm6 = vcmask 523264  }
  0x12   :  { %9026 = vst [vmem:[#allocation7 + $0x128] sm:$0xff] %v11137_v3   ;;  %9031 = vst [vmem:[#allocation7 + $0x130] sm:$0xff] %v11137_v3   ;;  %v11247_v28 = vld [vmem:[%s13950_s5 + $0x80] sm:$0xff]   ;;  %v10688_v35 = vld [vmem:[%s13950_s5 + $0x30] sm:$0xff]   ;;  %v288_v37 = vpack.c.bf16 %v13929_v6, %v281_v31  ;;  %v313_v38 = vsel %vm150_vm0, %v308_v32, %v11130_v1  ;;  %v569_v48 = vsel %vm253_vm1, %v563_v41, %v11130_v1  ;;  %v932_v58 = vunpack.c.l.bf16 %v8384_v50  ;;  %s13964_s6 = sld [smem:[#allocation25_spill]]  ;;  %s13966_s29 = sld [smem:[#allocation22_spill]] }
  0x13   :  { %9056 = vst [vmem:[#allocation7 + $0x170] sm:$0xff] %v11137_v3   ;;  %9061 = vst [vmem:[#allocation7 + $0x178] sm:$0xff] %v11137_v3   ;;  %10445 = vmatpush3.bf16.msra.mxu1 %v11247_v28  ;;  %v8885_v40 = vpack.c.bf16 %v11130_v1, %v313_v38  ;;  %v596_v49 = vsel %vm253_vm1, %v590_v42, %v11130_v1  ;;  %v10689_v51 = vld [vmem:[%s13950_s5 + $0x38] sm:$0xff]   ;;  %v576_v52 = vpack.c.bf16 %v13929_v6, %v569_v48  ;;  %v10690_v0 = vld [vmem:[%s13950_s5 + $0x40] sm:$0xff]   ;;  %vm6590_vm7 = vcmask 588800   ;;  %s13967_s1 = sld [smem:[#allocation23_spill]] }
  0x14   :  { %9071 = vst [vmem:[#allocation7 + $0x188] sm:$0xff] %v11137_v3   ;;  %9076 = vst [vmem:[#allocation7 + $0x190] sm:$0xff] %v11137_v3   ;;  %3988 = vmatpush1.bf16.msra.mxu0 %v10683_v5  ;;  %10441 = vmatprep.subr.bf16.mxu1 %v13929_v6  ;;  %v603_v53 = vpack.c.bf16 %v13929_v6, %v596_v49  ;;  %v781_v59 = vsel %vm150_vm0, %v770_v54, %v11130_v1  ;;  %v9039_v9 = vunpack.c.h.bf16 %v8384_v50  ;;  %v8391_v16 = vld [vmem:[%s13921_s21 + $0x84] sm:$0xff]   ;;  %v10692_v25 = vld [vmem:[%s13950_s5 + $0x50] sm:$0xff]  }
  0x15   :  { %9086 = vst [vmem:[#allocation7 + $0x1a0] sm:$0xff] %v11137_v3   ;;  %9091 = vst [vmem:[#allocation7 + $0x1a8] sm:$0xff] %v11137_v3   ;;  %3989 = vmatprep.subr.bf16.mxu0 %v11003_v4  ;;  %v8990_v60 = vpack.c.bf16 %v8989_v55, %v781_v59  ;;  %v884_v61 = vsel %vm253_vm1, %v878_v56, %v11130_v1  ;;  %v911_v62 = vsel %vm253_vm1, %v905_v57, %v11130_v1  ;;  %v10691_v20 = vld [vmem:[%s13950_s5 + $0x48] sm:$0xff]   ;;  %v11363_v27 = vld [vmem:[%s13921_s21 + $0x78] sm:$0xff]  }
  0x16   :  { %9111 = vst [vmem:[#allocation7 + $0x1d8] sm:$0xff] %v11137_v3   ;;  %9121 = vst [vmem:[#allocation7 + $0x1e8] sm:$0xff] %v11137_v3   ;;  %v938_v63 = vsel %vm253_vm1, %v932_v58, %v11130_v1  ;;  %v891_v5 = vpack.c.bf16 %v13929_v6, %v884_v61  ;;  %v918_v7 = vpack.c.bf16 %v13929_v6, %v911_v62  ;;  %v1193_v18 = vunpack.c.l.bf16 %v8391_v16  ;;  %v10695_v30 = vld [vmem:[%s13950_s5 + $0x68] sm:$0xff]   ;;  %v10696_v31 = vld [vmem:[%s13950_s5 + $0x70] sm:$0xff]  }
  0x17   :  { %9126 = vst [vmem:[#allocation7 + $0x1f0] sm:$0xff] %v11137_v3   ;;  %9136 = vst [vmem:[#allocation7 + $0x200] sm:$0xff] %v11137_v3   ;;  %v9040_v15 = vpack.c.bf16 %v9039_v9, %v11130_v1  ;;  %v1220_v19 = vunpack.c.h.bf16 %v8391_v16  ;;  %v10697_v32 = vld [vmem:[%s13950_s5 + $0x78] sm:$0xff]   ;;  %v8398_v42 = vld [vmem:[%s13921_s21 + $0xa0] sm:$0xf] }
  0x18   :  { %9141 = vst [vmem:[#allocation7 + $0x208] sm:$0xff] %v11137_v3   ;;  %9166 = vst [vmem:[#allocation7 + $0x248] sm:$0xff] %v11137_v3   ;;  %3990 = vmatpush1.bf16.msra.mxu0 %v10684_v8  ;;  %v943_v8 = vsel %vm150_vm0, %v938_v63, %v11130_v1  ;;  %v1199_v21 = vsel %vm253_vm1, %v1193_v18, %v11130_v1  ;;  %v2925_v45 = vld [vmem:[#allocation7 + $0x54] sm:$0xff]  ;;  %v8400_v47 = vld [vmem:[%s13921_s21 + $0xa8] sm:$0xff]  }
  0x19   :  { %9171 = vst [vmem:[#allocation7 + $0x250] sm:$0xff] %v11137_v3   ;;  %9181 = vst [vmem:[#allocation7 + $0x260] sm:$0xff] %v11137_v3   ;;  %3991 = vmatprep.subr.bf16.mxu0 %v11003_v4  ;;  %v1206_v23 = vpack.c.bf16 %v13929_v6, %v1199_v21  ;;  %v1508_v49 = vunpack.c.l.bf16 %v8400_v47  ;;  %v1535_v50 = vunpack.c.h.bf16 %v8400_v47  ;;  %v8450_v59 = vcombine.high %v11137_v3, %v2925_v45  ;;  %v8409_v16 = vld [vmem:[%s13921_s21 + $0xcc] sm:$0xff]  }
  0x1a   :  { %9186 = vst [vmem:[#allocation7 + $0x268] sm:$0xff] %v11137_v3   ;;  %9196 = vst [vmem:[#allocation7 + $0x278] sm:$0xff] %v11137_v3   ;;  %v8449_v61 = vcombine.low %v11137_v3, %v2925_v45  ;;  %v1823_v18 = vunpack.c.l.bf16 %v8409_v16  ;;  %v11480_v45 = vld [vmem:[%s13921_s21 + $0xd8] sm:$0xff]   ;;  %v8418_v47 = vld [vmem:[%s13921_s21 + $0xf0] sm:$0xff]  }
  0x1b   :  { %9201 = vst [vmem:[#allocation7 + $0x280] sm:$0xff] %v11137_v3   ;;  %9221 = vst [vmem:[#allocation7 + $0x2b0] sm:$0xff] %v11137_v3   ;;  %v10758_v12 = vld [vmem:[#allocation7 + $0x170] ss:$12 sps:$4 sm:$0xff]  }
  0x1c   :  { %9231 = vst [vmem:[#allocation7 + $0x2c0] sm:$0xff] %v11137_v3   ;;  %9236 = vst [vmem:[#allocation7 + $0x2c8] sm:$0xff] %v11137_v3   ;;  %3992 = vmatpush1.bf16.msra.mxu0 %v10685_v11  ;;  %v8995_v11 = vpack.c.bf16 %v11130_v1, %v943_v8 }
  0x1d   :  { %9246 = vst [vmem:[#allocation7 + $0x2d8] sm:$0xff] %v11137_v3   ;;  %9251 = vst [vmem:[#allocation7 + $0x2e0] sm:$0xff] %v11137_v3   ;;  %3993 = vmatprep.subr.bf16.mxu0 %v11003_v4 }
  0x1e   :  { %9276 = vst [vmem:[#allocation7 + $0x320] sm:$0xff] %v11137_v3   ;;  %9281 = vst [vmem:[#allocation7 + $0x328] sm:$0xff] %v11137_v3  }
  0x1f   :  { %9291 = vst [vmem:[#allocation7 + $0x338] sm:$0xff] %v11137_v3   ;;  %9296 = vst [vmem:[#allocation7 + $0x340] sm:$0xff] %v11137_v3  }
  0x20   :  { %9306 = vst [vmem:[#allocation7 + $0x350] sm:$0xff] %v11137_v3   ;;  %9311 = vst [vmem:[#allocation7 + $0x358] sm:$0xff] %v11137_v3   ;;  %3994 = vmatpush1.bf16.msra.mxu0 %v10686_v14  ;;  %v8386_v14 = vld [vmem:[%s13921_s21 + $0x70] sm:$0xf] }
  0x21   :  { %9331 = vst [vmem:[#allocation7 + $0x388] sm:$0xff] %v11137_v3   ;;  %9341 = vst [vmem:[#allocation7 + $0x398] sm:$0xff] %v11137_v3   ;;  %3995 = vmatprep.subr.bf16.mxu0 %v11003_v4 }
  0x22   :  { %9346 = vst [vmem:[#allocation7 + $0x3a0] sm:$0xff] %v11137_v3   ;;  %9351 = vst [vmem:[#allocation7 + $0x3a8] sm:$0xff] %v11137_v3  }
  0x23   :  { %9356 = vst [vmem:[#allocation7 + $0x3b0] sm:$0xff] %v11137_v3   ;;  %9361 = vst [vmem:[#allocation7 + $0x3b8] sm:$0xff] %v11137_v3  }
  0x24   :  { %9366 = vst [vmem:[#allocation7 + $0x3c0] sm:$0xff] %v11137_v3   ;;  %13951 = vst [vmem:[#allocation8_spill] sm:$0xff] %v11202_v10  ;;  %3996 = vmatpush1.bf16.msra.mxu0 %v10687_v22  ;;  %v1226_v22 = vsel %vm253_vm1, %v1220_v19, %v11130_v1  ;;  %v1850_v19 = vunpack.c.h.bf16 %v8409_v16 }
  0x25   :  { %209 = vst [vmem:[#allocation7 + $0x10] sm:$0xf] %v8362_v17  ;;  %443 = vst [vmem:[#allocation7 + $0x70] sm:$0xf] %v8368_v26  ;;  %3997 = vmatprep.subr.bf16.mxu0 %v11003_v4  ;;  %v10710_v17 = vld [vmem:[%s13950_s5 + $0x88] sm:$0xff]   ;;  %v1233_v24 = vpack.c.bf16 %v13929_v6, %v1226_v22  ;;  %v10693_v26 = vld [vmem:[%s13950_s5 + $0x58] sm:$0xff]  }
  0x26   :  { %8881 = vst [vmem:[#allocation7 + $0x8] sm:$0xff] %v8880_v29   ;;  %263 = vst [vmem:[#allocation7 + $0x18] sm:$0xf] %v261_v36  ;;  %10446 = vmatpush3.bf16.msra.mxu1 %v10710_v17  ;;  %v10694_v29 = vld [vmem:[%s13950_s5 + $0x60] sm:$0xff]   ;;  %v8396_v36 = vld [vmem:[%s13921_s21 + $0x98] sm:$0xff]  }
  0x27   :  { %290 = vst [vmem:[#allocation7 + $0x1c] sm:$0xf] %v288_v37  ;;  %8886 = vst [vmem:[#allocation7 + $0x20] sm:$0xff] %v8885_v40   ;;  %10442 = vmatprep.subr.bf16.mxu1 %v13929_v6  ;;  %v2921_v37 = vld [vmem:[#allocation7 + $0x3c] sm:$0xff]  ;;  %v1400_v38 = vunpack.c.l.bf16 %v8396_v36  ;;  %v9099_v39 = vunpack.c.h.bf16 %v8396_v36 }
  0x28   :  { %839 = vst [vmem:[#allocation7 + $0xe8] sm:$0xf] %v8380_v46  ;;  %8931 = vst [vmem:[#allocation7 + $0x68] sm:$0xff] %v8930_v44   ;;  %3998 = vmatpush1.bf16.msra.mxu0 %v10688_v35  ;;  %v8447_v44 = vcombine.high %v11137_v3, %v2921_v37  ;;  %v11402_v46 = vld [vmem:[%s13921_s21 + $0x90] sm:$0xff]   ;;  %v8446_v55 = vcombine.low %v11137_v3, %v2921_v37  ;;  %v8414_v37 = vld [vmem:[%s13921_s21 + $0xe0] sm:$0xff]  }
  0x29   :  { %3999 = vmatprep.subr.bf16.mxu0 %v11003_v4  ;;  %578 = vst [vmem:[#allocation7 + $0x84] sm:$0xf] %v576_v52  ;;  %605 = vst [vmem:[#allocation7 + $0x88] sm:$0xf] %v603_v53  ;;  %v1514_v52 = vsel %vm253_vm1, %v1508_v49, %v11130_v1  ;;  %v1541_v53 = vsel %vm253_vm1, %v1535_v50, %v11130_v1  ;;  %v2138_v49 = vunpack.c.l.bf16 %v8418_v47  ;;  %v2165_v50 = vunpack.c.h.bf16 %v8418_v47  ;;  %v10726_v47 = vld [vmem:[#allocation7 + $0x320] ss:$12 sps:$4 sm:$0xff]  }
  0x2a   :  { %8991 = vst [vmem:[#allocation7 + $0xe0] sm:$0xff] %v8990_v60   ;;  %893 = vst [vmem:[#allocation7 + $0xf0] sm:$0xf] %v891_v5  ;;  %v1521_v56 = vpack.c.bf16 %v13929_v6, %v1514_v52  ;;  %v1548_v57 = vpack.c.bf16 %v13929_v6, %v1541_v53  ;;  %v2937_v5 = vld [vmem:[#allocation7 + $0x9c] sm:$0xff] }
  0x2b   :  { %920 = vst [vmem:[#allocation7 + $0xf4] sm:$0xf] %v918_v7  ;;  %1073 = vst [vmem:[#allocation7 + $0x148] sm:$0xf] %v8386_v14  ;;  %v10716_v7 = vld [vmem:[%s13950_s5 + $0x90] sm:$0xff]   ;;  %v11438_v14 = vld [vmem:[#allocation7 + $0x28] sm:$0xff]  ;;  %v2144_v53 = vsel %vm253_vm1, %v2138_v49, %v11130_v1 }
  0x2c   :  { %v10700_v2 = vld [vmem:[#allocation7 + $0x4] ss:$12 sps:$4 sm:$0xff]   ;;  %4000 = vmatpush1.bf16.msra.mxu0 %v10689_v51  ;;  %8996 = vst [vmem:[#allocation7 + $0xf8] sm:$0xff] %v8995_v11   ;;  %9041 = vst [vmem:[#allocation7 + $0x140] sm:$0xff] %v9040_v15   ;;  %10447 = vmatpush3.bf16.msra.mxu1 %v10716_v7  ;;  %v8404_v11 = vld [vmem:[%s13921_s21 + $0xb8] sm:$0xf]  ;;  %v8459_v15 = vcombine.high %v11438_v14, %v2937_v5 }
  0x2d   :  { %4001 = vmatprep.subr.bf16.mxu0 %v11003_v4  ;;  %4017 = vmatprep.mubr.bf16.mxu0 %v10700_v2  ;;  %1208 = vst [vmem:[#allocation7 + $0x15c] sm:$0xf] %v1206_v23  ;;  %1235 = vst [vmem:[#allocation7 + $0x160] sm:$0xf] %v1233_v24  ;;  %v10698_v34 = vld [vmem:[#allocation7] ss:$12 sps:$4 sm:$0xff]   ;;  %v8458_v23 = vcombine.low %v11438_v14, %v2937_v5 }
  0x2e   :  { %v10701_v35 = vld [vmem:[#allocation7 + $0x1c] ss:$12 sps:$4 sm:$0xff]   ;;  %v10703_v40 = vld [vmem:[#allocation7 + $0x18] ss:$12 sps:$4 sm:$0xff]   ;;  %1469 = vst [vmem:[#allocation7 + $0x1c0] sm:$0xf] %v8398_v42  ;;  %10443 = vmatprep.subr.bf16.mxu1 %v13929_v6 }
  0x2f   :  { %1523 = vst [vmem:[#allocation7 + $0x1c8] sm:$0xf] %v1521_v56  ;;  %1550 = vst [vmem:[#allocation7 + $0x1cc] sm:$0xf] %v1548_v57  ;;  %v2929_v60 = vld [vmem:[#allocation7 + $0x6c] sm:$0xff]  ;;  %v2151_v57 = vpack.c.bf16 %v13929_v6, %v2144_v53 }
  0x30   :  { %4002 = vmatpush1.bf16.msra.mxu0 %v10690_v0  ;;  %v8453_v62 = vcombine.high %v11137_v3, %v2929_v60  ;;  %v2933_v63 = vld [vmem:[#allocation7 + $0x84] sm:$0xff]  ;;  %v8452_v0 = vcombine.low %v11137_v3, %v2929_v60  ;;  %1703 = vst [vmem:[#allocation7 + $0x220] sm:$0xf] %v8404_v11 }
  0x31   :  { %4003 = vmatprep.subr.bf16.mxu0 %v11003_v4  ;;  %v8456_v2 = vcombine.high %v11261_v33, %v2933_v63  ;;  %v8455_v3 = vcombine.low %v11261_v33, %v2933_v63  ;;  %v1829_v33 = vsel %vm253_vm1, %v1823_v18, %v11130_v1  ;;  %2153 = vst [vmem:[#allocation7 + $0x2a0] sm:$0xf] %v2151_v57 }
  0x32   :  { %v1836_v21 = vpack.c.bf16 %v13929_v6, %v1829_v33  ;;  %v10707_v36 = vld [vmem:[#allocation7 + $0xf4] ss:$12 sps:$4 sm:$0xff]   ;;  %v2977_v33 = vld [vmem:[#allocation7 + $0x18c] sm:$0xff] }
  0x33   :  { %v10709_v42 = vld [vmem:[#allocation7 + $0xf0] ss:$12 sps:$4 sm:$0xff]  }
  0x34   :  { %4004 = vmatpush1.bf16.msra.mxu0 %v10691_v20  ;;  %v1856_v20 = vsel %vm253_vm1, %v1850_v19, %v11130_v1  ;;  %1838 = vst [vmem:[#allocation7 + $0x234] sm:$0xf] %v1836_v21  ;;  %v8426_v21 = vld [vmem:[%s13921_s21 + $0x110] ss:$12 sps:$4 sm:$0xff]  }
  0x35   :  { %4005 = vmatprep.subr.bf16.mxu0 %v11003_v4  ;;  %v1863_v22 = vpack.c.bf16 %v13929_v6, %v1856_v20 }
  0x36   :  { %v10713_v49 = vld [vmem:[#allocation7 + $0x1cc] ss:$12 sps:$4 sm:$0xff]  }
  0x37   :  { %1865 = vst [vmem:[#allocation7 + $0x238] sm:$0xf] %v1863_v22 }
  0x38   :  { %4006 = vmatpush1.bf16.msra.mxu0 %v10692_v25  ;;  %v11457_v25 = vld [vmem:[%s13921_s21 + $0xc0] sm:$0xff]  }
  0x39   :  { %4007 = vmatprep.subr.bf16.mxu0 %v11003_v4 }
  0x3c   :  { %4008 = vmatpush1.bf16.msra.mxu0 %v10693_v26  ;;  %v2945_v26 = vld [vmem:[#allocation7 + $0xcc] sm:$0xff] }
  0x3d   :  { %4009 = vmatprep.subr.bf16.mxu0 %v11003_v4 }
  0x40   :  { %4010 = vmatpush1.bf16.msra.mxu0 %v10694_v29 }
  0x41   :  { %4011 = vmatprep.subr.bf16.mxu0 %v11003_v4 }
  0x44   :  { %4012 = vmatpush1.bf16.msra.mxu0 %v10695_v30  ;;  %v8465_v30 = vcombine.high %v11438_v14, %v2945_v26 }
  0x45   :  { %4013 = vmatprep.subr.bf16.mxu0 %v11003_v4 }
  0x48   :  { %4014 = vmatpush1.bf16.msra.mxu0 %v10696_v31  ;;  %v2949_v31 = vld [vmem:[#allocation7 + $0xe4] sm:$0xff] }
  0x49   :  { %4015 = vmatprep.subr.bf16.mxu0 %v11003_v4  ;;  %v1411_v4 = vsel %vm150_vm0, %v1400_v38, %v11130_v1  ;;  %v2030_v38 = vunpack.c.l.bf16 %v8414_v37 }
  0x4a   :  { %v9100_v41 = vpack.c.bf16 %v9099_v39, %v1411_v4  ;;  %v9209_v39 = vunpack.c.h.bf16 %v8414_v37  ;;  %v11547_v37 = vld [vmem:[%s13921_s21 + $0x108] sm:$0xff]  }
  0x4b   :  { %v2041_v4 = vsel %vm150_vm0, %v2030_v38, %v11130_v1  ;;  %v10724_v38 = vld [vmem:[%s13950_s5 + $0xa0] sm:$0x7f]  }
  0x4c   :  { %4016 = vmatpush1.bf16.msra.mxu0 %v10697_v32  ;;  %9101 = vst [vmem:[#allocation7 + $0x1b8] sm:$0xff] %v9100_v41   ;;  %v8464_v32 = vcombine.low %v11438_v14, %v2945_v26  ;;  %v9210_v41 = vpack.c.bf16 %v9209_v39, %v2041_v4  ;;  %v2981_v39 = vld [vmem:[#allocation7 + $0x1a4] sm:$0xff]  ;;  %v8488_v4 = vcombine.low %v11438_v14, %v2977_v33 }
  0x4d   :  { %9716 = vmatprep.subr.bf16.mxu0 %v13929_v6 }
  0x4e   :  { %9211 = vst [vmem:[#allocation7 + $0x290] sm:$0xff] %v9210_v41   ;;  %v8492_v41 = vcombine.high %v11438_v14, %v2981_v39 }
  0x4f   :  { %4018 = vmatmul.mubr.bf16.vlgmr.msra.gmra.mrb[0].mxu0 %v10698_v34  ;;  %v8468_v34 = vcombine.high %v11279_v43, %v2949_v31 }
  0x50   :  { %4025 = vmatprep.mubr.bf16.mxu0 %v10701_v35  ;;  %9717 = vmatpush3.bf16.msra.mxu0 %v11247_v28  ;;  %v8402_v28 = vld [vmem:[%s13921_s21 + $0xb0] sm:$0xff]   ;;  %v8467_v35 = vcombine.low %v11279_v43, %v2949_v31  ;;  %v8416_v43 = vld [vmem:[%s13921_s21 + $0xe8] sm:$0xf] }
  0x51   :  { %9718 = vmatprep.subr.bf16.mxu0 %v13929_v6  ;;  %v1562_v48 = vunpack.c.l.bf16 %v8402_v28  ;;  %v9149_v8 = vunpack.c.h.bf16 %v8402_v28  ;;  %2099 = vst [vmem:[#allocation7 + $0x298] sm:$0xf] %v8416_v43  ;;  %v8420_v28 = vld [vmem:[%s13921_s21 + $0xf8] sm:$0xff]  }
  0x53   :  { %v1568_v51 = vsel %vm253_vm1, %v1562_v48, %v11130_v1  ;;  %v9150_v9 = vpack.c.bf16 %v9149_v8, %v11130_v1  ;;  %v2192_v48 = vunpack.c.l.bf16 %v8420_v28  ;;  %v9259_v8 = vunpack.c.h.bf16 %v8420_v28  ;;  %v2985_v43 = vld [vmem:[#allocation7 + $0x1bc] sm:$0xff] }
  0x54   :  { %9719 = vmatpush3.bf16.msra.mxu0 %v10710_v17  ;;  %v1573_v54 = vsel %vm150_vm0, %v1568_v51, %v11130_v1  ;;  %v2941_v17 = vld [vmem:[#allocation7 + $0xb4] sm:$0xff]  ;;  %v2961_v51 = vld [vmem:[#allocation7 + $0x12c] sm:$0xff]  ;;  %v8495_v28 = vcombine.high %v11402_v46, %v2985_v43 }
  0x55   :  { %9720 = vmatprep.subr.bf16.mxu0 %v13929_v6  ;;  %v9105_v58 = vpack.c.bf16 %v11130_v1, %v1573_v54  ;;  %9151 = vst [vmem:[#allocation7 + $0x218] sm:$0xff] %v9150_v9   ;;  %v8462_v24 = vcombine.high %v11438_v14, %v2941_v17  ;;  %v8461_v29 = vcombine.low %v11438_v14, %v2941_v17  ;;  %v2973_v9 = vld [vmem:[#allocation7 + $0x174] sm:$0xff] }
  0x56   :  { %v2198_v52 = vsel %vm253_vm1, %v2192_v48, %v11130_v1  ;;  %v2171_v54 = vsel %vm253_vm1, %v2165_v50, %v11130_v1  ;;  %v8477_v60 = vcombine.high %v11438_v14, %v2961_v51  ;;  %v8486_v16 = vcombine.high %v11438_v14, %v2973_v9  ;;  %v8427_v17 = vld [vmem:[%s13921_s21 + $0x114] sm:$0xff]   ;;  %v8432_v50 = vld [vmem:[%s13921_s21 + $0x128] sm:$0xff]  }
  0x57   :  { %4026 = vmatmul.mubr.bf16.gmra.mrb[4].mxu0 %v10703_v40  ;;  %9106 = vst [vmem:[#allocation7 + $0x1d0] sm:$0xff] %v9105_v58   ;;  %v2957_v40 = vld [vmem:[#allocation7 + $0x114] sm:$0xff]  ;;  %v2178_v58 = vpack.c.bf16 %v13929_v6, %v2171_v54  ;;  %v2453_v18 = vunpack.c.l.bf16 %v8427_v17  ;;  %v2480_v19 = vunpack.c.h.bf16 %v8427_v17  ;;  %v8485_v26 = vcombine.low %v11438_v14, %v2973_v9  ;;  %v2993_v54 = vld [vmem:[#allocation7 + $0x1ec] sm:$0xff]  ;;  %v2997_v9 = vld [vmem:[#allocation7 + $0x204] sm:$0xff] }
  0x58   :  { %4033 = vmatprep.mubr.bf16.mxu0 %v8447_v44  ;;  %9721 = vmatpush3.bf16.msra.mxu0 %v10716_v7  ;;  %v8474_v44 = vcombine.high %v11438_v14, %v2957_v40  ;;  %v8473_v56 = vcombine.low %v11438_v14, %v2957_v40  ;;  %v3983_v40 = vsel %vm3981_vm2, %v10724_v38, 0  ;;  %v8494_v48 = vcombine.low %v11402_v46, %v2985_v43  ;;  %v10739_v38 = vld [vmem:[#allocation7 + $0x3b0] ss:$12 sps:$4 sm:$0xff]  }
  0x59   :  { %9722 = vmatprep.subr.bf16.mxu0 %v13929_v6  ;;  %2180 = vst [vmem:[#allocation7 + $0x2a4] sm:$0xf] %v2178_v58  ;;  %v2486_v20 = vsel %vm253_vm1, %v2480_v19, %v11130_v1  ;;  %v9319_v53 = vunpack.c.h.bf16 %v8432_v50  ;;  %v8434_v58 = vld [vmem:[%s13921_s21 + $0x130] sm:$0xf]  ;;  %v8500_v17 = vcombine.low %v11438_v14, %v2993_v54 }
  0x5a   :  { %2729 = vst [vmem:[#allocation7 + $0x370] sm:$0xf] %v8434_v58 }
  0x5e   :  { %v10715_v57 = vld [vmem:[#allocation7 + $0x1c8] ss:$12 sps:$4 sm:$0xff]  }
  0x5f   :  { %4034 = vmatmul.mubr.bf16.gmra.mrb[8].mxu0 %v8446_v55  ;;  %v2203_v55 = vsel %vm150_vm0, %v2198_v52, %v11130_v1  ;;  %v2660_v52 = vunpack.c.l.bf16 %v8432_v50 }
  0x60   :  { %4041 = vmatprep.mubr.bf16.mxu0 %v8450_v59  ;;  %v9215_v59 = vpack.c.bf16 %v11130_v1, %v2203_v55 }
  0x61   :  { %v2671_v55 = vsel %vm150_vm0, %v2660_v52, %v11130_v1 }
  0x62   :  { %9216 = vst [vmem:[#allocation7 + $0x2a8] sm:$0xff] %v9215_v59   ;;  %v9320_v46 = vpack.c.bf16 %v9319_v53, %v2671_v55  ;;  %v10719_v53 = vld [vmem:[#allocation7 + $0x2a4] ss:$12 sps:$4 sm:$0xff]  }
  0x64   :  { %9321 = vst [vmem:[#allocation7 + $0x368] sm:$0xff] %v9320_v46  }
  0x67   :  { %4042 = vmatmul.mubr.bf16.gmra.mrb[12].mxu0 %v8449_v61  ;;  %v2965_v61 = vld [vmem:[#allocation7 + $0x144] sm:$0xff] }
  0x68   :  { %4049 = vmatprep.mubr.bf16.mxu0 %v8453_v62  ;;  %v8476_v62 = vcombine.low %v11438_v14, %v2961_v51  ;;  %v8480_v63 = vcombine.high %v11438_v14, %v2965_v61  ;;  %v8479_v5 = vcombine.low %v11438_v14, %v2965_v61  ;;  %v10727_v51 = vld [vmem:[#allocation7 + $0x338] ss:$12 sps:$4 sm:$0xff]  }
  0x69   :  { %v10721_v46 = vld [vmem:[#allocation7 + $0x2a0] ss:$12 sps:$4 sm:$0xff]  }
  0x6f   :  { %4050 = vmatmul.mubr.bf16.gmra.mrb[16].mxu0 %v8452_v0  ;;  %v10722_v0 = vld [vmem:[%s13950_s5 + $0x98] sm:$0xff]   ;;  %s13965_s5 = sld [smem:[#allocation24_spill]] }
  0x70   :  { %4057 = vmatprep.mubr.bf16.mxu0 %v8456_v2  ;;  %v2969_v2 = vld [vmem:[#allocation7 + $0x15c] sm:$0xff]  ;;  %9723 = vmatpush3.bf16.msra.mxu0 %v10722_v0 }
  0x71   :  { %10448 = vmatpush3.bf16.msra.mxu1 %v10722_v0  ;;  %9724 = vmatprep.subr.bf16.mxu0 %v13929_v6  ;;  %v8483_v7 = vcombine.high %v11363_v27, %v2969_v2  ;;  %v8482_v11 = vcombine.low %v11363_v27, %v2969_v2  ;;  %v2459_v27 = vsel %vm253_vm1, %v2453_v18, %v11130_v1  ;;  %v10728_v0 = vld [vmem:[#allocation7 + $0x350] ss:$12 sps:$4 sm:$0xff]   ;;  %v11592_v2 = vld [vmem:[%s13921_s21 + $0x120] sm:$0xff]  }
  0x72   :  { %10444 = vmatprep.subr.bf16.mxu1 %v13929_v6  ;;  %v2466_v22 = vpack.c.bf16 %v13929_v6, %v2459_v27  ;;  %v8504_v27 = vcombine.high %v11438_v14, %v2997_v9 }
  0x74   :  { %2468 = vst [vmem:[#allocation7 + $0x30c] sm:$0xf] %v2466_v22  ;;  %9725 = vmatpush3.bf16.msra.mxu0 %v3983_v40  ;;  %v8503_v22 = vcombine.low %v11438_v14, %v2997_v9 }
  0x75   :  { %10449 = vmatpush3.bf16.msra.mxu1 %v3983_v40  ;;  %v3013_v40 = vld [vmem:[#allocation7 + $0x264] sm:$0xff] }
  0x76   :  { %9890 = vmatprep.subr.bf16.mxu1 %v13929_v6 }
  0x77   :  { %4058 = vmatmul.mubr.bf16.gmra.mrb[20].mxu0 %v8455_v3  ;;  %v9260_v3 = vpack.c.bf16 %v9259_v8, %v11130_v1 }
  0x78   :  { %4065 = vmatprep.mubr.bf16.mxu0 %v8459_v15  ;;  %v8422_v15 = vld [vmem:[%s13921_s21 + $0x100] sm:$0xf] }
  0x79   :  { %9261 = vst [vmem:[#allocation7 + $0x2f0] sm:$0xff] %v9260_v3   ;;  %2333 = vst [vmem:[#allocation7 + $0x2f8] sm:$0xf] %v8422_v15 }
  0x7f   :  { %4066 = vmatmul.mubr.bf16.gmra.mrb[24].mxu0 %v8458_v23  ;;  %v2493_v23 = vpack.c.bf16 %v13929_v6, %v2486_v20 }
  0x80   :  { %4073 = vmatprep.mubr.bf16.mxu0 %v8462_v24  ;;  %v2507_v24 = vunpack.c.h.bf16 %v8426_v21 }
  0x81   :  { %2495 = vst [vmem:[#allocation7 + $0x310] sm:$0xf] %v2493_v23 }
  0x82   :  { %v2513_v31 = vsel %vm253_vm1, %v2507_v24, %v11130_v1 }
  0x87   :  { %4074 = vmatmul.mubr.bf16.gmra.mrb[28].mxu0 %v8461_v29  ;;  %v2426_v29 = vunpack.c.l.bf16 %v8426_v21  ;;  %v3001_v21 = vld [vmem:[#allocation7 + $0x21c] sm:$0xff] }
  0x88   :  { %4081 = vmatprep.mubr.bf16.mxu0 %v8465_v30  ;;  %v8489_v30 = vcombine.high %v11438_v14, %v2977_v33  ;;  %v8507_v23 = vcombine.high %v11438_v14, %v3001_v21 }
  0x8f   :  { %4082 = vmatmul.mubr.bf16.gmra.mrb[32].mxu0 %v8464_v32  ;;  %v2437_v32 = vsel %vm150_vm0, %v2426_v29, %v11130_v1  ;;  %v8506_v29 = vcombine.low %v11438_v14, %v3001_v21  ;;  %v3049_v21 = vld [vmem:[#allocation7 + $0x33c] sm:$0xff] }
  0x90   :  { %4089 = vmatprep.mubr.bf16.mxu0 %v8468_v34  ;;  %v2518_v34 = vsel %vm150_vm0, %v2513_v31, %v11130_v1  ;;  %v10735_v31 = vld [vmem:[#allocation7 + $0x398] ss:$12 sps:$4 sm:$0xff]  }
  0x97   :  { %4090 = vmatmul.mubr.bf16.gmra.mrb[36].mxu0 %v8467_v35  ;;  %v2439_v35 = vpack.c.bf16 %v13929_v6, %v2437_v32  ;;  %v3009_v32 = vld [vmem:[#allocation7 + $0x24c] sm:$0xff] }
  0x98   :  { %4097 = vmatprep.mubr.bf16.mxu0 %v10707_v36  ;;  %v2520_v36 = vpack.c.bf16 %v13929_v6, %v2518_v34 }
  0x99   :  { %2441 = vst [vmem:[#allocation7 + $0x308] sm:$0xf] %v2439_v35  ;;  %v8513_v35 = vcombine.high %v11438_v14, %v3009_v32 }
  0x9a   :  { %2522 = vst [vmem:[#allocation7 + $0x314] sm:$0xf] %v2520_v36  ;;  %v2907_v36 = vpack.c.bf16 %v13929_v6, %v11130_v1 }
  0x9c   :  { %2909 = vst [vmem:[#allocation7 + $0x3c8] sm:$0xf] %v2907_v36 }
  0x9f   :  { %4098 = vmatmul.mubr.bf16.gmra.mrb[40].mxu0 %v10709_v42 }
  0xa0   :  { %4105 = vmatprep.mubr.bf16.mxu0 %v8474_v44  ;;  %v8491_v44 = vcombine.low %v11438_v14, %v2981_v39  ;;  %v8363_v39 = vld [vmem:[%s13921_s21 + $0x14] ss:$24 sps:$4 sm:$0xff]  }
  0xa1   :  { %v10725_v42 = vld [vmem:[#allocation7 + $0x308] ss:$12 sps:$4 sm:$0xff]   ;;  %v455_v55 = vunpack.c.h.bf16 %v8363_v39 }
  0xa2   :  { %9855 = vmatmul.mubr.msk.bf16.vlgmr.msra.gmra.mrb[0].mxu1 %vm3857_vm3, %v10725_v42  ;;  %v8516_v42 = vcombine.high %v11438_v14, %v3013_v40 }
  0xa3   :  { %9858 = vmatprep.mubr.msk.bf16.mxu1 %vm11005_vm4, %v13929_v6 }
  0xa7   :  { %4106 = vmatmul.mubr.bf16.gmra.mrb[44].mxu0 %v8473_v56  ;;  %v8435_v56 = vld [vmem:[%s13921_s21 + $0x134] sm:$0xff]  }
  0xa8   :  { %4113 = vmatprep.mubr.bf16.mxu0 %v8477_v60  ;;  %v2741_v59 = vunpack.c.l.bf16 %v8435_v56  ;;  %v8501_v60 = vcombine.high %v11438_v14, %v2993_v54  ;;  %v3029_v54 = vld [vmem:[#allocation7 + $0x2c4] sm:$0xff] }
  0xaa   :  { %9859 = vmatmul.mubr.msk.bf16.gmra.mrb[4].mxu1 %vm3857_vm3, %v10726_v47  ;;  %v2752_v61 = vsel %vm150_vm0, %v2741_v59, %v11130_v1  ;;  %v8515_v47 = vcombine.low %v11438_v14, %v3013_v40 }
  0xab   :  { %9862 = vmatprep.mubr.msk.bf16.mxu1 %vm11005_vm4, %v13929_v6 }
  0xaf   :  { %4114 = vmatmul.mubr.bf16.gmra.mrb[48].mxu0 %v8476_v62  ;;  %v2754_v62 = vpack.c.bf16 %v13929_v6, %v2752_v61 }
  0xb0   :  { %4121 = vmatprep.mubr.bf16.mxu0 %v8480_v63  ;;  %v8437_v63 = vld [vmem:[%s13921_s21 + $0x13c] sm:$0xff]  }
  0xb1   :  { %2756 = vst [vmem:[#allocation7 + $0x374] sm:$0xf] %v2754_v62  ;;  %v2795_v8 = vunpack.c.l.bf16 %v8437_v63 }
  0xb2   :  { %9863 = vmatmul.mubr.msk.bf16.gmra.mrb[8].mxu1 %vm3857_vm3, %v10727_v51 }
  0xb3   :  { %9866 = vmatprep.mubr.msk.bf16.mxu1 %vm11005_vm4, %v13929_v6  ;;  %v2801_v15 = vsel %vm253_vm1, %v2795_v8, %v11130_v1 }
  0xb4   :  { %v2808_v19 = vpack.c.bf16 %v13929_v6, %v2801_v15 }
  0xb6   :  { %2810 = vst [vmem:[#allocation7 + $0x37c] sm:$0xf] %v2808_v19  ;;  %v3045_v19 = vld [vmem:[#allocation7 + $0x324] sm:$0xff] }
  0xb7   :  { %4122 = vmatmul.mubr.bf16.gmra.mrb[52].mxu0 %v8479_v5  ;;  %v2822_v5 = vunpack.c.h.bf16 %v8437_v63  ;;  %v8527_v63 = vcombine.low %v11438_v14, %v3029_v54 }
  0xb8   :  { %4129 = vmatprep.mubr.bf16.mxu0 %v8483_v7  ;;  %v2768_v7 = vunpack.c.h.bf16 %v8435_v56  ;;  %v10730_v20 = vld [vmem:[#allocation7 + $0x368] ss:$12 sps:$4 sm:$0xff]   ;;  %v466_v56 = vsel %vm150_vm0, %v455_v55, %v11130_v1 }
  0xb9   :  { %v2828_v3 = vsel %vm253_vm1, %v2822_v5, %v11130_v1  ;;  %v468_v58 = vpack.c.bf16 %v13929_v6, %v466_v56  ;;  %v8399_v56 = vld [vmem:[%s13921_s21 + $0xa4] ss:$24 sps:$4 sm:$0xff]  }
  0xba   :  { %9867 = vmatmul.mubr.msk.bf16.gmra.mrb[12].mxu1 %vm3857_vm3, %v10728_v0 }
  0xbb   :  { %9870 = vmatprep.mubr.msk.bf16.mxu1 %vm11005_vm4, %v13929_v6  ;;  %470 = vst [vmem:[#allocation7 + $0x74] sm:$0xf] %v468_v58  ;;  %v10744_v58 = vld [vmem:[#allocation7 + $0x20] ss:$12 sps:$4 sm:$0xff]  }
  0xbf   :  { %4130 = vmatmul.mubr.bf16.gmra.mrb[56].mxu0 %v8482_v11  ;;  %v2774_v11 = vsel %vm253_vm1, %v2768_v7, %v11130_v1 }
  0xc0   :  { %4137 = vmatprep.mubr.bf16.mxu0 %v8486_v16  ;;  %v2833_v16 = vsel %vm150_vm0, %v2828_v3, %v11130_v1  ;;  %v2781_v18 = vpack.c.bf16 %v13929_v6, %v2774_v11  ;;  %v3037_v3 = vld [vmem:[#allocation7 + $0x2f4] sm:$0xff] }
  0xc1   :  { %v9325_v33 = vpack.c.bf16 %v11130_v1, %v2833_v16  ;;  %v8534_v15 = vcombine.high %v11438_v14, %v3037_v3  ;;  %v3041_v16 = vld [vmem:[#allocation7 + $0x30c] sm:$0xff] }
  0xc2   :  { %2783 = vst [vmem:[#allocation7 + $0x378] sm:$0xf] %v2781_v18  ;;  %9871 = vmatmul.mubr.msk.bf16.gmra.mrb[16].mxu1 %vm3857_vm3, %v10730_v20  ;;  %v8537_v18 = vcombine.high %v11547_v37, %v3041_v16  ;;  %v8381_v20 = vld [vmem:[%s13921_s21 + $0x5c] ss:$24 sps:$4 sm:$0xff]  }
  0xc3   :  { %9326 = vst [vmem:[#allocation7 + $0x380] sm:$0xff] %v9325_v33   ;;  %9874 = vmatprep.mubr.msk.bf16.mxu1 %vm11005_vm4, %v13929_v6  ;;  %v8536_v33 = vcombine.low %v11547_v37, %v3041_v16  ;;  %v1085_v40 = vunpack.c.h.bf16 %v8381_v20 }
  0xc7   :  { %4138 = vmatmul.mubr.bf16.gmra.mrb[60].mxu0 %v8485_v26  ;;  %v3005_v26 = vld [vmem:[#allocation7 + $0x234] sm:$0xff] }
  0xc8   :  { %4145 = vmatprep.mubr.bf16.mxu0 %v8489_v30  ;;  %v8510_v30 = vcombine.high %v11457_v25, %v3005_v26  ;;  %v8509_v34 = vcombine.low %v11457_v25, %v3005_v26  ;;  %v8512_v25 = vcombine.low %v11438_v14, %v3009_v32  ;;  %v8543_v26 = vcombine.high %v11438_v14, %v3049_v21  ;;  %v3057_v32 = vld [vmem:[#allocation7 + $0x36c] sm:$0xff] }
  0xc9   :  { %v8548_v36 = vcombine.low %v11592_v2, %v3057_v32 }
  0xca   :  { %v10734_v24 = vld [vmem:[#allocation7 + $0x380] ss:$12 sps:$4 sm:$0xff]  }
  0xcb   :  { %9875 = vmatmul.mubr.msk.bf16.gmra.mrb[20].mxu1 %vm3857_vm3, %v10734_v24 }
  0xcc   :  { %9878 = vmatprep.mubr.msk.bf16.mxu1 %vm11005_vm4, %v13929_v6 }
  0xcf   :  { %4146 = vmatmul.mubr.bf16.gmra.mrb[64].mxu0 %v8488_v4  ;;  %v221_v4 = vunpack.c.l.bf16 %v8363_v39  ;;  %v3065_v39 = vld [vmem:[#allocation7 + $0x39c] sm:$0xff] }
  0xd0   :  { %4153 = vmatprep.mubr.bf16.mxu0 %v8492_v41 }
  0xd1   :  { %v232_v41 = vsel %vm150_vm0, %v221_v4, %v11130_v1  ;;  %v10733_v4 = vld [vmem:[#allocation7 + $0x378] ss:$12 sps:$4 sm:$0xff]  }
  0xd2   :  { %v234_v43 = vpack.c.bf16 %v13929_v6, %v232_v41  ;;  %v8555_v41 = vcombine.high %v11438_v14, %v3065_v39 }
  0xd3   :  { %9879 = vmatmul.mubr.msk.bf16.gmra.mrb[24].mxu1 %vm3857_vm3, %v10735_v31 }
  0xd4   :  { %9882 = vmatprep.mubr.msk.bf16.mxu1 %vm11005_vm4, %v13929_v6  ;;  %236 = vst [vmem:[#allocation7 + $0x14] sm:$0xf] %v234_v43 }
  0xd7   :  { %4154 = vmatmul.mubr.bf16.gmra.mrb[68].mxu0 %v8491_v44  ;;  %v10742_v44 = vld [vmem:[#allocation7 + $0x3c8] ss:$0 sps:$4 sm:$0xff]  }
  0xd8   :  { %4161 = vmatprep.mubr.bf16.mxu0 %v8495_v28  ;;  %v3017_v28 = vld [vmem:[#allocation7 + $0x27c] sm:$0xff] }
  0xd9   :  { %v8518_v50 = vcombine.low %v11438_v14, %v3017_v28 }
  0xdb   :  { %9883 = vmatmul.mubr.msk.bf16.gmra.mrb[28].mxu1 %vm3857_vm3, %v10739_v38  ;;  %v10731_v38 = vld [vmem:[#allocation7 + $0x37c] ss:$12 sps:$4 sm:$0xff]  }
  0xdc   :  { %9886 = vmatprep.mubr.msk.bf16.mxu1 %vm11005_vm4, %v13929_v6 }
  0xdf   :  { %4162 = vmatmul.mubr.bf16.gmra.mrb[72].mxu0 %v8494_v48  ;;  %v8519_v48 = vcombine.high %v11438_v14, %v3017_v28 }
  0xe0   :  { %4169 = vmatprep.mubr.bf16.mxu0 %v10713_v49  ;;  %v3021_v49 = vld [vmem:[#allocation7 + $0x294] sm:$0xff] }
  0xe1   :  { %v8522_v51 = vcombine.high %v11480_v45, %v3021_v49  ;;  %v8521_v52 = vcombine.low %v11480_v45, %v3021_v49  ;;  %v8372_v45 = vld [vmem:[%s13921_s21 + $0x38] ss:$12 sps:$4 sm:$0xff]  }
  0xe2   :  { %v617_v59 = vunpack.c.h.bf16 %v8372_v45  ;;  %v536_v61 = vunpack.c.l.bf16 %v8372_v45 }
  0xe3   :  { %9887 = vmatmul.mubr.msk.bf16.gmra.mrb[32].mxu1 %vm3857_vm3, %v10742_v44 }
  0xe4   :  { %9906 = vmatprep.mubr.msk.bf16.mxu1 %vm11005_vm4, %v13929_v6  ;;  %v623_v62 = vsel %vm253_vm1, %v617_v59, %v11130_v1  ;;  %v547_v0 = vsel %vm150_vm0, %v536_v61, %v11130_v1 }
  0xe5   :  { %v628_v5 = vsel %vm150_vm0, %v623_v62, %v11130_v1  ;;  %v549_v8 = vpack.c.bf16 %v13929_v6, %v547_v0 }
  0xe6   :  { %v630_v9 = vpack.c.bf16 %v13929_v6, %v628_v5  ;;  %v10746_v5 = vld [vmem:[#allocation7 + $0x50] ss:$12 sps:$4 sm:$0xff]  }
  0xe7   :  { %4170 = vmatmul.mubr.bf16.gmra.mrb[76].mxu0 %v10715_v57  ;;  %v8528_v57 = vcombine.high %v11438_v14, %v3029_v54  ;;  %551 = vst [vmem:[#allocation7 + $0x80] sm:$0xf] %v549_v8  ;;  %v10738_v54 = vld [vmem:[#allocation7 + $0x3a8] ss:$12 sps:$4 sm:$0xff]  }
  0xe8   :  { %4177 = vmatprep.mubr.bf16.mxu0 %v8501_v60  ;;  %v3033_v60 = vld [vmem:[#allocation7 + $0x2dc] sm:$0xff]  ;;  %632 = vst [vmem:[#allocation7 + $0x8c] sm:$0xf] %v630_v9 }
  0xe9   :  { %v8531_v7 = vcombine.high %v11438_v14, %v3033_v60  ;;  %v8530_v11 = vcombine.low %v11438_v14, %v3033_v60  ;;  %v10745_v60 = vld [vmem:[#allocation7 + $0x38] ss:$12 sps:$4 sm:$0xff]  }
  0xef   :  { %4178 = vmatmul.mubr.bf16.gmra.mrb[80].mxu0 %v8500_v17  ;;  %v8533_v17 = vcombine.low %v11438_v14, %v3037_v3 }
  0xf0   :  { %4185 = vmatprep.mubr.bf16.mxu0 %v8504_v27  ;;  %v8540_v27 = vcombine.high %v11438_v14, %v3045_v19 }
  0xf7   :  { %4186 = vmatmul.mubr.bf16.gmra.mrb[84].mxu0 %v8503_v22  ;;  %v851_v22 = vunpack.c.l.bf16 %v8381_v20 }
  0xf8   :  { %4193 = vmatprep.mubr.bf16.mxu0 %v8507_v23  ;;  %v8539_v23 = vcombine.low %v11438_v14, %v3045_v19  ;;  %v1715_v19 = vunpack.c.h.bf16 %v8399_v56 }
  0xf9   :  { %v862_v24 = vsel %vm150_vm0, %v851_v22, %v11130_v1 }
  0xfa   :  { %v864_v37 = vpack.c.bf16 %v13929_v6, %v862_v24  ;;  %v8408_v24 = vld [vmem:[%s13921_s21 + $0xc8] ss:$12 sps:$4 sm:$0xff]  }
  0xfc   :  { %866 = vst [vmem:[#allocation7 + $0xec] sm:$0xf] %v864_v37  ;;  %v1877_v37 = vunpack.c.h.bf16 %v8408_v24 }
  0xff   :  { %4194 = vmatmul.mubr.bf16.gmra.mrb[88].mxu0 %v8506_v29  ;;  %v3053_v29 = vld [vmem:[#allocation7 + $0x354] sm:$0xff] }
 0x100   :  { %4201 = vmatprep.mubr.bf16.mxu0 %v8510_v30  ;;  %v8542_v30 = vcombine.low %v11438_v14, %v3049_v21  ;;  %v8546_v31 = vcombine.high %v11438_v14, %v3053_v29 }
 0x107   :  { %4202 = vmatmul.mubr.bf16.gmra.mrb[92].mxu0 %v8509_v34  ;;  %v8545_v34 = vcombine.low %v11438_v14, %v3053_v29  ;;  %v1796_v29 = vunpack.c.l.bf16 %v8408_v24  ;;  %v10782_v24 = vld [vmem:[%s13952_s3 + $0x78] sm:$0xff]  }
 0x108   :  { %4209 = vmatprep.mubr.bf16.mxu0 %v8513_v35  ;;  %v8549_v35 = vcombine.high %v11592_v2, %v3057_v32  ;;  %v8390_v2 = vld [vmem:[%s13921_s21 + $0x80] ss:$12 sps:$4 sm:$0xff]  }
 0x109   :  { %v1247_v43 = vunpack.c.h.bf16 %v8390_v2  ;;  %v1166_v44 = vunpack.c.l.bf16 %v8390_v2  ;;  %v1807_v32 = vsel %vm150_vm0, %v1796_v29, %v11130_v1 }
 0x10b   :  { %v1253_v28 = vsel %vm253_vm1, %v1247_v43, %v11130_v1  ;;  %v10751_v43 = vld [vmem:[#allocation7 + $0xc8] ss:$12 sps:$4 sm:$0xff]  }
 0x10c   :  { %v1258_v49 = vsel %vm150_vm0, %v1253_v28, %v11130_v1 }
 0x10f   :  { %4210 = vmatmul.mubr.bf16.gmra.mrb[96].mxu0 %v8512_v25  ;;  %v1096_v25 = vsel %vm150_vm0, %v1085_v40, %v11130_v1 }
 0x110   :  { %4217 = vmatprep.mubr.bf16.mxu0 %v8516_v42  ;;  %v1098_v42 = vpack.c.bf16 %v13929_v6, %v1096_v25 }
 0x112   :  { %1100 = vst [vmem:[#allocation7 + $0x14c] sm:$0xf] %v1098_v42 }
 0x117   :  { %4218 = vmatmul.mubr.bf16.gmra.mrb[100].mxu0 %v8515_v47  ;;  %v8554_v47 = vcombine.low %v11438_v14, %v3065_v39 }
 0x118   :  { %4225 = vmatprep.mubr.bf16.mxu0 %v8519_v48  ;;  %v1177_v48 = vsel %vm150_vm0, %v1166_v44, %v11130_v1 }
 0x11f   :  { %4226 = vmatmul.mubr.bf16.gmra.mrb[104].mxu0 %v8518_v50  ;;  %v10736_v50 = vld [vmem:[#allocation7 + $0x3ac] ss:$12 sps:$4 sm:$0xff]  }
 0x120   :  { %4233 = vmatprep.mubr.bf16.mxu0 %v8522_v51  ;;  %v1179_v51 = vpack.c.bf16 %v13929_v6, %v1177_v48 }
 0x122   :  { %1181 = vst [vmem:[#allocation7 + $0x158] sm:$0xf] %v1179_v51 }
 0x127   :  { %4234 = vmatmul.mubr.bf16.gmra.mrb[108].mxu0 %v8521_v52  ;;  %v1260_v52 = vpack.c.bf16 %v13929_v6, %v1258_v49  ;;  %v10752_v49 = vld [vmem:[#allocation7 + $0xe0] ss:$12 sps:$4 sm:$0xff]  }
 0x128   :  { %4241 = vmatprep.mubr.bf16.mxu0 %v10719_v53  ;;  %v3071_v53 = vld [vmem:[#allocation7 + $0x3c0] sm:$0xff] }
 0x129   :  { %1262 = vst [vmem:[#allocation7 + $0x164] sm:$0xf] %v1260_v52  ;;  %v8561_v14 = vcombine.high %v3071_v53, %v3071_v53  ;;  %v8560_v55 = vcombine.low %v3071_v53, %v3071_v53 }
 0x12f   :  { %4242 = vmatmul.mubr.bf16.gmra.mrb[112].mxu0 %v10721_v46  ;;  %v10743_v46 = vld [vmem:[#allocation7 + $0x8] ss:$12 sps:$4 sm:$0xff]  }
 0x130   :  { %4249 = vmatprep.mubr.bf16.mxu0 %v8528_v57  ;;  %v1481_v57 = vunpack.c.l.bf16 %v8399_v56 }
 0x132   :  { %v1492_v45 = vsel %vm150_vm0, %v1481_v57, %v11130_v1 }
 0x133   :  { %v1494_v59 = vpack.c.bf16 %v13929_v6, %v1492_v45 }
 0x135   :  { %1496 = vst [vmem:[#allocation7 + $0x1c4] sm:$0xf] %v1494_v59 }
 0x137   :  { %4250 = vmatmul.mubr.bf16.gmra.mrb[116].mxu0 %v8527_v63 }
 0x138   :  { %4257 = vmatprep.mubr.bf16.mxu0 %v8531_v7 }
 0x13f   :  { %4258 = vmatmul.mubr.bf16.gmra.mrb[120].mxu0 %v8530_v11  ;;  %v10747_v11 = vld [vmem:[#allocation7 + $0x68] ss:$12 sps:$4 sm:$0xff]  }
 0x140   :  { %4265 = vmatprep.mubr.bf16.mxu0 %v8534_v15 }
 0x147   :  { %4266 = vmatmul.mubr.bf16.gmra.mrb[124].mxu0 %v8533_v17 }
 0x148   :  { %4273 = vmatprep.mubr.bf16.mxu0 %v8537_v18 }
 0x14f   :  { %4274 = vmatmul.mubr.bf16.gmra.mrb[128].mxu0 %v8536_v33  ;;  %v10748_v33 = vld [vmem:[#allocation7 + $0x80] ss:$12 sps:$4 sm:$0xff]  }
 0x150   :  { %4281 = vmatprep.mubr.bf16.mxu0 %v8540_v27  ;;  %v1726_v27 = vsel %vm150_vm0, %v1715_v19, %v11130_v1  ;;  %v10776_v19 = vld [vmem:[%s13952_s3 + $0x50] sm:$0xff]  }
 0x151   :  { %v1728_v20 = vpack.c.bf16 %v13929_v6, %v1726_v27  ;;  %v10780_v27 = vld [vmem:[%s13952_s3 + $0x68] sm:$0xff]  }
 0x153   :  { %1730 = vst [vmem:[#allocation7 + $0x224] sm:$0xf] %v1728_v20  ;;  %v10759_v20 = vld [vmem:[#allocation7 + $0x188] ss:$12 sps:$4 sm:$0xff]  }
 0x157   :  { %4282 = vmatmul.mubr.bf16.gmra.mrb[132].mxu0 %v8539_v23 }
 0x158   :  { %4289 = vmatprep.mubr.bf16.mxu0 %v8543_v26 }
 0x15f   :  { %4290 = vmatmul.mubr.bf16.gmra.mrb[136].mxu0 %v8542_v30  ;;  %v1883_v30 = vsel %vm253_vm1, %v1877_v37, %v11130_v1  ;;  %v11871_v37 = vld [vmem:[%s13953_s0] ss:$0 sm:$0xff] }
 0x160   :  { %4297 = vmatprep.mubr.bf16.mxu0 %v8546_v31  ;;  %v10749_v31 = vld [vmem:[#allocation7 + $0x98] ss:$12 sps:$4 sm:$0xff]  }
 0x167   :  { %4298 = vmatmul.mubr.bf16.gmra.mrb[140].mxu0 %v8545_v34  ;;  %v1888_v34 = vsel %vm150_vm0, %v1883_v30, %v11130_v1 }
 0x168   :  { %4305 = vmatprep.mubr.bf16.mxu0 %v8549_v35  ;;  %v1809_v35 = vpack.c.bf16 %v13929_v6, %v1807_v32  ;;  %v10761_v32 = vld [vmem:[#allocation7 + $0x1b8] ss:$12 sps:$4 sm:$0xff]  }
 0x16a   :  { %1811 = vst [vmem:[#allocation7 + $0x230] sm:$0xf] %v1809_v35 }
 0x16f   :  { %4306 = vmatmul.mubr.bf16.gmra.mrb[144].mxu0 %v8548_v36  ;;  %v1890_v36 = vpack.c.bf16 %v13929_v6, %v1888_v34 }
 0x170   :  { %4313 = vmatprep.mubr.bf16.mxu0 %v10731_v38 }
 0x171   :  { %1892 = vst [vmem:[#allocation7 + $0x23c] sm:$0xf] %v1890_v36 }
 0x175   :  { %v11727_v61 = vpop.f32.mrb[0].mxu1 }
 0x176   :  { %v9856_v62 = vpop.f32.mrb[1].mxu1 }
 0x177   :  { %4314 = vmatmul.mubr.bf16.gmra.mrb[148].mxu0 %v10733_v4  ;;  %v11730_v63 = vpop.f32.mrb[2].mxu1  ;;  %v10750_v4 = vld [vmem:[#allocation7 + $0xb0] ss:$12 sps:$4 sm:$0xff]   ;;  %v10755_v62 = vld [vmem:[#allocation7 + $0x128] ss:$12 sps:$4 sm:$0xff]  }
 0x178   :  { %4321 = vmatprep.mubr.bf16.mxu0 %v8555_v41  ;;  %v9857_v0 = vpop.f32.mrb[3].mxu1 }
 0x179   :  { %v10772_v0 = vld [vmem:[%s13952_s3 + $0x40] sm:$0xff]  }
 0x17a   :  { %9891 = vmatpush3.bf16.msra.mxu1 %v10772_v0 }
 0x17b   :  { %9892 = vmatprep.subr.bf16.mxu1 %v13929_v6 }
 0x17d   :  { %v11734_v7 = vpop.f32.mrb[4].mxu1 }
 0x17e   :  { %v9860_v8 = vpop.f32.mrb[5].mxu1 }
 0x17f   :  { %4322 = vmatmul.mubr.bf16.gmra.mrb[152].mxu0 %v8554_v47  ;;  %v11737_v9 = vpop.f32.mrb[6].mxu1  ;;  %v10774_v8 = vld [vmem:[%s13952_s3 + $0x48] sm:$0xff]  }
 0x180   :  { %4329 = vmatprep.mubr.bf16.mxu0 %v10736_v50  ;;  %v9861_v3 = vpop.f32.mrb[7].mxu1  ;;  %9893 = vmatpush3.bf16.msra.mxu1 %v10774_v8 }
 0x181   :  { %9894 = vmatprep.subr.bf16.mxu1 %v13929_v6 }
 0x184   :  { %9895 = vmatpush3.bf16.msra.mxu1 %v10776_v19 }
 0x185   :  { %v11741_v15 = vpop.f32.mrb[8].mxu1  ;;  %9896 = vmatprep.subr.bf16.mxu1 %v13929_v6 }
 0x186   :  { %v9864_v16 = vpop.f32.mrb[9].mxu1 }
 0x187   :  { %4330 = vmatmul.mubr.bf16.gmra.mrb[156].mxu0 %v10738_v54  ;;  %v11744_v17 = vpop.f32.mrb[10].mxu1  ;;  %v8417_v54 = vld [vmem:[%s13921_s21 + $0xec] ss:$24 sps:$4 sm:$0xff]  }
 0x188   :  { %4337 = vmatprep.mubr.bf16.mxu0 %v8561_v14  ;;  %v9865_v18 = vpop.f32.mrb[11].mxu1  ;;  %v2111_v14 = vunpack.c.l.bf16 %v8417_v54  ;;  %v2345_v3 = vunpack.c.h.bf16 %v8417_v54 }
 0x18a   :  { %v2356_v16 = vsel %vm150_vm0, %v2345_v3, %v11130_v1 }
 0x18b   :  { %v2358_v18 = vpack.c.bf16 %v13929_v6, %v2356_v16 }
 0x18d   :  { %v11752_v21 = vpop.f32.mrb[12].mxu1  ;;  %2360 = vst [vmem:[#allocation7 + $0x2fc] sm:$0xf] %v2358_v18 }
 0x18e   :  { %v9868_v22 = vpop.f32.mrb[13].mxu1 }
 0x18f   :  { %4338 = vmatmul.mubr.bf16.gmra.mrb[160].mxu0 %v8560_v55  ;;  %v11755_v23 = vpop.f32.mrb[14].mxu1  ;;  %v10753_v55 = vld [vmem:[#allocation7 + $0xf8] ss:$12 sps:$4 sm:$0xff]   ;;  %v10781_v22 = vld [vmem:[%s13952_s3 + $0x70] sm:$0xff]  }
 0x190   :  { %9726 = vmatprep.mubr.msk.bf16.mxu0 %vm11005_vm4, %v13929_v6  ;;  %v9869_v26 = vpop.f32.mrb[15].mxu1 }
 0x191   :  { %v10760_v26 = vld [vmem:[#allocation7 + $0x1a0] ss:$12 sps:$4 sm:$0xff]  }
 0x195   :  { %v11773_v38 = vpop.f32.mrb[16].mxu1 }
 0x196   :  { %v9872_v39 = vpop.f32.mrb[17].mxu1 }
 0x197   :  { %9727 = vmatmul.mubr.msk.bf16.vlgmr.msra.gmra.mrb[0].mxu0 %vm3857_vm3, %v10743_v46  ;;  %v11776_v13 = vpop.f32.mrb[18].mxu1  ;;  %v2122_v46 = vsel %vm150_vm0, %v2111_v14, %v11130_v1  ;;  %v10777_v1 = vld [vmem:[%s13952_s3 + $0x58] sm:$0xff]  }
 0x198   :  { %9730 = vmatprep.mubr.msk.bf16.mxu0 %vm11005_vm4, %v13929_v6  ;;  %v9873_v40 = vpop.f32.mrb[19].mxu1  ;;  %v2124_v56 = vpack.c.bf16 %v13929_v6, %v2122_v46  ;;  %9897 = vmatpush3.bf16.msra.mxu1 %v10777_v1 }
 0x199   :  { %9898 = vmatprep.subr.bf16.mxu1 %v13929_v6 }
 0x19a   :  { %2126 = vst [vmem:[#allocation7 + $0x29c] sm:$0xf] %v2124_v56 }
 0x19e   :  { %v11780_v25 = vpop.f32.mrb[20].mxu1 }
 0x19f   :  { %9731 = vmatmul.mubr.msk.bf16.gmra.mrb[4].mxu0 %vm3857_vm3, %v10744_v58  ;;  %v9876_v41 = vpop.f32.mrb[21].mxu1 }
 0x1a0   :  { %9734 = vmatprep.mubr.msk.bf16.mxu0 %vm11005_vm4, %v13929_v6  ;;  %v11783_v42 = vpop.f32.mrb[22].mxu1 }
 0x1a1   :  { %v9877_v2 = vpop.f32.mrb[23].mxu1 }
 0x1a6   :  { %v11787_v44 = vpop.f32.mrb[24].mxu1 }
 0x1a7   :  { %9735 = vmatmul.mubr.msk.bf16.gmra.mrb[8].mxu0 %vm3857_vm3, %v10745_v60  ;;  %v9880_v28 = vpop.f32.mrb[25].mxu1  ;;  %v10754_v60 = vld [vmem:[#allocation7 + $0x110] ss:$12 sps:$4 sm:$0xff]  }
 0x1a8   :  { %9738 = vmatprep.mubr.msk.bf16.mxu0 %vm11005_vm4, %v13929_v6  ;;  %v11790_v47 = vpop.f32.mrb[26].mxu1 }
 0x1a9   :  { %v9881_v48 = vpop.f32.mrb[27].mxu1 }
 0x1ae   :  { %v11794_v50 = vpop.f32.mrb[28].mxu1 }
 0x1af   :  { %9739 = vmatmul.mubr.msk.bf16.gmra.mrb[12].mxu0 %vm3857_vm3, %v10746_v5  ;;  %v9884_v51 = vpop.f32.mrb[29].mxu1  ;;  %v10756_v5 = vld [vmem:[#allocation7 + $0x140] ss:$12 sps:$4 sm:$0xff]  }
 0x1b0   :  { %9742 = vmatprep.mubr.msk.bf16.mxu0 %vm11005_vm4, %v13929_v6  ;;  %v11797_v52 = vpop.f32.mrb[30].mxu1 }
 0x1b1   :  { %v9885_v53 = vpop.f32.mrb[31].mxu1 }
 0x1b6   :  { %v11808_v57 = vpop.f32.mrb[32].mxu1 }
 0x1b7   :  { %9743 = vmatmul.mubr.msk.bf16.gmra.mrb[16].mxu0 %vm3857_vm3, %v10747_v11  ;;  %v9888_v58 = vpop.f32.mrb[33].mxu1  ;;  %v10757_v11 = vld [vmem:[#allocation7 + $0x158] ss:$12 sps:$4 sm:$0xff]  }
 0x1b8   :  { %9746 = vmatprep.mubr.msk.bf16.mxu0 %vm11005_vm4, %v13929_v6  ;;  %v4702_v45 = vpop.f32.mrb[34].mxu1 }
 0x1b9   :  { %v9889_v59 = vpop.f32.mrb[35].mxu1 }
 0x1ba   :  { %v10763_v59 = vld [vmem:[#allocation7 + $0x1e8] ss:$12 sps:$4 sm:$0xff]  }
 0x1bf   :  { %9747 = vmatmul.mubr.msk.bf16.gmra.mrb[20].mxu0 %vm3857_vm3, %v10748_v33  ;;  %v10779_v33 = vld [vmem:[%s13952_s3 + $0x60] sm:$0xff]  }
 0x1c0   :  { %9750 = vmatprep.mubr.msk.bf16.mxu0 %vm11005_vm4, %v13929_v6  ;;  %9899 = vmatpush3.bf16.msra.mxu1 %v10779_v33 }
 0x1c1   :  { %9900 = vmatprep.subr.bf16.mxu1 %v13929_v6 }
 0x1c4   :  { %9901 = vmatpush3.bf16.msra.mxu1 %v10780_v27 }
 0x1c5   :  { %9902 = vmatprep.subr.bf16.mxu1 %v13929_v6 }
 0x1c7   :  { %9751 = vmatmul.mubr.msk.bf16.gmra.mrb[24].mxu0 %vm3857_vm3, %v10749_v31 }
 0x1c8   :  { %9754 = vmatprep.mubr.msk.bf16.mxu0 %vm11005_vm4, %v13929_v6  ;;  %9903 = vmatpush3.bf16.msra.mxu1 %v10781_v22 }
 0x1c9   :  { %9904 = vmatprep.subr.bf16.mxu1 %v13929_v6 }
 0x1cc   :  { %9905 = vmatpush3.bf16.msra.mxu1 %v10782_v24 }
 0x1cd   :  { %9926 = vmatprep.subr.bf16.mxu1 %v13929_v6 }
 0x1cf   :  { %9755 = vmatmul.mubr.msk.bf16.gmra.mrb[28].mxu0 %vm3857_vm3, %v10750_v4 }
 0x1d0   :  { %9758 = vmatprep.mubr.msk.bf16.mxu0 %vm11005_vm4, %v13929_v6 }
 0x1d7   :  { %9759 = vmatmul.mubr.msk.bf16.gmra.mrb[32].mxu0 %vm3857_vm3, %v10751_v43 }
 0x1d8   :  { %9762 = vmatprep.mubr.msk.bf16.mxu0 %vm11005_vm4, %v13929_v6 }
 0x1df   :  { %9763 = vmatmul.mubr.msk.bf16.gmra.mrb[36].mxu0 %vm3857_vm3, %v10752_v49  ;;  %v10762_v49 = vld [vmem:[#allocation7 + $0x1d0] ss:$12 sps:$4 sm:$0xff]  }
 0x1e0   :  { %9766 = vmatprep.mubr.msk.bf16.mxu0 %vm11005_vm4, %v13929_v6 }
 0x1e7   :  { %9767 = vmatmul.mubr.msk.bf16.gmra.mrb[40].mxu0 %vm3857_vm3, %v10753_v55 }
 0x1e8   :  { %9770 = vmatprep.mubr.msk.bf16.mxu0 %vm11005_vm4, %v13929_v6 }
 0x1ef   :  { %9771 = vmatmul.mubr.msk.bf16.gmra.mrb[44].mxu0 %vm3857_vm3, %v10754_v60 }
 0x1f0   :  { %9774 = vmatprep.mubr.msk.bf16.mxu0 %vm11005_vm4, %v13929_v6 }
 0x1f7   :  { %9775 = vmatmul.mubr.msk.bf16.gmra.mrb[48].mxu0 %vm3857_vm3, %v10755_v62 }
 0x1f8   :  { %9778 = vmatprep.mubr.msk.bf16.mxu0 %vm11005_vm4, %v13929_v6 }
 0x1ff   :  { %9779 = vmatmul.mubr.msk.bf16.gmra.mrb[52].mxu0 %vm3857_vm3, %v10756_v5 }
 0x200   :  { %9782 = vmatprep.mubr.msk.bf16.mxu0 %vm11005_vm4, %v13929_v6 }
 0x207   :  { %9783 = vmatmul.mubr.msk.bf16.gmra.mrb[56].mxu0 %vm3857_vm3, %v10757_v11 }
 0x208   :  { %9786 = vmatprep.mubr.msk.bf16.mxu0 %vm11005_vm4, %v13929_v6 }
 0x20f   :  { %9787 = vmatmul.mubr.msk.bf16.gmra.mrb[60].mxu0 %vm3857_vm3, %v10758_v12  ;;  %v10764_v12 = vld [vmem:[#allocation7 + $0x200] ss:$12 sps:$4 sm:$0xff]  }
 0x210   :  { %9790 = vmatprep.mubr.msk.bf16.mxu0 %vm11005_vm4, %v13929_v6 }
 0x217   :  { %9791 = vmatmul.mubr.msk.bf16.gmra.mrb[64].mxu0 %vm3857_vm3, %v10759_v20 }
 0x218   :  { %9794 = vmatprep.mubr.msk.bf16.mxu0 %vm11005_vm4, %v13929_v6 }
 0x21f   :  { %9795 = vmatmul.mubr.msk.bf16.gmra.mrb[68].mxu0 %vm3857_vm3, %v10760_v26 }
 0x220   :  { %9798 = vmatprep.mubr.msk.bf16.mxu0 %vm11005_vm4, %v13929_v6 }
 0x222   :  { %v4275_v29 = vpop.f32.mrb[128].mxu0 }
 0x223   :  { %v4276_v30 = vadd.f32 %v11871_v37, %v4275_v29  ;;  %v4277_v31 = vpop.f32.mrb[129].mxu0 }
 0x224   :  { %v4278_v34 = vpop.f32.mrb[130].mxu0 }
 0x225   :  { %v4279_v35 = vadd.f32 %v11871_v37, %v4278_v34  ;;  %v4636_v36 = vadd.f32 %v11727_v61, %v4276_v30  ;;  %v4280_v39 = vpop.f32.mrb[131].mxu0 }
 0x227   :  { %v4639_v40 = vadd.f32 %v11730_v63, %v4279_v35  ;;  %9799 = vmatmul.mubr.msk.bf16.gmra.mrb[72].mxu0 %vm3857_vm3, %v10761_v32  ;;  %v4769_v4 = vmax.f32 %v4636_v36, 0.0  ;;  %v10765_v35 = vld [vmem:[#allocation7 + $0x218] ss:$12 sps:$4 sm:$0xff]  }
 0x228   :  { %9802 = vmatprep.mubr.msk.bf16.mxu0 %vm11005_vm4, %v13929_v6 }
 0x229   :  { %v4770_v41 = vmax.f32 %v4639_v40, 0.0 }
 0x22a   :  { %v4283_v2 = vpop.f32.mrb[132].mxu0 }
 0x22b   :  { %v11882_v43 = vpack.c.bf16 %v4770_v41, %v4769_v4  ;;  %v4284_v28 = vadd.f32 %v11871_v37, %v4283_v2  ;;  %v4285_v48 = vpop.f32.mrb[133].mxu0 }
 0x22c   :  { %v4286_v51 = vpop.f32.mrb[134].mxu0 }
 0x22d   :  { %v4287_v61 = vadd.f32 %v11871_v37, %v4286_v51  ;;  %v4644_v53 = vadd.f32 %v11734_v7, %v4284_v28  ;;  %v4288_v63 = vpop.f32.mrb[135].mxu0  ;;  %v5911_v7 = vrot.slane %v11882_v43, 4  ;;  %v10827_v43 = vld [vmem:[%s13952_s3 + $0x1a0] sm:$0xff]  }
 0x22f   :  { %v4647_v54 = vadd.f32 %v11737_v9, %v4287_v61  ;;  %9803 = vmatmul.mubr.msk.bf16.gmra.mrb[76].mxu0 %vm3857_vm3, %v10762_v49  ;;  %v4771_v14 = vmax.f32 %v4644_v53, 0.0  ;;  %v10766_v53 = vld [vmem:[#allocation7 + $0x230] ss:$12 sps:$4 sm:$0xff]  }
 0x230   :  { %9806 = vmatprep.mubr.msk.bf16.mxu0 %vm11005_vm4, %v13929_v6 }
 0x231   :  { %v4772_v55 = vmax.f32 %v4647_v54, 0.0 }
 0x232   :  { %v4291_v46 = vpop.f32.mrb[136].mxu0 }
 0x233   :  { %v4819_v56 = vpack.c.bf16 %v4772_v55, %v4771_v14  ;;  %v4292_v58 = vadd.f32 %v11871_v37, %v4291_v46  ;;  %v4293_v45 = vpop.f32.mrb[137].mxu0 }
 0x234   :  { %v4294_v60 = vpop.f32.mrb[138].mxu0 }
 0x235   :  { %v4295_v62 = vadd.f32 %v11871_v37, %v4294_v60  ;;  %v4652_v9 = vadd.f32 %v11741_v15, %v4292_v58  ;;  %v4296_v0 = vpop.f32.mrb[139].mxu0  ;;  %v5913_v5 = vrot.slane %v4819_v56, 4  ;;  %v10767_v60 = vld [vmem:[#allocation7 + $0x248] ss:$12 sps:$4 sm:$0xff]  }
 0x237   :  { %v4655_v8 = vadd.f32 %v11744_v17, %v4295_v62  ;;  %9807 = vmatmul.mubr.msk.bf16.gmra.mrb[80].mxu0 %vm3857_vm3, %v10763_v59  ;;  %v11900_v3 = vsel %vm4865_vm5, %v5911_v7, %v5913_v5  ;;  %v4773_v11 = vmax.f32 %v4652_v9, 0.0 }
 0x238   :  { %9810 = vmatprep.mubr.msk.bf16.mxu0 %vm11005_vm4, %v13929_v6 }
 0x239   :  { %v4774_v16 = vmax.f32 %v4655_v8, 0.0 }
 0x23a   :  { %v4299_v18 = vpop.f32.mrb[140].mxu0 }
 0x23b   :  { %v4820_v19 = vpack.c.bf16 %v4774_v16, %v4773_v11  ;;  %v4300_v15 = vadd.f32 %v11871_v37, %v4299_v18  ;;  %v4301_v1 = vpop.f32.mrb[141].mxu0 }
 0x23c   :  { %v4302_v33 = vpop.f32.mrb[142].mxu0 }
 0x23d   :  { %v4303_v17 = vadd.f32 %v11871_v37, %v4302_v33  ;;  %v4660_v27 = vadd.f32 %v11752_v21, %v4300_v15  ;;  %v4304_v20 = vpop.f32.mrb[143].mxu0  ;;  %v5915_v22 = vrot.slane %v4820_v19, 4  ;;  %v10768_v15 = vld [vmem:[#allocation7 + $0x260] ss:$12 sps:$4 sm:$0xff]  }
 0x23f   :  { %v4663_v24 = vadd.f32 %v11755_v23, %v4303_v17  ;;  %9811 = vmatmul.mubr.msk.bf16.gmra.mrb[84].mxu0 %vm3857_vm3, %v10764_v12  ;;  %v11910_v26 = vsel %vm4865_vm5, %v5913_v5, %v5915_v22  ;;  %v4775_v29 = vmax.f32 %v4660_v27, 0.0 }
 0x240   :  { %9814 = vmatprep.mubr.msk.bf16.mxu0 %vm11005_vm4, %v13929_v6 }
 0x241   :  { %v4776_v30 = vmax.f32 %v4663_v24, 0.0 }
 0x242   :  { %v4307_v31 = vpop.f32.mrb[144].mxu0 }
 0x243   :  { %v11914_v32 = vpack.c.bf16 %v4776_v30, %v4775_v29  ;;  %v4308_v34 = vadd.f32 %v11871_v37, %v4307_v31  ;;  %v4309_v21 = vpop.f32.mrb[145].mxu0  ;;  %v10769_v30 = vld [vmem:[#allocation7 + $0x278] ss:$12 sps:$4 sm:$0xff]  }
 0x244   :  { %v4310_v36 = vpop.f32.mrb[146].mxu0 }
 0x245   :  { %v4311_v23 = vadd.f32 %v11871_v37, %v4310_v36  ;;  %v4668_v39 = vadd.f32 %v11773_v38, %v4308_v34  ;;  %v4312_v40 = vpop.f32.mrb[147].mxu0  ;;  %v5917_v4 = vrot.slane %v11914_v32, 4 }
 0x247   :  { %v4671_v41 = vadd.f32 %v11776_v13, %v4311_v23  ;;  %9815 = vmatmul.mubr.msk.bf16.gmra.mrb[88].mxu0 %vm3857_vm3, %v10765_v35  ;;  %v11925_v2 = vsel %vm4865_vm5, %v5915_v22, %v5917_v4  ;;  %v4777_v28 = vmax.f32 %v4668_v39, 0.0  ;;  %v10770_v23 = vld [vmem:[#allocation7 + $0x290] ss:$12 sps:$4 sm:$0xff]  }
 0x248   :  { %9818 = vmatprep.mubr.msk.bf16.mxu0 %vm11005_vm4, %v13929_v6 }
 0x249   :  { %v4778_v48 = vmax.f32 %v4671_v41, 0.0 }
 0x24a   :  { %v4315_v49 = vpop.f32.mrb[148].mxu0 }
 0x24b   :  { %v11929_v51 = vpack.c.bf16 %v4778_v48, %v4777_v28  ;;  %v4316_v38 = vadd.f32 %v11871_v37, %v4315_v49  ;;  %v4317_v61 = vpop.f32.mrb[149].mxu0 }
 0x24c   :  { %v4318_v13 = vpop.f32.mrb[150].mxu0 }
 0x24d   :  { %v4319_v63 = vadd.f32 %v11871_v37, %v4318_v13  ;;  %v4676_v54 = vadd.f32 %v11780_v25, %v4316_v38  ;;  %v4320_v14 = vpop.f32.mrb[151].mxu0 }
 0x24f   :  { %v4679_v55 = vadd.f32 %v11783_v42, %v4319_v63  ;;  %9819 = vmatmul.mubr.msk.bf16.gmra.mrb[92].mxu0 %vm3857_vm3, %v10766_v53  ;;  %v4779_v46 = vmax.f32 %v4676_v54, 0.0  ;;  %v10771_v53 = vld [vmem:[#allocation7 + $0x2a8] ss:$12 sps:$4 sm:$0xff]  }
 0x250   :  { %9822 = vmatprep.mubr.msk.bf16.mxu0 %vm11005_vm4, %v13929_v6 }
 0x251   :  { %v4780_v56 = vmax.f32 %v4679_v55, 0.0 }
 0x252   :  { %v4323_v58 = vpop.f32.mrb[152].mxu0 }
 0x253   :  { %v4324_v45 = vadd.f32 %v11871_v37, %v4323_v58  ;;  %v4325_v59 = vpop.f32.mrb[153].mxu0  ;;  %v11939_v62 = vpack.c.bf16 %v4780_v56, %v4779_v46 }
 0x254   :  { %v4326_v9 = vpop.f32.mrb[154].mxu0  ;;  %v10773_v59 = vld [vmem:[#allocation7 + $0x2c0] ss:$12 sps:$4 sm:$0xff]  }
 0x255   :  { %v4327_v25 = vadd.f32 %v11871_v37, %v4326_v9  ;;  %v4684_v0 = vadd.f32 %v11787_v44, %v4324_v45  ;;  %v4328_v42 = vpop.f32.mrb[155].mxu0 }
 0x257   :  { %v4687_v5 = vadd.f32 %v11790_v47, %v4327_v25  ;;  %9823 = vmatmul.mubr.msk.bf16.gmra.mrb[96].mxu0 %vm3857_vm3, %v10767_v60  ;;  %v4781_v8 = vmax.f32 %v4684_v0, 0.0 }
 0x258   :  { %9826 = vmatprep.mubr.msk.bf16.mxu0 %vm11005_vm4, %v13929_v6 }
 0x259   :  { %v4782_v11 = vmax.f32 %v4687_v5, 0.0 }
 0x25a   :  { %v4331_v16 = vpop.f32.mrb[156].mxu0 }
 0x25b   :  { %v4332_v18 = vadd.f32 %v11871_v37, %v4331_v16  ;;  %v4333_v19 = vpop.f32.mrb[157].mxu0  ;;  %v11948_v1 = vpack.c.bf16 %v4782_v11, %v4781_v8 }
 0x25c   :  { %v4334_v12 = vpop.f32.mrb[158].mxu0 }
 0x25d   :  { %v4335_v44 = vadd.f32 %v11871_v37, %v4334_v12  ;;  %v4692_v33 = vadd.f32 %v11794_v50, %v4332_v18  ;;  %v4336_v47 = vpop.f32.mrb[159].mxu0  ;;  %v10775_v18 = vld [vmem:[#allocation7 + $0x2d8] ss:$12 sps:$4 sm:$0xff]  }
 0x25f   :  { %v4695_v17 = vadd.f32 %v11797_v52, %v4335_v44  ;;  %9827 = vmatmul.mubr.msk.bf16.gmra.mrb[100].mxu0 %vm3857_vm3, %v10768_v15  ;;  %v4783_v27 = vmax.f32 %v4692_v33, 0.0 }
 0x260   :  { %9830 = vmatprep.mubr.msk.bf16.mxu0 %vm11005_vm4, %v13929_v6 }
 0x261   :  { %v4784_v20 = vmax.f32 %v4695_v17, 0.0 }
 0x262   :  { %v4339_v22 = vpop.f32.mrb[160].mxu0 }
 0x263   :  { %v4340_v24 = vadd.f32 %v11871_v37, %v4339_v22  ;;  %v4341_v29 = vpop.f32.mrb[161].mxu0  ;;  %v11957_v31 = vpack.c.bf16 %v4784_v20, %v4783_v27  ;;  %v10778_v22 = vld [vmem:[#allocation7 + $0x2f0] ss:$12 sps:$4 sm:$0xff]  }
 0x264   :  { %v4342_v34 = vpop.f32.mrb[162].mxu0 }
 0x265   :  { %v11960_v50 = vadd.f32 %v11808_v57, %v4340_v24  ;;  %v4343_v21 = vpop.f32.mrb[163].mxu0 }
 0x267   :  { %9831 = vmatmul.mubr.msk.bf16.gmra.mrb[104].mxu0 %vm3857_vm3, %v10769_v30 }
 0x268   :  { %9834 = vmatprep.mubr.msk.bf16.mxu0 %vm11005_vm4, %v13929_v6 }
 0x26a   :  { %v4379_v52 = vpop.f32.mrb[0].mxu0 }
 0x26b   :  { %v10450_v35 = vadd.f32 %v11871_v37, %v4379_v52  ;;  %v9728_v36 = vpop.f32.mrb[1].mxu0 }
 0x26c   :  { %v4382_v39 = vpop.f32.mrb[2].mxu0 }
 0x26d   :  { %v10451_v40 = vadd.f32 %v11871_v37, %v4382_v39  ;;  %v9729_v41 = vpop.f32.mrb[3].mxu0  ;;  %v4705_v28 = vmax.f32 %v10450_v35, 0.0 }
 0x26f   :  { %v4706_v48 = vmax.f32 %v10451_v40, 0.0  ;;  %9835 = vmatmul.mubr.msk.bf16.gmra.mrb[108].mxu0 %vm3857_vm3, %v10770_v23 }
 0x270   :  { %9838 = vmatprep.mubr.msk.bf16.mxu0 %vm11005_vm4, %v13929_v6 }
 0x271   :  { %v11970_v57 = vpack.c.bf16 %v4706_v48, %v4705_v28 }
 0x272   :  { %v4387_v49 = vpop.f32.mrb[4].mxu0 }
 0x273   :  { %v10452_v38 = vadd.f32 %v11871_v37, %v4387_v49  ;;  %v9732_v61 = vpop.f32.mrb[5].mxu0 }
 0x274   :  { %v4390_v13 = vpop.f32.mrb[6].mxu0 }
 0x275   :  { %v10453_v63 = vadd.f32 %v11871_v37, %v4390_v13  ;;  %v9733_v54 = vpop.f32.mrb[7].mxu0  ;;  %v4707_v14 = vmax.f32 %v10452_v38, 0.0 }
 0x276   :  { %v10783_v54 = vld [vmem:[%s13952_s3] sm:$0xff]  }
 0x277   :  { %v4708_v55 = vmax.f32 %v10453_v63, 0.0  ;;  %9839 = vmatmul.mubr.msk.bf16.gmra.mrb[112].mxu0 %vm3857_vm3, %v10771_v53 }
 0x278   :  { %9842 = vmatprep.mubr.msk.bf16.mxu0 %vm11005_vm4, %v13929_v6 }
 0x279   :  { %v11977_v46 = vpack.c.bf16 %v4708_v55, %v4707_v14 }
 0x27a   :  { %v4395_v56 = vpop.f32.mrb[8].mxu0 }
 0x27b   :  { %v10454_v58 = vadd.f32 %v11871_v37, %v4395_v56  ;;  %v9736_v45 = vpop.f32.mrb[9].mxu0 }
 0x27c   :  { %v4398_v60 = vpop.f32.mrb[10].mxu0 }
 0x27d   :  { %v10455_v9 = vadd.f32 %v11871_v37, %v4398_v60  ;;  %v9737_v25 = vpop.f32.mrb[11].mxu0  ;;  %v4709_v0 = vmax.f32 %v10454_v58, 0.0  ;;  %v10784_v60 = vld [vmem:[%s13952_s3 + $0x8] sm:$0xff]  }
 0x27f   :  { %v4710_v42 = vmax.f32 %v10455_v9, 0.0  ;;  %9843 = vmatmul.mubr.msk.bf16.gmra.mrb[116].mxu0 %vm3857_vm3, %v10773_v59 }
 0x280   :  { %9846 = vmatprep.mubr.msk.bf16.mxu0 %vm11005_vm4, %v13929_v6 }
 0x281   :  { %v11984_v5 = vpack.c.bf16 %v4710_v42, %v4709_v0 }
 0x282   :  { %v4403_v8 = vpop.f32.mrb[12].mxu0 }
 0x283   :  { %v10456_v11 = vadd.f32 %v11871_v37, %v4403_v8  ;;  %v9740_v16 = vpop.f32.mrb[13].mxu0 }
 0x284   :  { %v4406_v19 = vpop.f32.mrb[14].mxu0 }
 0x285   :  { %v10457_v15 = vadd.f32 %v11871_v37, %v4406_v19  ;;  %v9741_v12 = vpop.f32.mrb[15].mxu0  ;;  %v4711_v44 = vmax.f32 %v10456_v11, 0.0  ;;  %v10785_v11 = vld [vmem:[%s13952_s3 + $0x10] sm:$0xff]  }
 0x287   :  { %v4712_v33 = vmax.f32 %v10457_v15, 0.0  ;;  %9847 = vmatmul.mubr.msk.bf16.gmra.mrb[120].mxu0 %vm3857_vm3, %v10775_v18 }
 0x288   :  { %9850 = vmatprep.mubr.msk.bf16.mxu0 %vm11005_vm4, %v13929_v6 }
 0x289   :  { %v11991_v47 = vpack.c.bf16 %v4712_v33, %v4711_v44  ;;  %v10786_v33 = vld [vmem:[%s13952_s3 + $0x18] sm:$0xff]  }
 0x28a   :  { %v4411_v17 = vpop.f32.mrb[16].mxu0 }
 0x28b   :  { %v10458_v27 = vadd.f32 %v11871_v37, %v4411_v17  ;;  %v9744_v20 = vpop.f32.mrb[17].mxu0 }
 0x28c   :  { %v4414_v24 = vpop.f32.mrb[18].mxu0 }
 0x28d   :  { %v10459_v29 = vadd.f32 %v11871_v37, %v4414_v24  ;;  %v9745_v30 = vpop.f32.mrb[19].mxu0  ;;  %v4713_v34 = vmax.f32 %v10458_v27, 0.0 }
 0x28f   :  { %v4714_v21 = vmax.f32 %v10459_v29, 0.0  ;;  %9851 = vmatmul.mubr.msk.bf16.gmra.mrb[124].mxu0 %vm3857_vm3, %v10778_v22  ;;  %v10787_v29 = vld [vmem:[%s13952_s3 + $0x20] sm:$0xff]  }
 0x291   :  { %v11996_v52 = vpack.c.bf16 %v4714_v21, %v4713_v34 }
 0x292   :  { %v4419_v35 = vpop.f32.mrb[20].mxu0 }
 0x293   :  { %v10460_v36 = vadd.f32 %v11871_v37, %v4419_v35  ;;  %v9748_v23 = vpop.f32.mrb[21].mxu0  ;;  %v4866_v61 = vrot.slane %v11996_v52, 4 }
 0x294   :  { %v4422_v39 = vpop.f32.mrb[22].mxu0 }
 0x295   :  { %v10461_v40 = vadd.f32 %v11871_v37, %v4422_v39  ;;  %v9749_v41 = vpop.f32.mrb[23].mxu0  ;;  %v4715_v28 = vmax.f32 %v10460_v36, 0.0  ;;  %v10788_v39 = vld [vmem:[%s13952_s3 + $0x28] sm:$0xff]  }
 0x297   :  { %v4716_v48 = vmax.f32 %v10461_v40, 0.0 }
 0x299   :  { %v4791_v49 = vpack.c.bf16 %v4716_v48, %v4715_v28 }
 0x29a   :  { %v4427_v38 = vpop.f32.mrb[24].mxu0 }
 0x29b   :  { %v4867_v53 = vrot.slane %v4791_v49, 4  ;;  %v10462_v13 = vadd.f32 %v11871_v37, %v4427_v38  ;;  %v9752_v63 = vpop.f32.mrb[25].mxu0  ;;  %v10789_v38 = vld [vmem:[%s13952_s3 + $0x30] sm:$0xff]  }
 0x29c   :  { %v4430_v14 = vpop.f32.mrb[26].mxu0 }
 0x29d   :  { %v10463_v55 = vadd.f32 %v11871_v37, %v4430_v14  ;;  %v9753_v56 = vpop.f32.mrb[27].mxu0  ;;  %v4868_v58 = vsel %vm4865_vm5, %v4866_v61, %v4867_v53  ;;  %v4717_v45 = vmax.f32 %v10462_v13, 0.0 }
 0x29e   :  { %9907 = vmatmul.mubr.bf16.vlgmr.msra.gmra.mrb[36].mxu1 %v4868_v58 }
 0x29f   :  { %v4718_v59 = vmax.f32 %v10463_v55, 0.0  ;;  %9910 = vmatprep.mubr.msk.bf16.mxu1 %vm11005_vm4, %v13929_v6  ;;  %9927 = vmatpush3.bf16.msra.mxu1 %v10783_v54  ;;  %v10790_v55 = vld [vmem:[%s13952_s3 + $0x38] sm:$0xff]  }
 0x2a0   :  { %9928 = vmatprep.subr.bf16.mxu1 %v13929_v6 }
 0x2a1   :  { %v4792_v9 = vpack.c.bf16 %v4718_v59, %v4717_v45 }
 0x2a2   :  { %v4435_v25 = vpop.f32.mrb[28].mxu0 }
 0x2a3   :  { %v4869_v0 = vrot.slane %v4792_v9, 4  ;;  %v10464_v42 = vadd.f32 %v11871_v37, %v4435_v25  ;;  %v9756_v8 = vpop.f32.mrb[29].mxu0  ;;  %9929 = vmatpush3.bf16.msra.mxu1 %v10784_v60 }
 0x2a4   :  { %v4438_v16 = vpop.f32.mrb[30].mxu0  ;;  %9930 = vmatprep.subr.bf16.mxu1 %v13929_v6 }
 0x2a5   :  { %v10465_v18 = vadd.f32 %v11871_v37, %v4438_v16  ;;  %v9757_v19 = vpop.f32.mrb[31].mxu0  ;;  %v4870_v15 = vsel %vm4865_vm5, %v4867_v53, %v4869_v0  ;;  %v4719_v12 = vmax.f32 %v10464_v42, 0.0 }
 0x2a6   :  { %9911 = vmatmul.mubr.bf16.gmra.mrb[40].mxu1 %v4870_v15  ;;  %v10791_v19 = vld [vmem:[%s13952_s3 + $0x80] sm:$0xff]  }
 0x2a7   :  { %v4720_v44 = vmax.f32 %v10465_v18, 0.0  ;;  %9914 = vmatprep.mubr.msk.bf16.mxu1 %vm11005_vm4, %v13929_v6  ;;  %9931 = vmatpush3.bf16.msra.mxu1 %v10785_v11 }
 0x2a8   :  { %9932 = vmatprep.subr.bf16.mxu1 %v13929_v6 }
 0x2a9   :  { %v4793_v17 = vpack.c.bf16 %v4720_v44, %v4719_v12 }
 0x2aa   :  { %v4443_v27 = vpop.f32.mrb[32].mxu0 }
 0x2ab   :  { %v4871_v20 = vrot.slane %v4793_v17, 4  ;;  %v10466_v22 = vadd.f32 %v11871_v37, %v4443_v27  ;;  %v9760_v24 = vpop.f32.mrb[33].mxu0  ;;  %9933 = vmatpush3.bf16.msra.mxu1 %v10786_v33  ;;  %v10792_v27 = vld [vmem:[%s13952_s3 + $0x88] sm:$0xff]  }
 0x2ac   :  { %v4446_v30 = vpop.f32.mrb[34].mxu0  ;;  %9934 = vmatprep.subr.bf16.mxu1 %v13929_v6 }
 0x2ad   :  { %v10467_v34 = vadd.f32 %v11871_v37, %v4446_v30  ;;  %v9761_v21 = vpop.f32.mrb[35].mxu0  ;;  %v4872_v35 = vsel %vm4865_vm5, %v4869_v0, %v4871_v20  ;;  %v4721_v36 = vmax.f32 %v10466_v22, 0.0 }
 0x2ae   :  { %9915 = vmatmul.mubr.bf16.gmra.mrb[44].mxu1 %v4872_v35 }
 0x2af   :  { %v4722_v23 = vmax.f32 %v10467_v34, 0.0  ;;  %9918 = vmatprep.mubr.msk.bf16.mxu1 %vm11005_vm4, %v13929_v6  ;;  %9935 = vmatpush3.bf16.msra.mxu1 %v10787_v29 }
 0x2b0   :  { %9936 = vmatprep.subr.bf16.mxu1 %v13929_v6 }
 0x2b1   :  { %v4794_v40 = vpack.c.bf16 %v4722_v23, %v4721_v36  ;;  %v10794_v23 = vld [vmem:[%s13952_s3 + $0x98] sm:$0xff]  }
 0x2b2   :  { %v4451_v41 = vpop.f32.mrb[36].mxu0 }
 0x2b3   :  { %v4873_v28 = vrot.slane %v4794_v40, 4  ;;  %v10468_v48 = vadd.f32 %v11871_v37, %v4451_v41  ;;  %v9764_v49 = vpop.f32.mrb[37].mxu0  ;;  %9937 = vmatpush3.bf16.msra.mxu1 %v10788_v39 }
 0x2b4   :  { %v4454_v61 = vpop.f32.mrb[38].mxu0  ;;  %9938 = vmatprep.subr.bf16.mxu1 %v13929_v6 }
 0x2b5   :  { %v10469_v53 = vadd.f32 %v11871_v37, %v4454_v61  ;;  %v9765_v13 = vpop.f32.mrb[39].mxu0  ;;  %v4874_v63 = vsel %vm4865_vm5, %v4871_v20, %v4873_v28  ;;  %v4723_v54 = vmax.f32 %v10468_v48, 0.0 }
 0x2b6   :  { %9919 = vmatmul.mubr.bf16.gmra.mrb[48].mxu1 %v4874_v63  ;;  %v10796_v13 = vld [vmem:[%s13952_s3 + $0xa8] sm:$0xff]  }
 0x2b7   :  { %v4724_v14 = vmax.f32 %v10469_v53, 0.0  ;;  %9922 = vmatprep.mubr.msk.bf16.mxu1 %vm11005_vm4, %v13929_v6  ;;  %9939 = vmatpush3.bf16.msra.mxu1 %v10789_v38 }
 0x2b8   :  { %9940 = vmatprep.subr.bf16.mxu1 %v13929_v6 }
 0x2b9   :  { %v12052_v56 = vpack.c.bf16 %v4724_v14, %v4723_v54 }
 0x2ba   :  { %v4459_v58 = vpop.f32.mrb[40].mxu0 }
 0x2bb   :  { %v10470_v45 = vadd.f32 %v11871_v37, %v4459_v58  ;;  %v9768_v59 = vpop.f32.mrb[41].mxu0  ;;  %9941 = vmatpush3.bf16.msra.mxu1 %v10790_v55 }
 0x2bc   :  { %v4462_v60 = vpop.f32.mrb[42].mxu0  ;;  %9962 = vmatprep.subr.bf16.mxu1 %v13929_v6 }
 0x2bd   :  { %v10471_v9 = vadd.f32 %v11871_v37, %v4462_v60  ;;  %v9769_v25 = vpop.f32.mrb[43].mxu0  ;;  %v4725_v0 = vmax.f32 %v10470_v45, 0.0 }
 0x2be   :  { %9923 = vmatmul.mubr.bf16.gmra.mrb[52].mxu1 %v4873_v28  ;;  %v10798_v25 = vld [vmem:[%s13952_s3 + $0xb8] sm:$0xff]  }
 0x2bf   :  { %v4726_v42 = vmax.f32 %v10471_v9, 0.0  ;;  %9942 = vmatprep.mubr.msk.bf16.mxu1 %vm11005_vm4, %v13929_v6 }
 0x2c1   :  { %v12059_v8 = vpack.c.bf16 %v4726_v42, %v4725_v0 }
 0x2c2   :  { %v4467_v11 = vpop.f32.mrb[44].mxu0 }
 0x2c3   :  { %v10472_v16 = vadd.f32 %v11871_v37, %v4467_v11  ;;  %v9772_v18 = vpop.f32.mrb[45].mxu0 }
 0x2c4   :  { %v4470_v15 = vpop.f32.mrb[46].mxu0 }
 0x2c5   :  { %v10473_v12 = vadd.f32 %v11871_v37, %v4470_v15  ;;  %v9773_v44 = vpop.f32.mrb[47].mxu0  ;;  %v4727_v33 = vmax.f32 %v10472_v16, 0.0 }
 0x2c6   :  { %9943 = vmatmul.mubr.bf16.vlgmr.msra.gmra.mrb[56].mxu1 %v11970_v57  ;;  %v10793_v57 = vld [vmem:[%s13952_s3 + $0x90] sm:$0xff]  }
 0x2c7   :  { %v4728_v17 = vmax.f32 %v10473_v12, 0.0  ;;  %9946 = vmatprep.mubr.msk.bf16.mxu1 %vm11005_vm4, %v13929_v6  ;;  %9963 = vmatpush3.bf16.msra.mxu1 %v10791_v19 }
 0x2c8   :  { %9964 = vmatprep.subr.bf16.mxu1 %v13929_v6 }
 0x2c9   :  { %v12073_v20 = vpack.c.bf16 %v4728_v17, %v4727_v33 }
 0x2ca   :  { %v4475_v22 = vpop.f32.mrb[48].mxu0 }
 0x2cb   :  { %v10474_v24 = vadd.f32 %v11871_v37, %v4475_v22  ;;  %v9776_v29 = vpop.f32.mrb[49].mxu0  ;;  %9965 = vmatpush3.bf16.msra.mxu1 %v10792_v27 }
 0x2cc   :  { %v4478_v30 = vpop.f32.mrb[50].mxu0  ;;  %9966 = vmatprep.subr.bf16.mxu1 %v13929_v6 }
 0x2cd   :  { %v10475_v34 = vadd.f32 %v11871_v37, %v4478_v30  ;;  %v9777_v21 = vpop.f32.mrb[51].mxu0  ;;  %v4729_v35 = vmax.f32 %v10474_v24, 0.0  ;;  %v10799_v30 = vld [vmem:[%s13952_s3 + $0xc0] sm:$0xff]  }
 0x2ce   :  { %9947 = vmatmul.mubr.bf16.gmra.mrb[60].mxu1 %v11977_v46  ;;  %v10795_v46 = vld [vmem:[%s13952_s3 + $0xa0] sm:$0xff]  }
 0x2cf   :  { %v4730_v36 = vmax.f32 %v10475_v34, 0.0  ;;  %9950 = vmatprep.mubr.msk.bf16.mxu1 %vm11005_vm4, %v13929_v6  ;;  %9967 = vmatpush3.bf16.msra.mxu1 %v10793_v57 }
 0x2d0   :  { %9968 = vmatprep.subr.bf16.mxu1 %v13929_v6 }
 0x2d1   :  { %v12088_v39 = vpack.c.bf16 %v4730_v36, %v4729_v35 }
 0x2d2   :  { %v4483_v40 = vpop.f32.mrb[52].mxu0 }
 0x2d3   :  { %v10476_v41 = vadd.f32 %v11871_v37, %v4483_v40  ;;  %v9780_v28 = vpop.f32.mrb[53].mxu0  ;;  %9969 = vmatpush3.bf16.msra.mxu1 %v10794_v23  ;;  %v10800_v40 = vld [vmem:[%s13952_s3 + $0xc8] sm:$0xff]  }
 0x2d4   :  { %v4486_v48 = vpop.f32.mrb[54].mxu0  ;;  %9970 = vmatprep.subr.bf16.mxu1 %v13929_v6 }
 0x2d5   :  { %v10477_v49 = vadd.f32 %v11871_v37, %v4486_v48  ;;  %v9781_v38 = vpop.f32.mrb[55].mxu0  ;;  %v4731_v61 = vmax.f32 %v10476_v41, 0.0 }
 0x2d6   :  { %9951 = vmatmul.mubr.bf16.gmra.mrb[64].mxu1 %v11984_v5  ;;  %v10797_v5 = vld [vmem:[%s13952_s3 + $0xb0] sm:$0xff]  }
 0x2d7   :  { %v4732_v53 = vmax.f32 %v10477_v49, 0.0  ;;  %9954 = vmatprep.mubr.msk.bf16.mxu1 %vm11005_vm4, %v13929_v6  ;;  %9971 = vmatpush3.bf16.msra.mxu1 %v10795_v46 }
 0x2d8   :  { %9972 = vmatprep.subr.bf16.mxu1 %v13929_v6 }
 0x2d9   :  { %v12103_v63 = vpack.c.bf16 %v4732_v53, %v4731_v61 }
 0x2da   :  { %v4491_v54 = vpop.f32.mrb[56].mxu0 }
 0x2db   :  { %v10478_v14 = vadd.f32 %v11871_v37, %v4491_v54  ;;  %v9784_v55 = vpop.f32.mrb[57].mxu0  ;;  %9973 = vmatpush3.bf16.msra.mxu1 %v10796_v13  ;;  %v5288_v11 = vrot.slane %v12103_v63, 4 }
 0x2dc   :  { %v4494_v58 = vpop.f32.mrb[58].mxu0  ;;  %9974 = vmatprep.subr.bf16.mxu1 %v13929_v6  ;;  %v10802_v55 = vld [vmem:[%s13952_s3 + $0xd8] sm:$0xff]  }
 0x2dd   :  { %v10479_v45 = vadd.f32 %v11871_v37, %v4494_v58  ;;  %v9785_v59 = vpop.f32.mrb[59].mxu0  ;;  %v4733_v60 = vmax.f32 %v10478_v14, 0.0 }
 0x2de   :  { %9955 = vmatmul.mubr.bf16.gmra.mrb[68].mxu1 %v11991_v47 }
 0x2df   :  { %v4734_v9 = vmax.f32 %v10479_v45, 0.0  ;;  %9958 = vmatprep.mubr.msk.bf16.mxu1 %vm11005_vm4, %v13929_v6  ;;  %9975 = vmatpush3.bf16.msra.mxu1 %v10797_v5 }
 0x2e0   :  { %9976 = vmatprep.subr.bf16.mxu1 %v13929_v6 }
 0x2e1   :  { %v4800_v0 = vpack.c.bf16 %v4734_v9, %v4733_v60  ;;  %v10803_v60 = vld [vmem:[%s13952_s3 + $0xe0] sm:$0xff]  }
 0x2e2   :  { %v4499_v42 = vpop.f32.mrb[60].mxu0 }
 0x2e3   :  { %v5289_v16 = vrot.slane %v4800_v0, 4  ;;  %v10480_v18 = vadd.f32 %v11871_v37, %v4499_v42  ;;  %v9788_v47 = vpop.f32.mrb[61].mxu0  ;;  %9977 = vmatpush3.bf16.msra.mxu1 %v10798_v25 }
 0x2e4   :  { %v4502_v19 = vpop.f32.mrb[62].mxu0  ;;  %9998 = vmatprep.subr.bf16.mxu1 %v13929_v6 }
 0x2e5   :  { %v10481_v15 = vadd.f32 %v11871_v37, %v4502_v19  ;;  %v9789_v12 = vpop.f32.mrb[63].mxu0  ;;  %v12123_v44 = vsel %vm4865_vm5, %v5288_v11, %v5289_v16  ;;  %v4735_v33 = vmax.f32 %v10480_v18, 0.0  ;;  %v10804_v18 = vld [vmem:[%s13952_s3 + $0xe8] sm:$0xff]  }
 0x2e6   :  { %9959 = vmatmul.mubr.bf16.gmra.mrb[72].mxu1 %v11996_v52 }
 0x2e7   :  { %v4736_v17 = vmax.f32 %v10481_v15, 0.0  ;;  %9978 = vmatprep.mubr.msk.bf16.mxu1 %vm11005_vm4, %v13929_v6 }
 0x2e9   :  { %v4801_v27 = vpack.c.bf16 %v4736_v17, %v4735_v33 }
 0x2ea   :  { %v4507_v22 = vpop.f32.mrb[64].mxu0 }
 0x2eb   :  { %v5291_v24 = vrot.slane %v4801_v27, 4  ;;  %v10482_v29 = vadd.f32 %v11871_v37, %v4507_v22  ;;  %v9792_v57 = vpop.f32.mrb[65].mxu0 }
 0x2ec   :  { %v4510_v34 = vpop.f32.mrb[66].mxu0 }
 0x2ed   :  { %v10483_v21 = vadd.f32 %v11871_v37, %v4510_v34  ;;  %v9793_v35 = vpop.f32.mrb[67].mxu0  ;;  %v12134_v52 = vsel %vm4865_vm5, %v5289_v16, %v5291_v24  ;;  %v4737_v36 = vmax.f32 %v10482_v29, 0.0  ;;  %v10806_v29 = vld [vmem:[%s13952_s3 + $0xf8] sm:$0xff]  }
 0x2ee   :  { %9979 = vmatmul.mubr.bf16.vlgmr.msra.gmra.mrb[76].mxu1 %v12052_v56  ;;  %v10801_v56 = vld [vmem:[%s13952_s3 + $0xd0] sm:$0xff]  }
 0x2ef   :  { %v4738_v23 = vmax.f32 %v10483_v21, 0.0  ;;  %9982 = vmatprep.mubr.msk.bf16.mxu1 %vm11005_vm4, %v13929_v6  ;;  %9999 = vmatpush3.bf16.msra.mxu1 %v10799_v30 }
 0x2f0   :  { %10000 = vmatprep.subr.bf16.mxu1 %v13929_v6 }
 0x2f1   :  { %v4802_v41 = vpack.c.bf16 %v4738_v23, %v4737_v36 }
 0x2f2   :  { %v4515_v28 = vpop.f32.mrb[68].mxu0 }
 0x2f3   :  { %v5293_v46 = vrot.slane %v4802_v41, 4  ;;  %v10484_v48 = vadd.f32 %v11871_v37, %v4515_v28  ;;  %v9796_v49 = vpop.f32.mrb[69].mxu0  ;;  %10001 = vmatpush3.bf16.msra.mxu1 %v10800_v40 }
 0x2f4   :  { %v4518_v38 = vpop.f32.mrb[70].mxu0  ;;  %10002 = vmatprep.subr.bf16.mxu1 %v13929_v6  ;;  %v10807_v49 = vld [vmem:[%s13952_s3 + $0x100] sm:$0xff]  }
 0x2f5   :  { %v10485_v61 = vadd.f32 %v11871_v37, %v4518_v38  ;;  %v9797_v53 = vpop.f32.mrb[71].mxu0  ;;  %v12150_v13 = vsel %vm4865_vm5, %v5291_v24, %v5293_v46  ;;  %v4739_v54 = vmax.f32 %v10484_v48, 0.0 }
 0x2f6   :  { %9983 = vmatmul.mubr.bf16.gmra.mrb[80].mxu1 %v12059_v8 }
 0x2f7   :  { %v4740_v14 = vmax.f32 %v10485_v61, 0.0  ;;  %9986 = vmatprep.mubr.msk.bf16.mxu1 %vm11005_vm4, %v13929_v6  ;;  %10003 = vmatpush3.bf16.msra.mxu1 %v10801_v56 }
 0x2f8   :  { %10004 = vmatprep.subr.bf16.mxu1 %v13929_v6 }
 0x2f9   :  { %v12159_v5 = vpack.c.bf16 %v4740_v14, %v4739_v54  ;;  %v10808_v54 = vld [vmem:[%s13952_s3 + $0x108] sm:$0xff]  }
 0x2fa   :  { %v4523_v58 = vpop.f32.mrb[72].mxu0 }
 0x2fb   :  { %v5295_v45 = vrot.slane %v12159_v5, 4  ;;  %v10486_v59 = vadd.f32 %v11871_v37, %v4523_v58  ;;  %v9800_v8 = vpop.f32.mrb[73].mxu0  ;;  %10005 = vmatpush3.bf16.msra.mxu1 %v10802_v55 }
 0x2fc   :  { %v4526_v9 = vpop.f32.mrb[74].mxu0  ;;  %10006 = vmatprep.subr.bf16.mxu1 %v13929_v6 }
 0x2fd   :  { %v10487_v25 = vadd.f32 %v11871_v37, %v4526_v9  ;;  %v9801_v0 = vpop.f32.mrb[75].mxu0  ;;  %v12171_v42 = vsel %vm4865_vm5, %v5293_v46, %v5295_v45  ;;  %v4741_v11 = vmax.f32 %v10486_v59, 0.0 }
 0x2fe   :  { %9987 = vmatmul.mubr.bf16.gmra.mrb[84].mxu1 %v12073_v20  ;;  %v10805_v20 = vld [vmem:[%s13952_s3 + $0xf0] sm:$0xff]  }
 0x2ff   :  { %v4742_v16 = vmax.f32 %v10487_v25, 0.0  ;;  %9990 = vmatprep.mubr.msk.bf16.mxu1 %vm11005_vm4, %v13929_v6  ;;  %10007 = vmatpush3.bf16.msra.mxu1 %v10803_v60 }
 0x300   :  { %10008 = vmatprep.subr.bf16.mxu1 %v13929_v6 }
 0x301   :  { %v12180_v47 = vpack.c.bf16 %v4742_v16, %v4741_v11  ;;  %v10810_v11 = vld [vmem:[%s13952_s3 + $0x118] sm:$0xff]  }
 0x302   :  { %v4531_v19 = vpop.f32.mrb[76].mxu0 }
 0x303   :  { %v10488_v15 = vadd.f32 %v11871_v37, %v4531_v19  ;;  %v9804_v12 = vpop.f32.mrb[77].mxu0  ;;  %10009 = vmatpush3.bf16.msra.mxu1 %v10804_v18 }
 0x304   :  { %v4534_v33 = vpop.f32.mrb[78].mxu0  ;;  %10010 = vmatprep.subr.bf16.mxu1 %v13929_v6 }
 0x305   :  { %v10489_v17 = vadd.f32 %v11871_v37, %v4534_v33  ;;  %v9805_v27 = vpop.f32.mrb[79].mxu0  ;;  %v4743_v22 = vmax.f32 %v10488_v15, 0.0 }
 0x306   :  { %9991 = vmatmul.mubr.bf16.gmra.mrb[88].mxu1 %v12088_v39 }
 0x307   :  { %v4744_v24 = vmax.f32 %v10489_v17, 0.0  ;;  %9994 = vmatprep.mubr.msk.bf16.mxu1 %vm11005_vm4, %v13929_v6  ;;  %10011 = vmatpush3.bf16.msra.mxu1 %v10805_v20 }
 0x308   :  { %10012 = vmatprep.subr.bf16.mxu1 %v13929_v6 }
 0x309   :  { %v12195_v57 = vpack.c.bf16 %v4744_v24, %v4743_v22  ;;  %v10812_v22 = vld [vmem:[%s13952_s3 + $0x128] sm:$0xff]  }
 0x30a   :  { %v4539_v30 = vpop.f32.mrb[80].mxu0 }
 0x30b   :  { %v10490_v34 = vadd.f32 %v11871_v37, %v4539_v30  ;;  %v9808_v21 = vpop.f32.mrb[81].mxu0  ;;  %10013 = vmatpush3.bf16.msra.mxu1 %v10806_v29 }
 0x30c   :  { %v4542_v39 = vpop.f32.mrb[82].mxu0  ;;  %10034 = vmatprep.subr.bf16.mxu1 %v13929_v6 }
 0x30d   :  { %v10491_v35 = vadd.f32 %v11871_v37, %v4542_v39  ;;  %v9809_v36 = vpop.f32.mrb[83].mxu0  ;;  %v4745_v23 = vmax.f32 %v10490_v34, 0.0  ;;  %v10813_v39 = vld [vmem:[%s13952_s3 + $0x130] sm:$0xff]  }
 0x30e   :  { %9995 = vmatmul.mubr.bf16.gmra.mrb[92].mxu1 %v12103_v63  ;;  %v12256_v36 = vld [vmem:[%s13953_s0] ss:$0 sm:$0xff] }
 0x30f   :  { %v4746_v40 = vmax.f32 %v10491_v35, 0.0  ;;  %10014 = vmatprep.mubr.msk.bf16.mxu1 %vm11005_vm4, %v13929_v6 }
 0x311   :  { %v12203_v41 = vpack.c.bf16 %v4746_v40, %v4745_v23 }
 0x312   :  { %v4547_v28 = vpop.f32.mrb[84].mxu0 }
 0x313   :  { %v10492_v46 = vadd.f32 %v11871_v37, %v4547_v28  ;;  %v9812_v48 = vpop.f32.mrb[85].mxu0 }
 0x314   :  { %v4550_v56 = vpop.f32.mrb[86].mxu0  ;;  %v10814_v48 = vld [vmem:[%s13952_s3 + $0x138] sm:$0xff]  }
 0x315   :  { %v10493_v38 = vadd.f32 %v11871_v37, %v4550_v56  ;;  %v9813_v61 = vpop.f32.mrb[87].mxu0  ;;  %v4747_v63 = vmax.f32 %v10492_v46, 0.0 }
 0x316   :  { %10015 = vmatmul.mubr.bf16.vlgmr.msra.gmra.mrb[96].mxu1 %v12123_v44  ;;  %v10809_v44 = vld [vmem:[%s13952_s3 + $0x110] sm:$0xff]  }
 0x317   :  { %v4748_v53 = vmax.f32 %v10493_v38, 0.0  ;;  %10018 = vmatprep.mubr.msk.bf16.mxu1 %vm11005_vm4, %v13929_v6  ;;  %10035 = vmatpush3.bf16.msra.mxu1 %v10807_v49 }
 0x318   :  { %10036 = vmatprep.subr.bf16.mxu1 %v13929_v6 }
 0x319   :  { %v12217_v14 = vpack.c.bf16 %v4748_v53, %v4747_v63 }
 0x31a   :  { %v4555_v55 = vpop.f32.mrb[88].mxu0 }
 0x31b   :  { %v10494_v58 = vadd.f32 %v11871_v37, %v4555_v55  ;;  %v9816_v59 = vpop.f32.mrb[89].mxu0  ;;  %10037 = vmatpush3.bf16.msra.mxu1 %v10808_v54 }
 0x31c   :  { %v4558_v8 = vpop.f32.mrb[90].mxu0  ;;  %10038 = vmatprep.subr.bf16.mxu1 %v13929_v6 }
 0x31d   :  { %v10495_v60 = vadd.f32 %v11871_v37, %v4558_v8  ;;  %v9817_v9 = vpop.f32.mrb[91].mxu0  ;;  %v4749_v25 = vmax.f32 %v10494_v58, 0.0 }
 0x31e   :  { %10019 = vmatmul.mubr.bf16.gmra.mrb[100].mxu1 %v12134_v52  ;;  %v10811_v52 = vld [vmem:[%s13952_s3 + $0x120] sm:$0xff]  }
 0x31f   :  { %v4750_v0 = vmax.f32 %v10495_v60, 0.0  ;;  %10022 = vmatprep.mubr.msk.bf16.mxu1 %vm11005_vm4, %v13929_v6  ;;  %10039 = vmatpush3.bf16.msra.mxu1 %v10809_v44 }
 0x320   :  { %10040 = vmatprep.subr.bf16.mxu1 %v13929_v6 }
 0x321   :  { %v12232_v16 = vpack.c.bf16 %v4750_v0, %v4749_v25  ;;  %v10815_v0 = vld [vmem:[%s13952_s3 + $0x140] sm:$0xff]  }
 0x322   :  { %v4563_v18 = vpop.f32.mrb[92].mxu0 }
 0x323   :  { %v10496_v19 = vadd.f32 %v11871_v37, %v4563_v18  ;;  %v9820_v15 = vpop.f32.mrb[93].mxu0  ;;  %10041 = vmatpush3.bf16.msra.mxu1 %v10810_v11  ;;  %v5599_v30 = vrot.slane %v12232_v16, 4 }
 0x324   :  { %v4566_v12 = vpop.f32.mrb[94].mxu0  ;;  %10042 = vmatprep.subr.bf16.mxu1 %v13929_v6 }
 0x325   :  { %v10497_v20 = vadd.f32 %v11871_v37, %v4566_v12  ;;  %v9821_v33 = vpop.f32.mrb[95].mxu0  ;;  %v4751_v17 = vmax.f32 %v10496_v19, 0.0 }
 0x326   :  { %10023 = vmatmul.mubr.bf16.gmra.mrb[104].mxu1 %v12150_v13 }
 0x327   :  { %v4752_v27 = vmax.f32 %v10497_v20, 0.0  ;;  %10026 = vmatprep.mubr.msk.bf16.mxu1 %vm11005_vm4, %v13929_v6  ;;  %10043 = vmatpush3.bf16.msra.mxu1 %v10811_v52  ;;  %v10816_v52 = vld [vmem:[%s13952_s3 + $0x148] sm:$0xff]  }
 0x328   :  { %10044 = vmatprep.subr.bf16.mxu1 %v13929_v6 }
 0x329   :  { %v4809_v24 = vpack.c.bf16 %v4752_v27, %v4751_v17  ;;  %v10817_v27 = vld [vmem:[%s13952_s3 + $0x150] sm:$0xff]  }
 0x32a   :  { %v4571_v29 = vpop.f32.mrb[96].mxu0 }
 0x32b   :  { %v5600_v34 = vrot.slane %v4809_v24, 4  ;;  %v10498_v21 = vadd.f32 %v11871_v37, %v4571_v29  ;;  %v9824_v13 = vpop.f32.mrb[97].mxu0  ;;  %10045 = vmatpush3.bf16.msra.mxu1 %v10812_v22 }
 0x32c   :  { %v4574_v35 = vpop.f32.mrb[98].mxu0  ;;  %10046 = vmatprep.subr.bf16.mxu1 %v13929_v6  ;;  %v10818_v13 = vld [vmem:[%s13952_s3 + $0x158] sm:$0xff]  }
 0x32d   :  { %v10499_v23 = vadd.f32 %v12256_v36, %v4574_v35  ;;  %v9825_v40 = vpop.f32.mrb[99].mxu0  ;;  %v12260_v28 = vsel %vm4865_vm5, %v5599_v30, %v5600_v34  ;;  %v4753_v37 = vmax.f32 %v10498_v21, 0.0 }
 0x32e   :  { %10027 = vmatmul.mubr.bf16.gmra.mrb[108].mxu1 %v12171_v42 }
 0x32f   :  { %v4754_v46 = vmax.f32 %v10499_v23, 0.0  ;;  %10030 = vmatprep.mubr.msk.bf16.mxu1 %vm11005_vm4, %v13929_v6  ;;  %10047 = vmatpush3.bf16.msra.mxu1 %v10813_v39 }
 0x330   :  { %10048 = vmatprep.subr.bf16.mxu1 %v13929_v6 }
 0x331   :  { %v4810_v49 = vpack.c.bf16 %v4754_v46, %v4753_v37 }
 0x332   :  { %v4579_v56 = vpop.f32.mrb[100].mxu0 }
 0x333   :  { %v5602_v38 = vrot.slane %v4810_v49, 4  ;;  %v10500_v61 = vadd.f32 %v12256_v36, %v4579_v56  ;;  %v9828_v63 = vpop.f32.mrb[101].mxu0  ;;  %10049 = vmatpush3.bf16.msra.mxu1 %v10814_v48 }
 0x334   :  { %v4582_v42 = vpop.f32.mrb[102].mxu0  ;;  %10070 = vmatprep.subr.bf16.mxu1 %v13929_v6 }
 0x335   :  { %v10501_v53 = vadd.f32 %v12256_v36, %v4582_v42  ;;  %v9829_v54 = vpop.f32.mrb[103].mxu0  ;;  %v12273_v55 = vsel %vm4865_vm5, %v5600_v34, %v5602_v38  ;;  %v4755_v58 = vmax.f32 %v10500_v61, 0.0 }
 0x336   :  { %10031 = vmatmul.mubr.bf16.gmra.mrb[112].mxu1 %v5295_v45 }
 0x337   :  { %v4756_v59 = vmax.f32 %v10501_v53, 0.0  ;;  %10050 = vmatprep.mubr.msk.bf16.mxu1 %vm11005_vm4, %v13929_v6 }
 0x339   :  { %v4811_v44 = vpack.c.bf16 %v4756_v59, %v4755_v58 }
 0x33a   :  { %v4587_v8 = vpop.f32.mrb[104].mxu0 }
 0x33b   :  { %v5604_v60 = vrot.slane %v4811_v44, 4  ;;  %v10502_v9 = vadd.f32 %v12256_v36, %v4587_v8  ;;  %v9832_v25 = vpop.f32.mrb[105].mxu0 }
 0x33c   :  { %v4590_v11 = vpop.f32.mrb[106].mxu0 }
 0x33d   :  { %v10503_v18 = vadd.f32 %v12256_v36, %v4590_v11  ;;  %v9833_v5 = vpop.f32.mrb[107].mxu0  ;;  %v12285_v45 = vsel %vm4865_vm5, %v5602_v38, %v5604_v60  ;;  %v4757_v19 = vmax.f32 %v10502_v9, 0.0  ;;  %v10820_v38 = vld [vmem:[%s13952_s3 + $0x168] sm:$0xff]  }
 0x33e   :  { %10051 = vmatmul.mubr.bf16.vlgmr.msra.gmra.mrb[116].mxu1 %v12180_v47 }
 0x33f   :  { %v4758_v15 = vmax.f32 %v10503_v18, 0.0  ;;  %10054 = vmatprep.mubr.msk.bf16.mxu1 %vm11005_vm4, %v13929_v6  ;;  %10071 = vmatpush3.bf16.msra.mxu1 %v10815_v0 }
 0x340   :  { %10072 = vmatprep.subr.bf16.mxu1 %v13929_v6 }
 0x341   :  { %v12294_v12 = vpack.c.bf16 %v4758_v15, %v4757_v19 }
 0x342   :  { %v4595_v20 = vpop.f32.mrb[108].mxu0 }
 0x343   :  { %v5606_v33 = vrot.slane %v12294_v12, 4  ;;  %v10504_v17 = vadd.f32 %v12256_v36, %v4595_v20  ;;  %v9836_v47 = vpop.f32.mrb[109].mxu0  ;;  %10073 = vmatpush3.bf16.msra.mxu1 %v10816_v52  ;;  %v10832_v12 = vld [vmem:[%s13952_s3 + $0x1c8] sm:$0xff]  }
 0x344   :  { %v4598_v22 = vpop.f32.mrb[110].mxu0  ;;  %10074 = vmatprep.subr.bf16.mxu1 %v13929_v6 }
 0x345   :  { %v10505_v24 = vadd.f32 %v12256_v36, %v4598_v22  ;;  %v9837_v29 = vpop.f32.mrb[111].mxu0  ;;  %v12306_v30 = vsel %vm4865_vm5, %v5604_v60, %v5606_v33  ;;  %v4759_v34 = vmax.f32 %v10504_v17, 0.0  ;;  %v10822_v60 = vld [vmem:[%s13952_s3 + $0x178] sm:$0xff]  }
 0x346   :  { %10055 = vmatmul.mubr.bf16.gmra.mrb[120].mxu1 %v12195_v57  ;;  %v10819_v57 = vld [vmem:[%s13952_s3 + $0x160] sm:$0xff]  }
 0x347   :  { %v4760_v21 = vmax.f32 %v10505_v24, 0.0  ;;  %10058 = vmatprep.mubr.msk.bf16.mxu1 %vm11005_vm4, %v13929_v6  ;;  %10075 = vmatpush3.bf16.msra.mxu1 %v10817_v27  ;;  %v10823_v27 = vld [vmem:[%s13952_s3 + $0x180] sm:$0xff]  }
 0x348   :  { %10076 = vmatprep.subr.bf16.mxu1 %v13929_v6 }
 0x349   :  { %v12315_v39 = vpack.c.bf16 %v4760_v21, %v4759_v34  ;;  %v10824_v21 = vld [vmem:[%s13952_s3 + $0x188] sm:$0xff]  }
 0x34a   :  { %v4603_v35 = vpop.f32.mrb[112].mxu0 }
 0x34b   :  { %v10506_v23 = vadd.f32 %v12256_v36, %v4603_v35  ;;  %v9840_v40 = vpop.f32.mrb[113].mxu0  ;;  %10077 = vmatpush3.bf16.msra.mxu1 %v10818_v13 }
 0x34c   :  { %v4606_v37 = vpop.f32.mrb[114].mxu0  ;;  %10078 = vmatprep.subr.bf16.mxu1 %v13929_v6 }
 0x34d   :  { %v10507_v46 = vadd.f32 %v12256_v36, %v4606_v37  ;;  %v9841_v48 = vpop.f32.mrb[115].mxu0  ;;  %v4761_v49 = vmax.f32 %v10506_v23, 0.0  ;;  %v10826_v23 = vld [vmem:[%s13952_s3 + $0x198] sm:$0xff]  }
 0x34e   :  { %10059 = vmatmul.mubr.bf16.gmra.mrb[124].mxu1 %v12203_v41  ;;  %v10821_v41 = vld [vmem:[%s13952_s3 + $0x170] sm:$0xff]  }
 0x34f   :  { %v4762_v56 = vmax.f32 %v10507_v46, 0.0  ;;  %10062 = vmatprep.mubr.msk.bf16.mxu1 %vm11005_vm4, %v13929_v6  ;;  %10079 = vmatpush3.bf16.msra.mxu1 %v10819_v57 }
 0x350   :  { %10080 = vmatprep.subr.bf16.mxu1 %v13929_v6 }
 0x351   :  { %v12330_v61 = vpack.c.bf16 %v4762_v56, %v4761_v49  ;;  %v10829_v56 = vld [vmem:[%s13952_s3 + $0x1b0] sm:$0xff]  }
 0x352   :  { %v4611_v63 = vpop.f32.mrb[116].mxu0 }
 0x353   :  { %v10508_v42 = vadd.f32 %v12256_v36, %v4611_v63  ;;  %v9844_v53 = vpop.f32.mrb[117].mxu0  ;;  %10081 = vmatpush3.bf16.msra.mxu1 %v10820_v38 }
 0x354   :  { %v4614_v54 = vpop.f32.mrb[118].mxu0  ;;  %10082 = vmatprep.subr.bf16.mxu1 %v13929_v6 }
 0x355   :  { %v10509_v58 = vadd.f32 %v12256_v36, %v4614_v54  ;;  %v9845_v59 = vpop.f32.mrb[119].mxu0  ;;  %v4763_v44 = vmax.f32 %v10508_v42, 0.0 }
 0x356   :  { %10063 = vmatmul.mubr.bf16.gmra.mrb[128].mxu1 %v12217_v14  ;;  %v10831_v59 = vld [vmem:[%s13952_s3 + $0x1c0] sm:$0xff]  }
 0x357   :  { %v4764_v8 = vmax.f32 %v10509_v58, 0.0  ;;  %10066 = vmatprep.mubr.msk.bf16.mxu1 %vm11005_vm4, %v13929_v6  ;;  %10083 = vmatpush3.bf16.msra.mxu1 %v10821_v41 }
 0x358   :  { %10084 = vmatprep.subr.bf16.mxu1 %v13929_v6 }
 0x359   :  { %v12345_v9 = vpack.c.bf16 %v4764_v8, %v4763_v44 }
 0x35a   :  { %v4619_v25 = vpop.f32.mrb[120].mxu0 }
 0x35b   :  { %v10510_v0 = vadd.f32 %v12256_v36, %v4619_v25  ;;  %v9848_v11 = vpop.f32.mrb[121].mxu0  ;;  %10085 = vmatpush3.bf16.msra.mxu1 %v10822_v60  ;;  %v10833_v25 = vld [vmem:[%s13952_s3 + $0x1d0] sm:$0xff]  }
 0x35c   :  { %v4622_v14 = vpop.f32.mrb[122].mxu0  ;;  %10106 = vmatprep.subr.bf16.mxu1 %v13929_v6 }
 0x35d   :  { %v10511_v18 = vadd.f32 %v12256_v36, %v4622_v14  ;;  %v9849_v5 = vpop.f32.mrb[123].mxu0  ;;  %v4765_v19 = vmax.f32 %v10510_v0, 0.0  ;;  %v10834_v0 = vld [vmem:[%s13952_s3 + $0x1d8] sm:$0xff]  }
 0x35e   :  { %10067 = vmatmul.mubr.bf16.gmra.mrb[132].mxu1 %v12232_v16 }
 0x35f   :  { %v4766_v15 = vmax.f32 %v10511_v18, 0.0  ;;  %10086 = vmatprep.mubr.msk.bf16.mxu1 %vm11005_vm4, %v13929_v6 }
 0x361   :  { %v12353_v52 = vpack.c.bf16 %v4766_v15, %v4765_v19 }
 0x362   :  { %v4627_v20 = vpop.f32.mrb[124].mxu0 }
 0x363   :  { %v10512_v17 = vadd.f32 %v12256_v36, %v4627_v20  ;;  %v9852_v47 = vpop.f32.mrb[125].mxu0  ;;  %v10836_v20 = vld [vmem:[%s13952_s3 + $0x1e8] sm:$0xff]  }
 0x364   :  { %v4630_v22 = vpop.f32.mrb[126].mxu0 }
 0x365   :  { %v10513_v24 = vadd.f32 %v12256_v36, %v4630_v22  ;;  %v9853_v29 = vpop.f32.mrb[127].mxu0  ;;  %v4767_v16 = vmax.f32 %v10512_v17, 0.0  ;;  %v10825_v36 = vld [vmem:[%s13952_s3 + $0x190] sm:$0xff]  }
 0x366   :  { %10087 = vmatmul.mubr.bf16.vlgmr.msra.gmra.mrb[136].mxu1 %v12260_v28 }
 0x367   :  { %v4768_v34 = vmax.f32 %v10513_v24, 0.0  ;;  %10090 = vmatprep.mubr.msk.bf16.mxu1 %vm11005_vm4, %v13929_v6  ;;  %10107 = vmatpush3.bf16.msra.mxu1 %v10823_v27 }
 0x368   :  { %10108 = vmatprep.subr.bf16.mxu1 %v13929_v6 }
 0x369   :  { %v12367_v13 = vpack.c.bf16 %v4768_v34, %v4767_v16  ;;  %v10838_v16 = vld [vmem:[%s13952_s3 + $0x1f8] sm:$0xff]  }
 0x36b   :  { %v5910_v35 = vrot.slane %v12367_v13, 4  ;;  %10109 = vmatpush3.bf16.msra.mxu1 %v10824_v21 }
 0x36c   :  { %10110 = vmatprep.subr.bf16.mxu1 %v13929_v6 }
 0x36d   :  { %v12377_v28 = vsel %vm4865_vm5, %v5910_v35, %v5911_v7 }
 0x36e   :  { %10091 = vmatmul.mubr.bf16.gmra.mrb[140].mxu1 %v12273_v55  ;;  %v10828_v55 = vld [vmem:[%s13952_s3 + $0x1a8] sm:$0xff]  }
 0x36f   :  { %10094 = vmatprep.mubr.msk.bf16.mxu1 %vm11005_vm4, %v13929_v6  ;;  %10111 = vmatpush3.bf16.msra.mxu1 %v10825_v36 }
 0x370   :  { %10112 = vmatprep.subr.bf16.mxu1 %v13929_v6 }
 0x371   :  { %v4962_v40 = vpop.f32.mrb[36].mxu1 }
 0x372   :  { %v9908_v57 = vpop.f32.mrb[37].mxu1 }
 0x373   :  { %v4965_v37 = vpop.f32.mrb[38].mxu1  ;;  %10113 = vmatpush3.bf16.msra.mxu1 %v10826_v23 }
 0x374   :  { %v9909_v7 = vpop.f32.mrb[39].mxu1  ;;  %10114 = vmatprep.subr.bf16.mxu1 %v13929_v6 }
 0x375   :  { %v10839_v7 = vld [vmem:[%s13952_s3 + $0x200] sm:$0xff]  }
 0x376   :  { %10095 = vmatmul.mubr.bf16.gmra.mrb[144].mxu1 %v12285_v45  ;;  %v10830_v45 = vld [vmem:[%s13952_s3 + $0x1b8] sm:$0xff]  }
 0x377   :  { %10098 = vmatprep.mubr.msk.bf16.mxu1 %vm11005_vm4, %v13929_v6  ;;  %10115 = vmatpush3.bf16.msra.mxu1 %v10827_v43 }
 0x378   :  { %10116 = vmatprep.subr.bf16.mxu1 %v13929_v6 }
 0x379   :  { %v4970_v46 = vpop.f32.mrb[40].mxu1 }
 0x37a   :  { %v9912_v48 = vpop.f32.mrb[41].mxu1 }
 0x37b   :  { %v4973_v49 = vpop.f32.mrb[42].mxu1  ;;  %10117 = vmatpush3.bf16.msra.mxu1 %v10828_v55 }
 0x37c   :  { %v9913_v38 = vpop.f32.mrb[43].mxu1  ;;  %10118 = vmatprep.subr.bf16.mxu1 %v13929_v6 }
 0x37e   :  { %10099 = vmatmul.mubr.bf16.gmra.mrb[148].mxu1 %v12306_v30 }
 0x37f   :  { %10102 = vmatprep.mubr.msk.bf16.mxu1 %vm11005_vm4, %v13929_v6  ;;  %10119 = vmatpush3.bf16.msra.mxu1 %v10829_v56 }
 0x380   :  { %10120 = vmatprep.subr.bf16.mxu1 %v13929_v6 }
 0x381   :  { %v4978_v63 = vpop.f32.mrb[44].mxu1 }
 0x382   :  { %v9916_v42 = vpop.f32.mrb[45].mxu1 }
 0x383   :  { %v4981_v53 = vpop.f32.mrb[46].mxu1  ;;  %10121 = vmatpush3.bf16.msra.mxu1 %v10830_v45 }
 0x384   :  { %v9917_v41 = vpop.f32.mrb[47].mxu1  ;;  %10142 = vmatprep.subr.bf16.mxu1 %v13929_v6 }
 0x386   :  { %10103 = vmatmul.mubr.bf16.gmra.mrb[152].mxu1 %v5606_v33 }
 0x387   :  { %10122 = vmatprep.mubr.msk.bf16.mxu1 %vm11005_vm4, %v13929_v6 }
 0x389   :  { %v4986_v30 = vpop.f32.mrb[48].mxu1 }
 0x38a   :  { %v9920_v54 = vpop.f32.mrb[49].mxu1 }
 0x38b   :  { %v12413_v58 = vpop.f32.mrb[50].mxu1 }
 0x38c   :  { %v9921_v44 = vpop.f32.mrb[51].mxu1 }
 0x38e   :  { %10123 = vmatmul.mubr.bf16.vlgmr.msra.gmra.mrb[156].mxu1 %v12315_v39 }
 0x38f   :  { %10126 = vmatprep.mubr.msk.bf16.mxu1 %vm11005_vm4, %v13929_v6  ;;  %10143 = vmatpush3.bf16.msra.mxu1 %v10831_v59  ;;  %v10844_v59 = vld [vmem:[%s13952_s3 + $0x228] sm:$0xff]  }
 0x390   :  { %10144 = vmatprep.subr.bf16.mxu1 %v13929_v6 }
 0x391   :  { %v12425_v33 = vpop.f32.mrb[52].mxu1 }
 0x392   :  { %v9924_v8 = vpop.f32.mrb[53].mxu1 }
 0x393   :  { %v4997_v60 = vpop.f32.mrb[54].mxu1  ;;  %10145 = vmatpush3.bf16.msra.mxu1 %v10832_v12 }
 0x394   :  { %v9925_v39 = vpop.f32.mrb[55].mxu1  ;;  %10146 = vmatprep.subr.bf16.mxu1 %v13929_v6 }
 0x395   :  { %v10846_v39 = vld [vmem:[%s13952_s3 + $0x238] sm:$0xff]  }
 0x396   :  { %10127 = vmatmul.mubr.bf16.gmra.mrb[160].mxu1 %v12330_v61  ;;  %v10835_v61 = vld [vmem:[%s13952_s3 + $0x1e0] sm:$0xff]  }
 0x397   :  { %10130 = vmatprep.mubr.msk.bf16.mxu1 %vm11005_vm4, %v13929_v6  ;;  %10147 = vmatpush3.bf16.msra.mxu1 %v10833_v25 }
 0x398   :  { %10148 = vmatprep.subr.bf16.mxu1 %v13929_v6 }
 0x399   :  { %v5082_v11 = vpop.f32.mrb[56].mxu1 }
 0x39a   :  { %v12438_v14 = vadd.f32 %v5082_v11, %v4962_v40  ;;  %v9944_v18 = vpop.f32.mrb[57].mxu1 }
 0x39b   :  { %v5085_v5 = vpop.f32.mrb[58].mxu1  ;;  %10149 = vmatpush3.bf16.msra.mxu1 %v10834_v0 }
 0x39c   :  { %v12443_v19 = vadd.f32 %v5085_v5, %v4965_v37  ;;  %v9945_v15 = vpop.f32.mrb[59].mxu1  ;;  %10150 = vmatprep.subr.bf16.mxu1 %v13929_v6 }
 0x39e   :  { %10131 = vmatmul.mubr.bf16.gmra.mrb[164].mxu1 %v12345_v9  ;;  %v10837_v9 = vld [vmem:[%s13952_s3 + $0x1f0] sm:$0xff]  }
 0x39f   :  { %10134 = vmatprep.mubr.msk.bf16.mxu1 %vm11005_vm4, %v13929_v6  ;;  %10151 = vmatpush3.bf16.msra.mxu1 %v10835_v61 }
 0x3a0   :  { %10152 = vmatprep.subr.bf16.mxu1 %v13929_v6 }
 0x3a1   :  { %v5090_v17 = vpop.f32.mrb[60].mxu1 }
 0x3a2   :  { %v12453_v47 = vadd.f32 %v5090_v17, %v4970_v46  ;;  %v9948_v27 = vpop.f32.mrb[61].mxu1 }
 0x3a3   :  { %v5093_v22 = vpop.f32.mrb[62].mxu1  ;;  %10153 = vmatpush3.bf16.msra.mxu1 %v10836_v20 }
 0x3a4   :  { %v12458_v24 = vadd.f32 %v5093_v22, %v4973_v49  ;;  %v9949_v29 = vpop.f32.mrb[63].mxu1  ;;  %10154 = vmatprep.subr.bf16.mxu1 %v13929_v6 }
 0x3a6   :  { %10135 = vmatmul.mubr.bf16.gmra.mrb[168].mxu1 %v12353_v52 }
 0x3a7   :  { %10138 = vmatprep.mubr.msk.bf16.mxu1 %vm11005_vm4, %v13929_v6  ;;  %10155 = vmatpush3.bf16.msra.mxu1 %v10837_v9 }
 0x3a8   :  { %10156 = vmatprep.subr.bf16.mxu1 %v13929_v6 }
 0x3a9   :  { %v5098_v34 = vpop.f32.mrb[64].mxu1 }
 0x3aa   :  { %v12468_v21 = vadd.f32 %v5098_v34, %v4978_v63  ;;  %v9952_v35 = vpop.f32.mrb[65].mxu1  ;;  %v10842_v63 = vld [vmem:[%s13952_s3 + $0x218] sm:$0xff]  }
 0x3ab   :  { %v5101_v36 = vpop.f32.mrb[66].mxu1  ;;  %10157 = vmatpush3.bf16.msra.mxu1 %v10838_v16 }
 0x3ac   :  { %v12470_v23 = vadd.f32 %v5101_v36, %v4981_v53  ;;  %v9953_v40 = vpop.f32.mrb[67].mxu1  ;;  %10178 = vmatprep.subr.bf16.mxu1 %v13929_v6 }
 0x3ae   :  { %10139 = vmatmul.mubr.bf16.gmra.mrb[172].mxu1 %v12367_v13  ;;  %v10840_v13 = vld [vmem:[%s13952_s3 + $0x208] sm:$0xff]  }
 0x3af   :  { %10158 = vmatprep.mubr.msk.bf16.mxu1 %vm11005_vm4, %v13929_v6 }
 0x3b1   :  { %v5106_v52 = vpop.f32.mrb[68].mxu1 }
 0x3b2   :  { %v5107_v57 = vadd.f32 %v5106_v52, %v4986_v30  ;;  %v9956_v37 = vpop.f32.mrb[69].mxu1 }
 0x3b3   :  { %v5109_v43 = vpop.f32.mrb[70].mxu1 }
 0x3b4   :  { %v5110_v55 = vadd.f32 %v5109_v43, %v12413_v58  ;;  %v9957_v46 = vpop.f32.mrb[71].mxu1 }
 0x3b6   :  { %10159 = vmatmul.mubr.bf16.vlgmr.msra.gmra.mrb[176].mxu1 %v12377_v28  ;;  %v10841_v28 = vld [vmem:[%s13952_s3 + $0x210] sm:$0xff]  }
 0x3b7   :  { %10162 = vmatprep.mubr.msk.bf16.mxu1 %vm11005_vm4, %v13929_v6  ;;  %10179 = vmatpush3.bf16.msra.mxu1 %v10839_v7 }
 0x3b8   :  { %10180 = vmatprep.subr.bf16.mxu1 %v13929_v6 }
 0x3b9   :  { %v5114_v48 = vpop.f32.mrb[72].mxu1 }
 0x3ba   :  { %v5115_v49 = vadd.f32 %v5114_v48, %v12425_v33  ;;  %v9960_v56 = vpop.f32.mrb[73].mxu1 }
 0x3bb   :  { %v5117_v38 = vpop.f32.mrb[74].mxu1  ;;  %10181 = vmatpush3.bf16.msra.mxu1 %v10840_v13 }
 0x3bc   :  { %v9961_v45 = vpop.f32.mrb[75].mxu1  ;;  %10182 = vmatprep.subr.bf16.mxu1 %v13929_v6 }
 0x3be   :  { %10163 = vmatmul.mubr.bf16.gmra.mrb[180].mxu1 %v11900_v3  ;;  %v10843_v3 = vld [vmem:[%s13952_s3 + $0x220] sm:$0xff]  }
 0x3bf   :  { %10166 = vmatprep.mubr.msk.bf16.mxu1 %vm11005_vm4, %v13929_v6  ;;  %10183 = vmatpush3.bf16.msra.mxu1 %v10841_v28 }
 0x3c0   :  { %10184 = vmatprep.subr.bf16.mxu1 %v13929_v6 }
 0x3c1   :  { %v5219_v42 = vpop.f32.mrb[76].mxu1 }
 0x3c2   :  { %v5257_v53 = vadd.f32 %v5219_v42, %v12438_v14  ;;  %v9980_v41 = vpop.f32.mrb[77].mxu1 }
 0x3c3   :  { %v5222_v30 = vpop.f32.mrb[78].mxu1  ;;  %10185 = vmatpush3.bf16.msra.mxu1 %v10842_v63 }
 0x3c4   :  { %v5258_v54 = vadd.f32 %v5222_v30, %v12443_v19  ;;  %v9981_v58 = vpop.f32.mrb[79].mxu1  ;;  %10186 = vmatprep.subr.bf16.mxu1 %v13929_v6 }
 0x3c6   :  { %10167 = vmatmul.mubr.bf16.gmra.mrb[184].mxu1 %v11910_v26  ;;  %v10845_v26 = vld [vmem:[%s13952_s3 + $0x230] sm:$0xff]  }
 0x3c7   :  { %10170 = vmatprep.mubr.msk.bf16.mxu1 %vm11005_vm4, %v13929_v6  ;;  %10187 = vmatpush3.bf16.msra.mxu1 %v10843_v3 }
 0x3c8   :  { %10188 = vmatprep.subr.bf16.mxu1 %v13929_v6 }
 0x3c9   :  { %v5227_v44 = vpop.f32.mrb[80].mxu1 }
 0x3ca   :  { %v5259_v12 = vadd.f32 %v5227_v44, %v12453_v47  ;;  %v9984_v33 = vpop.f32.mrb[81].mxu1 }
 0x3cb   :  { %v5230_v8 = vpop.f32.mrb[82].mxu1  ;;  %10189 = vmatpush3.bf16.msra.mxu1 %v10844_v59 }
 0x3cc   :  { %v5260_v60 = vadd.f32 %v5230_v8, %v12458_v24  ;;  %v9985_v25 = vpop.f32.mrb[83].mxu1  ;;  %10190 = vmatprep.subr.bf16.mxu1 %v13929_v6 }
 0x3ce   :  { %10171 = vmatmul.mubr.bf16.gmra.mrb[188].mxu1 %v11925_v2 }
 0x3cf   :  { %10174 = vmatprep.mubr.msk.bf16.mxu1 %vm11005_vm4, %v13929_v6  ;;  %10191 = vmatpush3.bf16.msra.mxu1 %v10845_v26 }
 0x3d0   :  { %10192 = vmatprep.subr.bf16.mxu1 %v13929_v6 }
 0x3d1   :  { %v5235_v0 = vpop.f32.mrb[84].mxu1 }
 0x3d2   :  { %v5261_v11 = vadd.f32 %v5235_v0, %v12468_v21  ;;  %v9988_v14 = vpop.f32.mrb[85].mxu1 }
 0x3d3   :  { %v5238_v18 = vpop.f32.mrb[86].mxu1  ;;  %10193 = vmatpush3.bf16.msra.mxu1 %v10846_v39 }
 0x3d4   :  { %v5262_v5 = vadd.f32 %v5238_v18, %v12470_v23  ;;  %v9989_v61 = vpop.f32.mrb[87].mxu1 }
 0x3d6   :  { %10175 = vmatmul.mubr.bf16.gmra.mrb[192].mxu1 %v5917_v4 }
 0x3d7   :  { %10194 = vmatprep.mubr.msk.bf16.mxu1 %vm11005_vm4, %v13929_v6 }
 0x3d9   :  { %v5243_v2 = vpop.f32.mrb[88].mxu1 }
 0x3da   :  { %v5263_v19 = vadd.f32 %v5243_v2, %v5107_v57  ;;  %v9992_v15 = vpop.f32.mrb[89].mxu1  ;;  %v4785_v57 = vmax.f32 %v11960_v50, 0.0 }
 0x3db   :  { %v5246_v20 = vpop.f32.mrb[90].mxu1 }
 0x3dc   :  { %v5264_v17 = vadd.f32 %v5246_v20, %v5110_v55  ;;  %v9993_v47 = vpop.f32.mrb[91].mxu1  ;;  %v4826_v13 = vpack.c.bf16 %v4785_v57, %v4785_v57 }
 0x3de   :  { %10195 = vmatmul.mubr.bf16.vlgmr.msra.gmra.mrb[196].mxu1 %v11929_v51 }
 0x3df   :  { %10198 = vmatprep.mubr.msk.bf16.mxu1 %vm11005_vm4, %v13929_v6 }
 0x3e1   :  { %v5251_v27 = vpop.f32.mrb[92].mxu1 }
 0x3e2   :  { %v5265_v22 = vadd.f32 %v5251_v27, %v5115_v49  ;;  %v9996_v9 = vpop.f32.mrb[93].mxu1 }
 0x3e3   :  { %v5254_v24 = vpop.f32.mrb[94].mxu1 }
 0x3e4   :  { %v9997_v32 = vpop.f32.mrb[95].mxu1 }
 0x3e6   :  { %10199 = vmatmul.mubr.bf16.gmra.mrb[200].mxu1 %v11939_v62 }
 0x3e7   :  { %10202 = vmatprep.mubr.msk.bf16.mxu1 %vm11005_vm4, %v13929_v6 }
 0x3e9   :  { %v5384_v4 = vpop.f32.mrb[96].mxu1 }
 0x3ea   :  { %v5422_v29 = vadd.f32 %v5384_v4, %v5257_v53  ;;  %v10016_v16 = vpop.f32.mrb[97].mxu1 }
 0x3eb   :  { %v5387_v34 = vpop.f32.mrb[98].mxu1 }
 0x3ec   :  { %v5423_v21 = vadd.f32 %v5387_v34, %v5258_v54  ;;  %v10017_v35 = vpop.f32.mrb[99].mxu1 }
 0x3ee   :  { %10203 = vmatmul.mubr.bf16.gmra.mrb[204].mxu1 %v11948_v1 }
 0x3ef   :  { %10206 = vmatprep.mubr.msk.bf16.mxu1 %vm11005_vm4, %v13929_v6 }
 0x3f1   :  { %v5392_v51 = vpop.f32.mrb[100].mxu1 }
 0x3f2   :  { %v5424_v36 = vadd.f32 %v5392_v51, %v5259_v12  ;;  %v10020_v23 = vpop.f32.mrb[101].mxu1 }
 0x3f3   :  { %v5395_v40 = vpop.f32.mrb[102].mxu1 }
 0x3f4   :  { %v5425_v52 = vadd.f32 %v5395_v40, %v5260_v60  ;;  %v10021_v62 = vpop.f32.mrb[103].mxu1 }
 0x3f6   :  { %10207 = vmatmul.mubr.bf16.gmra.mrb[208].mxu1 %v11957_v31 }
 0x3f7   :  { %10210 = vmatprep.mubr.msk.bf16.mxu1 %vm11005_vm4, %v13929_v6 }
 0x3f9   :  { %v5400_v37 = vpop.f32.mrb[104].mxu1 }
 0x3fa   :  { %v5426_v43 = vadd.f32 %v5400_v37, %v5261_v11  ;;  %v10024_v7 = vpop.f32.mrb[105].mxu1 }
 0x3fb   :  { %v5403_v1 = vpop.f32.mrb[106].mxu1 }
 0x3fc   :  { %v5427_v55 = vadd.f32 %v5403_v1, %v5262_v5  ;;  %v10025_v46 = vpop.f32.mrb[107].mxu1 }
 0x3fe   :  { %10211 = vmatmul.mubr.bf16.gmra.mrb[212].mxu1 %v4826_v13 }
 0x401   :  { %v5408_v48 = vpop.f32.mrb[108].mxu1 }
 0x402   :  { %v5428_v49 = vadd.f32 %v5408_v48, %v5263_v19  ;;  %v10028_v56 = vpop.f32.mrb[109].mxu1 }
 0x403   :  { %v5411_v38 = vpop.f32.mrb[110].mxu1 }
 0x404   :  { %v5429_v28 = vadd.f32 %v5411_v38, %v5264_v17  ;;  %v10029_v45 = vpop.f32.mrb[111].mxu1 }
 0x409   :  { %v5416_v31 = vpop.f32.mrb[112].mxu1 }
 0x40a   :  { %v5430_v63 = vadd.f32 %v5416_v31, %v5265_v22  ;;  %v10032_v42 = vpop.f32.mrb[113].mxu1 }
 0x40b   :  { %v5419_v53 = vpop.f32.mrb[114].mxu1 }
 0x40c   :  { %v10033_v41 = vpop.f32.mrb[115].mxu1 }
 0x411   :  { %v5530_v50 = vpop.f32.mrb[116].mxu1 }
 0x412   :  { %v5568_v30 = vadd.f32 %v5530_v50, %v5422_v29  ;;  %v10052_v3 = vpop.f32.mrb[117].mxu1 }
 0x413   :  { %v5533_v54 = vpop.f32.mrb[118].mxu1 }
 0x414   :  { %v5569_v58 = vadd.f32 %v5533_v54, %v5423_v21  ;;  %v10053_v59 = vpop.f32.mrb[119].mxu1 }
 0x419   :  { %v5538_v44 = vpop.f32.mrb[120].mxu1 }
 0x41a   :  { %v5570_v12 = vadd.f32 %v5538_v44, %v5424_v36  ;;  %v10056_v33 = vpop.f32.mrb[121].mxu1 }
 0x41b   :  { %v5541_v8 = vpop.f32.mrb[122].mxu1 }
 0x41c   :  { %v5571_v26 = vadd.f32 %v5541_v8, %v5425_v52  ;;  %v10057_v60 = vpop.f32.mrb[123].mxu1 }
 0x421   :  { %v5546_v25 = vpop.f32.mrb[124].mxu1 }
 0x422   :  { %v5572_v39 = vadd.f32 %v5546_v25, %v5426_v43  ;;  %v10060_v0 = vpop.f32.mrb[125].mxu1 }
 0x423   :  { %v5549_v11 = vpop.f32.mrb[126].mxu1 }
 0x424   :  { %v5573_v14 = vadd.f32 %v5549_v11, %v5427_v55  ;;  %v10061_v18 = vpop.f32.mrb[127].mxu1 }
 0x429   :  { %v5554_v5 = vpop.f32.mrb[128].mxu1 }
 0x42a   :  { %v5574_v61 = vadd.f32 %v5554_v5, %v5428_v49  ;;  %v10064_v2 = vpop.f32.mrb[129].mxu1 }
 0x42b   :  { %v5557_v19 = vpop.f32.mrb[130].mxu1 }
 0x42c   :  { %v5575_v15 = vadd.f32 %v5557_v19, %v5429_v28  ;;  %v10065_v20 = vpop.f32.mrb[131].mxu1 }
 0x431   :  { %v5562_v17 = vpop.f32.mrb[132].mxu1 }
 0x432   :  { %v5576_v47 = vadd.f32 %v5562_v17, %v5430_v63  ;;  %v10068_v27 = vpop.f32.mrb[133].mxu1 }
 0x433   :  { %v5565_v22 = vpop.f32.mrb[134].mxu1 }
 0x434   :  { %v10069_v9 = vpop.f32.mrb[135].mxu1 }
 0x439   :  { %v5695_v24 = vpop.f32.mrb[136].mxu1 }
 0x43a   :  { %v5733_v32 = vadd.f32 %v5695_v24, %v5568_v30  ;;  %v10088_v4 = vpop.f32.mrb[137].mxu1 }
 0x43b   :  { %v5698_v29 = vpop.f32.mrb[138].mxu1 }
 0x43c   :  { %v5734_v16 = vadd.f32 %v5698_v29, %v5569_v58  ;;  %v10089_v34 = vpop.f32.mrb[139].mxu1 }
 0x441   :  { %v5703_v21 = vpop.f32.mrb[140].mxu1 }
 0x442   :  { %v5735_v35 = vadd.f32 %v5703_v21, %v5570_v12  ;;  %v10092_v51 = vpop.f32.mrb[141].mxu1 }
 0x443   :  { %v5706_v36 = vpop.f32.mrb[142].mxu1 }
 0x444   :  { %v5736_v23 = vadd.f32 %v5706_v36, %v5571_v26  ;;  %v10093_v40 = vpop.f32.mrb[143].mxu1 }
 0x449   :  { %v5711_v52 = vpop.f32.mrb[144].mxu1 }
 0x44a   :  { %v5737_v62 = vadd.f32 %v5711_v52, %v5572_v39  ;;  %v10096_v57 = vpop.f32.mrb[145].mxu1 }
 0x44b   :  { %v5714_v37 = vpop.f32.mrb[146].mxu1 }
 0x44c   :  { %v5738_v43 = vadd.f32 %v5714_v37, %v5573_v14  ;;  %v10097_v7 = vpop.f32.mrb[147].mxu1 }
 0x451   :  { %v5719_v1 = vpop.f32.mrb[148].mxu1 }
 0x452   :  { %v5739_v55 = vadd.f32 %v5719_v1, %v5574_v61  ;;  %v10100_v46 = vpop.f32.mrb[149].mxu1 }
 0x453   :  { %v5722_v13 = vpop.f32.mrb[150].mxu1 }
 0x454   :  { %v5740_v48 = vadd.f32 %v5722_v13, %v5575_v15  ;;  %v10101_v49 = vpop.f32.mrb[151].mxu1 }
 0x459   :  { %v5727_v56 = vpop.f32.mrb[152].mxu1 }
 0x45a   :  { %v5741_v38 = vadd.f32 %v5727_v56, %v5576_v47  ;;  %v10104_v28 = vpop.f32.mrb[153].mxu1 }
 0x45b   :  { %v5730_v45 = vpop.f32.mrb[154].mxu1  ;;  %v8825_v28 = vld [vmem:[%s13954_s26] ss:$0 sm:$0xff] }
 0x45c   :  { %v10105_v31 = vpop.f32.mrb[155].mxu1 }
 0x461   :  { %v5841_v63 = vpop.f32.mrb[156].mxu1 }
 0x462   :  { %v5879_v42 = vadd.f32 %v5841_v63, %v5733_v32  ;;  %v10124_v53 = vpop.f32.mrb[157].mxu1 }
 0x463   :  { %v5844_v41 = vpop.f32.mrb[158].mxu1 }
 0x464   :  { %v5880_v50 = vadd.f32 %v5844_v41, %v5734_v16  ;;  %v10125_v30 = vpop.f32.mrb[159].mxu1 }
 0x469   :  { %v5849_v3 = vpop.f32.mrb[160].mxu1 }
 0x46a   :  { %v5881_v54 = vadd.f32 %v5849_v3, %v5735_v35  ;;  %v10128_v58 = vpop.f32.mrb[161].mxu1 }
 0x46b   :  { %v5852_v59 = vpop.f32.mrb[162].mxu1 }
 0x46c   :  { %v5882_v44 = vadd.f32 %v5852_v59, %v5736_v23  ;;  %v10129_v12 = vpop.f32.mrb[163].mxu1 }
 0x471   :  { %v5857_v33 = vpop.f32.mrb[164].mxu1 }
 0x472   :  { %v5883_v8 = vadd.f32 %v5857_v33, %v5737_v62  ;;  %v10132_v26 = vpop.f32.mrb[165].mxu1 }
 0x473   :  { %v5860_v60 = vpop.f32.mrb[166].mxu1 }
 0x474   :  { %v5884_v25 = vadd.f32 %v5860_v60, %v5738_v43  ;;  %v10133_v39 = vpop.f32.mrb[167].mxu1 }
 0x479   :  { %v5865_v0 = vpop.f32.mrb[168].mxu1 }
 0x47a   :  { %v5885_v11 = vadd.f32 %v5865_v0, %v5739_v55  ;;  %v10136_v14 = vpop.f32.mrb[169].mxu1 }
 0x47b   :  { %v5868_v18 = vpop.f32.mrb[170].mxu1 }
 0x47c   :  { %v5886_v5 = vadd.f32 %v5868_v18, %v5740_v48  ;;  %v10137_v61 = vpop.f32.mrb[171].mxu1 }
 0x481   :  { %v5873_v2 = vpop.f32.mrb[172].mxu1 }
 0x482   :  { %v5887_v19 = vadd.f32 %v5873_v2, %v5741_v38  ;;  %v10140_v15 = vpop.f32.mrb[173].mxu1 }
 0x483   :  { %v5876_v20 = vpop.f32.mrb[174].mxu1 }
 0x484   :  { %v10141_v17 = vpop.f32.mrb[175].mxu1 }
 0x489   :  { %v6006_v47 = vpop.f32.mrb[176].mxu1 }
 0x48a   :  { %v6044_v27 = vadd.f32 %v6006_v47, %v5879_v42  ;;  %v10160_v22 = vpop.f32.mrb[177].mxu1 }
 0x48b   :  { %v6009_v9 = vpop.f32.mrb[178].mxu1 }
 0x48c   :  { %v6045_v24 = vadd.f32 %v6009_v9, %v5880_v50  ;;  %v10161_v32 = vpop.f32.mrb[179].mxu1 }
 0x491   :  { %v6014_v4 = vpop.f32.mrb[180].mxu1 }
 0x492   :  { %v6046_v29 = vadd.f32 %v6014_v4, %v5881_v54  ;;  %v10164_v16 = vpop.f32.mrb[181].mxu1 }
 0x493   :  { %v6017_v34 = vpop.f32.mrb[182].mxu1 }
 0x494   :  { %v6047_v21 = vadd.f32 %v6017_v34, %v5882_v44  ;;  %v10165_v35 = vpop.f32.mrb[183].mxu1 }
 0x499   :  { %v6022_v51 = vpop.f32.mrb[184].mxu1 }
 0x49a   :  { %v6048_v36 = vadd.f32 %v6022_v51, %v5883_v8  ;;  %v10168_v23 = vpop.f32.mrb[185].mxu1 }
 0x49b   :  { %v6025_v40 = vpop.f32.mrb[186].mxu1 }
 0x49c   :  { %v6049_v52 = vadd.f32 %v6025_v40, %v5884_v25  ;;  %v10169_v62 = vpop.f32.mrb[187].mxu1 }
 0x4a1   :  { %v6030_v57 = vpop.f32.mrb[188].mxu1 }
 0x4a2   :  { %v6050_v37 = vadd.f32 %v6030_v57, %v5885_v11  ;;  %v10172_v43 = vpop.f32.mrb[189].mxu1 }
 0x4a3   :  { %v6033_v7 = vpop.f32.mrb[190].mxu1 }
 0x4a4   :  { %v6051_v1 = vadd.f32 %v6033_v7, %v5886_v5  ;;  %v10173_v55 = vpop.f32.mrb[191].mxu1 }
 0x4a9   :  { %v6038_v46 = vpop.f32.mrb[192].mxu1 }
 0x4aa   :  { %v6052_v13 = vadd.f32 %v6038_v46, %v5887_v19  ;;  %v10176_v48 = vpop.f32.mrb[193].mxu1 }
 0x4ab   :  { %v6041_v49 = vpop.f32.mrb[194].mxu1 }
 0x4ac   :  { %v10177_v56 = vpop.f32.mrb[195].mxu1 }
 0x4b1   :  { %v6152_v38 = vpop.f32.mrb[196].mxu1 }
 0x4b2   :  { %v6190_v45 = vadd.f32 %v6152_v38, %v6044_v27  ;;  %v10196_v31 = vpop.f32.mrb[197].mxu1 }
 0x4b3   :  { %v6155_v63 = vpop.f32.mrb[198].mxu1 }
 0x4b4   :  { %v12547_v42 = vadd.f32 %v8825_v28, %v6190_v45  ;;  %v6191_v53 = vadd.f32 %v6155_v63, %v6045_v24  ;;  %v10197_v41 = vpop.f32.mrb[199].mxu1 }
 0x4b6   :  { %13955 = vst [vmem:[#allocation9_spill] sm:$0xff] %v12547_v42  ;;  %v12549_v50 = vadd.f32 %v8825_v28, %v6191_v53  ;;  %v6218_v30 = vsel %vm6217_vm6, %v12547_v42, 0.0 }
 0x4b7   :  { %6219 = vadd.xlane.f32.xlu0 %v6218_v30 }
 0x4b8   :  { %13956 = vst [vmem:[#allocation10_spill] sm:$0xff] %v12549_v50  ;;  %v6221_v59 = vsel %vm6217_vm6, %v12549_v50, 0.0 }
 0x4b9   :  { %v6160_v3 = vpop.f32.mrb[200].mxu1 }
 0x4ba   :  { %v6192_v54 = vadd.f32 %v6160_v3, %v6046_v29  ;;  %v10200_v58 = vpop.f32.mrb[201].mxu1 }
 0x4bb   :  { %6222 = vadd.xlane.f32.xlu0 %v6221_v59  ;;  %v6163_v44 = vpop.f32.mrb[202].mxu1 }
 0x4bc   :  { %v12555_v12 = vadd.f32 %v8825_v28, %v6192_v54  ;;  %v6193_v33 = vadd.f32 %v6163_v44, %v6047_v21  ;;  %v10201_v8 = vpop.f32.mrb[203].mxu1 }
 0x4be   :  { %13957 = vst [vmem:[#allocation11_spill] sm:$0xff] %v12555_v12  ;;  %v12557_v26 = vadd.f32 %v8825_v28, %v6193_v33  ;;  %v6224_v60 = vsel %vm6217_vm6, %v12555_v12, 0.0 }
 0x4bf   :  { %6225 = vadd.xlane.f32.xlu1 %v6224_v60 }
 0x4c0   :  { %13958 = vst [vmem:[#allocation12_spill] sm:$0xff] %v12557_v26  ;;  %v6227_v11 = vsel %vm6217_vm6, %v12557_v26, 0.0 }
 0x4c1   :  { %v6168_v25 = vpop.f32.mrb[204].mxu1 }
 0x4c2   :  { %v6194_v39 = vadd.f32 %v6168_v25, %v6048_v36  ;;  %v10204_v0 = vpop.f32.mrb[205].mxu1 }
 0x4c3   :  { %6228 = vadd.xlane.f32.xlu1 %v6227_v11  ;;  %v6171_v14 = vpop.f32.mrb[206].mxu1 }
 0x4c4   :  { %v12563_v18 = vadd.f32 %v8825_v28, %v6194_v39  ;;  %v6195_v5 = vadd.f32 %v6171_v14, %v6049_v52  ;;  %v10205_v61 = vpop.f32.mrb[207].mxu1 }
 0x4c6   :  { %13959 = vst [vmem:[#allocation13_spill] sm:$0xff] %v12563_v18  ;;  %v12565_v2 = vadd.f32 %v8825_v28, %v6195_v5  ;;  %v6230_v19 = vsel %vm6217_vm6, %v12563_v18, 0.0 }
 0x4c7   :  { %6231 = vadd.xlane.f32.xlu0 %v6230_v19 }
 0x4c8   :  { %13960 = vst [vmem:[#allocation14_spill] sm:$0xff] %v12565_v2  ;;  %v6233_v15 = vsel %vm6217_vm6, %v12565_v2, 0.0 }
 0x4c9   :  { %6234 = vadd.xlane.f32.xlu1 %v6233_v15  ;;  %v6176_v20 = vpop.f32.mrb[208].mxu1 }
 0x4ca   :  { %v6196_v17 = vadd.f32 %v6176_v20, %v6050_v37  ;;  %v10208_v47 = vpop.f32.mrb[209].mxu1 }
 0x4cb   :  { %v6179_v27 = vpop.f32.mrb[210].mxu1 }
 0x4cc   :  { %v12571_v22 = vadd.f32 %v8825_v28, %v6196_v17  ;;  %v6197_v9 = vadd.f32 %v6179_v27, %v6051_v1  ;;  %v10209_v24 = vpop.f32.mrb[211].mxu1 }
 0x4ce   :  { %13961 = vst [vmem:[#allocation15_spill] sm:$0xff] %v12571_v22  ;;  %v12573_v32 = vadd.f32 %v8825_v28, %v6197_v9  ;;  %v6236_v4 = vsel %vm6217_vm6, %v12571_v22, 0.0 }
 0x4cf   :  { %6237 = vadd.xlane.f32.xlu0 %v6236_v4  ;;  %v6415_v4 = vld [vmem:[%s13964_s6 + $0x88] sm:$0xff] }
 0x4d0   :  { %13962 = vst [vmem:[#allocation16_spill] sm:$0xff] %v12573_v32  ;;  %v6239_v29 = vsel %vm6217_vm6, %v12573_v32, 0.0 }
 0x4d1   :  { %6240 = vadd.xlane.f32.xlu1 %v6239_v29  ;;  %v6184_v16 = vpop.f32.mrb[212].mxu1  ;;  %v6398_v29 = vld [vmem:[%s13964_s6] sm:$0xff] }
 0x4d2   :  { %v6198_v34 = vadd.f32 %v6184_v16, %v6052_v13  ;;  %v10212_v21 = vpop.f32.mrb[213].mxu1  ;;  %v6399_v16 = vld [vmem:[%s13964_s6 + $0x8] sm:$0xff] }
 0x4d3   :  { %v6187_v35 = vpop.f32.mrb[214].mxu1  ;;  %v6417_v21 = vld [vmem:[%s13964_s6 + $0x98] sm:$0xff] }
 0x4d4   :  { %v12579_v51 = vadd.f32 %v8825_v28, %v6198_v34  ;;  %v10213_v36 = vpop.f32.mrb[215].mxu1  ;;  %v6416_v34 = vld [vmem:[%s13964_s6 + $0x90] sm:$0xff]  ;;  %v6366_v35 = vld [vmem:[%s13965_s5] sm:$0xff] }
 0x4d5   :  { %10232 = vmatprep.mubr.msk.f32.mxu1 %vm6590_vm7, %v6366_v35  ;;  %v6400_v36 = vld [vmem:[%s13964_s6 + $0x10] sm:$0xff] }
 0x4d6   :  { %13963 = vst [vmem:[#allocation17_spill] sm:$0xff] %v12579_v51  ;;  %v6242_v23 = vsel %vm6217_vm6, %v12579_v51, 0.0 }
 0x4d7   :  { %6243 = vadd.xlane.f32.xlu0 %v6242_v23  ;;  %v6401_v23 = vld [vmem:[%s13964_s6 + $0x18] sm:$0xff] }
 0x544   :  { %v6220_v40 = vpop.xlane.xlu0 %6219 }
 0x545   :  { %v6246_v52 = vmul.f32 0.015625, %v6220_v40  ;;  %v6418_v40 = vld [vmem:[%s13964_s6 + $0xa0] sm:$0xff] }
 0x547   :  { %v12584_v62 = vsub.f32 %v12547_v42, %v6246_v52  ;;  %v6402_v52 = vld [vmem:[%s13964_s6 + $0x20] sm:$0xff] }
 0x548   :  { %v6223_v57 = vpop.xlane.xlu0 %6222 }
 0x549   :  { %v6247_v37 = vmul.f32 0.015625, %v6223_v57  ;;  %v6264_v43 = vmul.f32 %v12584_v62, %v12584_v62  ;;  %v6420_v57 = vld [vmem:[%s13964_s6 + $0xb0] sm:$0xff] }
 0x54b   :  { %v12589_v7 = vsub.f32 %v12549_v50, %v6247_v37  ;;  %v6273_v1 = vsel %vm6217_vm6, %v6264_v43, 0.0  ;;  %v6404_v37 = vld [vmem:[%s13964_s6 + $0x30] sm:$0xff]  ;;  %v6422_v43 = vld [vmem:[%s13964_s6 + $0xc0] sm:$0xff] }
 0x54c   :  { %v6226_v55 = vpop.xlane.xlu1 %6225  ;;  %6274 = vadd.xlane.f32.xlu1 %v6273_v1  ;;  %v6406_v1 = vld [vmem:[%s13964_s6 + $0x40] sm:$0xff] }
 0x54d   :  { %v6248_v46 = vmul.f32 0.015625, %v6226_v55  ;;  %v6265_v13 = vmul.f32 %v12589_v7, %v12589_v7  ;;  %v6414_v55 = vld [vmem:[%s13964_s6 + $0x80] sm:$0xff] }
 0x54f   :  { %v12595_v48 = vsub.f32 %v12555_v12, %v6248_v46  ;;  %v6276_v49 = vsel %vm6217_vm6, %v6265_v13, 0.0  ;;  %v6424_v46 = vld [vmem:[%s13964_s6 + $0xd0] sm:$0xff]  ;;  %v6419_v13 = vld [vmem:[%s13964_s6 + $0xa8] sm:$0xff] }
 0x550   :  { %v6229_v56 = vpop.xlane.xlu1 %6228  ;;  %6277 = vadd.xlane.f32.xlu0 %v6276_v49  ;;  %v6408_v49 = vld [vmem:[%s13964_s6 + $0x50] sm:$0xff] }
 0x551   :  { %v6249_v38 = vmul.f32 0.015625, %v6229_v56  ;;  %v6266_v28 = vmul.f32 %v12595_v48, %v12595_v48  ;;  %v6403_v56 = vld [vmem:[%s13964_s6 + $0x28] sm:$0xff] }
 0x553   :  { %v12601_v45 = vsub.f32 %v12557_v26, %v6249_v38  ;;  %v6279_v31 = vsel %vm6217_vm6, %v6266_v28, 0.0  ;;  %v6426_v38 = vld [vmem:[%s13964_s6 + $0xe0] sm:$0xff]  ;;  %v6421_v28 = vld [vmem:[%s13964_s6 + $0xb8] sm:$0xff] }
 0x554   :  { %v6232_v63 = vpop.xlane.xlu0 %6231  ;;  %6280 = vadd.xlane.f32.xlu1 %v6279_v31  ;;  %v6410_v31 = vld [vmem:[%s13964_s6 + $0x60] sm:$0xff] }
 0x555   :  { %v6250_v53 = vmul.f32 0.015625, %v6232_v63  ;;  %v6267_v41 = vmul.f32 %v12601_v45, %v12601_v45  ;;  %v6405_v63 = vld [vmem:[%s13964_s6 + $0x38] sm:$0xff] }
 0x556   :  { %v6235_v30 = vpop.xlane.xlu1 %6234 }
 0x557   :  { %v12607_v3 = vsub.f32 %v12563_v18, %v6250_v53  ;;  %v6251_v54 = vmul.f32 0.015625, %v6235_v30  ;;  %v6282_v58 = vsel %vm6217_vm6, %v6267_v41, 0.0  ;;  %v6428_v53 = vld [vmem:[%s13964_s6 + $0xf0] sm:$0xff]  ;;  %v6423_v41 = vld [vmem:[%s13964_s6 + $0xc8] sm:$0xff] }
 0x558   :  { %6283 = vadd.xlane.f32.xlu0 %v6282_v58  ;;  %v6412_v30 = vld [vmem:[%s13964_s6 + $0x70] sm:$0xff]  ;;  %v7218_v58 = vld [vmem:[%s13909_s9] sm:$0xff] }
 0x559   :  { %v12611_v59 = vsub.f32 %v12565_v2, %v6251_v54  ;;  %v6268_v44 = vmul.f32 %v12607_v3, %v12607_v3  ;;  %v6407_v54 = vld [vmem:[%s13964_s6 + $0x48] sm:$0xff] }
 0x55b   :  { %v6285_v33 = vsel %vm6217_vm6, %v6268_v44, 0.0  ;;  %v6269_v8 = vmul.f32 %v12611_v59, %v12611_v59  ;;  %v6425_v44 = vld [vmem:[%s13964_s6 + $0xd8] sm:$0xff] }
 0x55c   :  { %v6238_v60 = vpop.xlane.xlu0 %6237  ;;  %6286 = vadd.xlane.f32.xlu1 %v6285_v33  ;;  %v7220_v33 = vld [vmem:[%s13909_s9 + $0x10] sm:$0xff] }
 0x55d   :  { %v6252_v25 = vmul.f32 0.015625, %v6238_v60  ;;  %v6288_v39 = vsel %vm6217_vm6, %v6269_v8, 0.0  ;;  %v6409_v8 = vld [vmem:[%s13964_s6 + $0x58] sm:$0xff]  ;;  %v7222_v60 = vld [vmem:[%s13909_s9 + $0x20] sm:$0xff] }
 0x55e   :  { %v6241_v0 = vpop.xlane.xlu1 %6240  ;;  %6289 = vadd.xlane.f32.xlu0 %v6288_v39  ;;  %v7224_v39 = vld [vmem:[%s13909_s9 + $0x30] sm:$0xff] }
 0x55f   :  { %v12620_v11 = vsub.f32 %v12571_v22, %v6252_v25  ;;  %v6253_v14 = vmul.f32 0.015625, %v6241_v0  ;;  %v6427_v25 = vld [vmem:[%s13964_s6 + $0xe8] sm:$0xff] }
 0x560   :  { %v6411_v0 = vld [vmem:[%s13964_s6 + $0x68] sm:$0xff] }
 0x561   :  { %v12623_v5 = vsub.f32 %v12573_v32, %v6253_v14  ;;  %v6270_v61 = vmul.f32 %v12620_v11, %v12620_v11  ;;  %v7226_v14 = vld [vmem:[%s13909_s9 + $0x40] sm:$0xff] }
 0x563   :  { %v6291_v19 = vsel %vm6217_vm6, %v6270_v61, 0.0  ;;  %v6271_v15 = vmul.f32 %v12623_v5, %v12623_v5 }
 0x564   :  { %6292 = vadd.xlane.f32.xlu1 %v6291_v19  ;;  %v6244_v20 = vpop.xlane.xlu0 %6243 }
 0x565   :  { %v6254_v17 = vmul.f32 0.015625, %v6244_v20  ;;  %v6294_v47 = vsel %vm6217_vm6, %v6271_v15, 0.0  ;;  %v6429_v20 = vld [vmem:[%s13964_s6 + $0xf8] sm:$0xff] }
 0x566   :  { %6295 = vadd.xlane.f32.xlu0 %v6294_v47 }
 0x567   :  { %v12632_v27 = vsub.f32 %v12579_v51, %v6254_v17 }
 0x569   :  { %v6272_v9 = vmul.f32 %v12632_v27, %v12632_v27 }
 0x56b   :  { %v6297_v24 = vsel %vm6217_vm6, %v6272_v9, 0.0 }
 0x56c   :  { %6298 = vadd.xlane.f32.xlu1 %v6297_v24  ;;  %v6413_v24 = vld [vmem:[%s13964_s6 + $0x78] sm:$0xff] }
 0x57c   :  { %6512 = vperm.xlu0 %10680, %v6414_v55  }
 0x57d   :  { %6517 = vperm.xlu1 %10681, %v6415_v4  }
 0x580   :  { %6537 = vperm.xlu0 %10680, %v6419_v13  }
 0x581   :  { %6432 = vperm.xlu1 %10681, %v6398_v29  }
 0x584   :  { %6457 = vperm.xlu0 %10680, %v6403_v56  }
 0x585   :  { %6437 = vperm.xlu1 %10681, %v6399_v16  }
 0x588   :  { %6547 = vperm.xlu0 %10680, %v6421_v28   ;;  %v8827_v28 = vld [vmem:[%s13967_s1] ss:$0 sm:$0xff] }
 0x589   :  { %6522 = vperm.xlu1 %10681, %v6416_v34   ;;  %v7219_v34 = vld [vmem:[%s13909_s9 + $0x8] sm:$0xff] }
 0x58c   :  { %6467 = vperm.xlu0 %10680, %v6405_v63  }
 0x58d   :  { %6527 = vperm.xlu1 %10681, %v6417_v21  }
 0x590   :  { %6557 = vperm.xlu0 %10680, %v6423_v41  }
 0x591   :  { %6442 = vperm.xlu1 %10681, %v6400_v36  }
 0x594   :  { %6477 = vperm.xlu0 %10680, %v6407_v54  }
 0x595   :  { %6447 = vperm.xlu1 %10681, %v6401_v23  }
 0x598   :  { %6567 = vperm.xlu0 %10680, %v6425_v44  }
 0x599   :  { %6532 = vperm.xlu1 %10681, %v6418_v40   ;;  %v7221_v40 = vld [vmem:[%s13909_s9 + $0x18] sm:$0xff] }
 0x59c   :  { %6487 = vperm.xlu0 %10680, %v6409_v8  }
 0x59d   :  { %6452 = vperm.xlu1 %10681, %v6402_v52  }
 0x5a0   :  { %6577 = vperm.xlu0 %10680, %v6427_v25  }
 0x5a1   :  { %6542 = vperm.xlu1 %10681, %v6420_v57  }
 0x5a4   :  { %6497 = vperm.xlu0 %10680, %v6411_v0  }
 0x5a5   :  { %6462 = vperm.xlu1 %10681, %v6404_v37  }
 0x5a8   :  { %6587 = vperm.xlu0 %10680, %v6429_v20  }
 0x5a9   :  { %6552 = vperm.xlu1 %10681, %v6422_v43   ;;  %v12762_v43 = vld [vmem:[%s13966_s29] ss:$0 sm:$0xff] }
 0x5ac   :  { %6507 = vperm.xlu0 %10680, %v6413_v24  }
 0x5ad   :  { %6472 = vperm.xlu1 %10681, %v6406_v1  }
 0x5b0   :  { %7234 = vperm.xlu0 %10680, %v7219_v34  }
 0x5b1   :  { %6562 = vperm.xlu1 %10681, %v6424_v46  }
 0x5b4   :  { %7244 = vperm.xlu0 %10680, %v7221_v40  }
 0x5b5   :  { %6482 = vperm.xlu1 %10681, %v6408_v49   ;;  %v7223_v49 = vld [vmem:[%s13909_s9 + $0x28] sm:$0xff] }
 0x5b8   :  { %7254 = vperm.xlu0 %10680, %v7223_v49   ;;  %v6368_v49 = vld [vmem:[%s13965_s5 + $0x10] sm:$0xff] }
 0x5b9   :  { %6572 = vperm.xlu1 %10681, %v6426_v38  }
 0x5bd   :  { %6492 = vperm.xlu1 %10681, %v6410_v31  }
 0x5c1   :  { %6582 = vperm.xlu1 %10681, %v6428_v53   ;;  %v7225_v53 = vld [vmem:[%s13909_s9 + $0x38] sm:$0xff] }
 0x5c2   :  { %7264 = vperm.xlu0 %10680, %v7225_v53   ;;  %v6377_v53 = vld [vmem:[%s13965_s5 + $0x58] sm:$0xff] }
 0x5c5   :  { %6502 = vperm.xlu1 %10681, %v6412_v30  }
 0x5c9   :  { %7229 = vperm.xlu1 %10681, %v7218_v58  }
 0x5cd   :  { %7239 = vperm.xlu1 %10681, %v7220_v33  }
 0x5d1   :  { %7249 = vperm.xlu1 %10681, %v7222_v60  }
 0x5d5   :  { %7259 = vperm.xlu1 %10681, %v7224_v39  }
 0x5d9   :  { %v6275_v61 = vpop.xlane.xlu1 %6274  ;;  %7269 = vperm.xlu1 %10681, %v7226_v14  }
 0x5da   :  { %v6300_v19 = vmul.f32 0.015625, %v6275_v61 }
 0x5dc   :  { %v6309_v15 = vadd.f32 1e-05, %v6300_v19 }
 0x5dd   :  { %v6278_v17 = vpop.xlane.xlu0 %6277 }
 0x5de   :  { %10847 = vrsqrt.f32 %v6309_v15  ;;  %v6301_v47 = vmul.f32 0.015625, %v6278_v17 }
 0x5e0   :  { %v6310_v9 = vadd.f32 1e-05, %v6301_v47 }
 0x5e1   :  { %v6281_v4 = vpop.xlane.xlu1 %6280 }
 0x5e2   :  { %10849 = vrsqrt.f32 %v6310_v9  ;;  %v6302_v29 = vmul.f32 0.015625, %v6281_v4 }
 0x5e4   :  { %v6311_v16 = vadd.f32 1e-05, %v6302_v29 }
 0x5e5   :  { %v6284_v21 = vpop.xlane.xlu0 %6283 }
 0x5e6   :  { %10851 = vrsqrt.f32 %v6311_v16  ;;  %v6303_v35 = vmul.f32 0.015625, %v6284_v21 }
 0x5e8   :  { %v10848_v36 = vpop.eup %10847  ;;  %v6312_v23 = vadd.f32 1e-05, %v6303_v35 }
 0x5e9   :  { %v6287_v52 = vpop.xlane.xlu1 %6286  ;;  %v6327_v57 = vmul.f32 %v10848_v36, %v12584_v62 }
 0x5ea   :  { %10853 = vrsqrt.f32 %v6312_v23  ;;  %v6304_v37 = vmul.f32 0.015625, %v6287_v52 }
 0x5eb   :  { %v6290_v1 = vpop.xlane.xlu0 %6289  ;;  %v6342_v62 = vmul.f32 %v12762_v43, %v6327_v57 }
 0x5ec   :  { %v10850_v55 = vpop.eup %10849  ;;  %v6313_v46 = vadd.f32 1e-05, %v6304_v37  ;;  %v6305_v13 = vmul.f32 0.015625, %v6290_v1 }
 0x5ed   :  { %v6328_v56 = vmul.f32 %v10850_v55, %v12589_v7  ;;  %v6357_v30 = vadd.f32 %v8827_v28, %v6342_v62  ;;  %v6372_v62 = vld [vmem:[%s13965_s5 + $0x30] sm:$0xff] }
 0x5ee   :  { %10855 = vrsqrt.f32 %v6313_v46  ;;  %v6314_v38 = vadd.f32 1e-05, %v6305_v13 }
 0x5ef   :  { %v6343_v31 = vmul.f32 %v12762_v43, %v6328_v56  ;;  %v6371_v56 = vld [vmem:[%s13965_s5 + $0x28] sm:$0xff] }
 0x5f0   :  { %v10852_v63 = vpop.eup %10851  ;;  %10857 = vrsqrt.f32 %v6314_v38  ;;  %v6373_v38 = vld [vmem:[%s13965_s5 + $0x38] sm:$0xff] }
 0x5f1   :  { %v6293_v41 = vpop.xlane.xlu1 %6292  ;;  %v6358_v7 = vadd.f32 %v8827_v28, %v6343_v31  ;;  %v6329_v54 = vmul.f32 %v10852_v63, %v12595_v48  ;;  %v6375_v31 = vld [vmem:[%s13965_s5 + $0x48] sm:$0xff]  ;;  %v6376_v63 = vld [vmem:[%s13965_s5 + $0x50] sm:$0xff] }
 0x5f2   :  { %v6306_v58 = vmul.f32 0.015625, %v6293_v41  ;;  %v6378_v41 = vld [vmem:[%s13965_s5 + $0x60] sm:$0xff] }
 0x5f3   :  { %v6296_v44 = vpop.xlane.xlu0 %6295  ;;  %v10320_v33 = vpack.c.bf16 %v6358_v7, %v6357_v30  ;;  %v6344_v0 = vmul.f32 %v12762_v43, %v6329_v54  ;;  %v6379_v30 = vld [vmem:[%s13965_s5 + $0x68] sm:$0xff]  ;;  %v6380_v7 = vld [vmem:[%s13965_s5 + $0x70] sm:$0xff]  ;;  %v6381_v54 = vld [vmem:[%s13965_s5 + $0x78] sm:$0xff] }
 0x5f4   :  { %v10854_v8 = vpop.eup %10853  ;;  %v6315_v60 = vadd.f32 1e-05, %v6306_v58  ;;  %v6307_v25 = vmul.f32 0.015625, %v6296_v44  ;;  %v6382_v58 = vld [vmem:[%s13965_s5 + $0x80] sm:$0xff]  ;;  %v6383_v44 = vld [vmem:[%s13965_s5 + $0x88] sm:$0xff] }
 0x5f5   :  { %10321 = vmatprep.subr.bf16.mxu1 %v10320_v33  ;;  %v6330_v39 = vmul.f32 %v10854_v8, %v12601_v45  ;;  %v6359_v15 = vadd.f32 %v8827_v28, %v6344_v0  ;;  %v6385_v8 = vld [vmem:[%s13965_s5 + $0x98] sm:$0xff] }
 0x5f6   :  { %10859 = vrsqrt.f32 %v6315_v60  ;;  %v6316_v14 = vadd.f32 1e-05, %v6307_v25  ;;  %10323 = vmatpush3.bf16.msra.mxu1 %v10320_v33  ;;  %v6384_v33 = vld [vmem:[%s13965_s5 + $0x90] sm:$0xff]  ;;  %v6386_v60 = vld [vmem:[%s13965_s5 + $0xa0] sm:$0xff]  ;;  %v6387_v25 = vld [vmem:[%s13965_s5 + $0xa8] sm:$0xff] }
 0x5f7   :  { %v6345_v61 = vmul.f32 %v12762_v43, %v6330_v39  ;;  %v6388_v39 = vld [vmem:[%s13965_s5 + $0xb0] sm:$0xff]  ;;  %v6389_v0 = vld [vmem:[%s13965_s5 + $0xb8] sm:$0xff] }
 0x5f8   :  { %v10856_v19 = vpop.eup %10855  ;;  %10861 = vrsqrt.f32 %v6316_v14  ;;  %v6390_v14 = vld [vmem:[%s13965_s5 + $0xc0] sm:$0xff] }
 0x5f9   :  { %v6299_v48 = vpop.xlane.xlu1 %6298  ;;  %v6360_v20 = vadd.f32 %v8827_v28, %v6345_v61  ;;  %v6331_v17 = vmul.f32 %v10856_v19, %v12607_v3  ;;  %v6391_v61 = vld [vmem:[%s13965_s5 + $0xc8] sm:$0xff]  ;;  %v6392_v19 = vld [vmem:[%s13965_s5 + $0xd0] sm:$0xff] }
 0x5fa   :  { %v10858_v47 = vpop.eup %10857  ;;  %v6308_v9 = vmul.f32 0.015625, %v6299_v48  ;;  %v6393_v48 = vld [vmem:[%s13965_s5 + $0xd8] sm:$0xff] }
 0x5fb   :  { %v10324_v24 = vpack.c.bf16 %v6360_v20, %v6359_v15  ;;  %v6332_v4 = vmul.f32 %v10858_v47, %v12611_v59  ;;  %v6346_v45 = vmul.f32 %v12762_v43, %v6331_v17  ;;  %v6394_v15 = vld [vmem:[%s13965_s5 + $0xe0] sm:$0xff]  ;;  %v6395_v20 = vld [vmem:[%s13965_s5 + $0xe8] sm:$0xff]  ;;  %v6396_v17 = vld [vmem:[%s13965_s5 + $0xf0] sm:$0xff] }
 0x5fc   :  { %v6317_v29 = vadd.f32 1e-05, %v6308_v9  ;;  %v6397_v47 = vld [vmem:[%s13965_s5 + $0xf8] sm:$0xff] }
 0x5fd   :  { %10325 = vmatprep.subr.bf16.mxu1 %v10324_v24  ;;  %v6347_v16 = vmul.f32 %v12762_v43, %v6332_v4  ;;  %v6361_v34 = vadd.f32 %v8827_v28, %v6346_v45  ;;  %v12914_v9 = vpop.permute.xlu1 %6517 }
 0x5fe   :  { %10863 = vrsqrt.f32 %v6317_v29  ;;  %10327 = vmatpush3.bf16.msra.mxu1 %v10324_v24 }
 0x5ff   :  { %v6362_v21 = vadd.f32 %v8827_v28, %v6347_v16 }
 0x600   :  { %v10860_v35 = vpop.eup %10859 }
 0x601   :  { %v10328_v36 = vpack.c.bf16 %v6362_v21, %v6361_v34  ;;  %v6333_v23 = vmul.f32 %v10860_v35, %v12620_v11  ;;  %v6433_v24 = vpop.permute.xlu1 %6432  ;;  %v12920_v34 = vpop.permute.xlu0 %6512 }
 0x602   :  { %v10862_v3 = vpop.eup %10861 }
 0x603   :  { %10329 = vmatprep.subr.bf16.mxu1 %v10328_v36  ;;  %v6334_v40 = vmul.f32 %v10862_v3, %v12623_v5  ;;  %v6348_v59 = vmul.f32 %v12762_v43, %v6333_v23  ;;  %v6367_v5 = vld [vmem:[%s13965_s5 + $0x8] sm:$0xff] }
 0x604   :  { %10331 = vmatpush3.bf16.msra.mxu1 %v10328_v36 }
 0x605   :  { %v6349_v52 = vmul.f32 %v12762_v43, %v6334_v40  ;;  %v6363_v57 = vadd.f32 %v8827_v28, %v6348_v59  ;;  %v6438_v4 = vpop.permute.xlu1 %6437  ;;  %v12922_v35 = vpop.permute.xlu0 %6537 }
 0x607   :  { %v6364_v37 = vadd.f32 %v8827_v28, %v6349_v52  ;;  %v7201_v52 = vld [vmem:[%s13908_s8 + $0x8] sm:$0xff] }
 0x608   :  { %v10864_v1 = vpop.eup %10863 }
 0x609   :  { %v10332_v55 = vpack.c.bf16 %v6364_v37, %v6363_v57  ;;  %v6335_v46 = vmul.f32 %v10864_v1, %v12632_v27  ;;  %v6369_v27 = vld [vmem:[%s13965_s5 + $0x18] sm:$0xff]  ;;  %v12916_v45 = vpop.permute.xlu1 %6522  ;;  %v6458_v23 = vpop.permute.xlu0 %6457 }
 0x60b   :  { %10333 = vmatprep.subr.bf16.mxu1 %v10332_v55  ;;  %v6350_v13 = vmul.f32 %v12762_v43, %v6335_v46  ;;  %v6370_v43 = vld [vmem:[%s13965_s5 + $0x20] sm:$0xff] }
 0x60c   :  { %10335 = vmatpush3.bf16.msra.mxu1 %v10332_v55 }
 0x60d   :  { %v6365_v11 = vadd.f32 %v8827_v28, %v6350_v13  ;;  %v6374_v28 = vld [vmem:[%s13965_s5 + $0x40] sm:$0xff]  ;;  %v12918_v29 = vpop.permute.xlu1 %6527  ;;  %v12926_v40 = vpop.permute.xlu0 %6547 }
 0x60f   :  { %10230 = vmatprep.subr.mxu1 %v6365_v11 }
 0x610   :  { %10231 = vmatpush3.msra.mxu1 %v6365_v11 }
 0x611   :  { %10233 = vmatmul.mubr.msk.f32.vlgmr.msra.gmra.mrb[216].mxu1 %vm6590_vm7, %v6367_v5  ;;  %v6443_v16 = vpop.permute.xlu1 %6442  ;;  %v6468_v57 = vpop.permute.xlu0 %6467 }
 0x612   :  { %10235 = vmatprep.mubr.msk.f32.mxu1 %vm6590_vm7, %v6368_v49 }
 0x615   :  { %10236 = vmatmul.mubr.msk.f32.gmra.mrb[218].mxu1 %vm6590_vm7, %v6369_v27  ;;  %v6448_v21 = vpop.permute.xlu1 %6447  ;;  %v12933_v1 = vpop.permute.xlu0 %6557 }
 0x616   :  { %10238 = vmatprep.mubr.msk.f32.mxu1 %vm6590_vm7, %v6370_v43 }
 0x619   :  { %10239 = vmatmul.mubr.msk.f32.gmra.mrb[220].mxu1 %vm6590_vm7, %v6371_v56  ;;  %v12924_v36 = vpop.permute.xlu1 %6532  ;;  %v6478_v46 = vpop.permute.xlu0 %6477 }
 0x61a   :  { %10241 = vmatprep.mubr.msk.f32.mxu1 %vm6590_vm7, %v6372_v62 }
 0x61d   :  { %10242 = vmatmul.mubr.msk.f32.gmra.mrb[222].mxu1 %vm6590_vm7, %v6373_v38  ;;  %v6453_v3 = vpop.permute.xlu1 %6452  ;;  %v12939_v11 = vpop.permute.xlu0 %6567 }
 0x61e   :  { %10244 = vmatprep.mubr.msk.f32.mxu1 %vm6590_vm7, %v6374_v28 }
 0x621   :  { %10245 = vmatmul.mubr.msk.f32.gmra.mrb[224].mxu1 %vm6590_vm7, %v6375_v31  ;;  %v12928_v59 = vpop.permute.xlu1 %6542  ;;  %v12943_v38 = vpop.permute.xlu0 %6487 }
 0x622   :  { %10247 = vmatprep.mubr.msk.f32.mxu1 %vm6590_vm7, %v6376_v63 }
 0x625   :  { %10248 = vmatmul.mubr.msk.f32.gmra.mrb[226].mxu1 %vm6590_vm7, %v6377_v53  ;;  %v6463_v37 = vpop.permute.xlu1 %6462 }
 0x626   :  { %10250 = vmatprep.mubr.msk.f32.mxu1 %vm6590_vm7, %v6378_v41 }
 0x629   :  { %10251 = vmatmul.mubr.msk.f32.gmra.mrb[228].mxu1 %vm6590_vm7, %v6379_v30  ;;  %v12935_v55 = vpop.permute.xlu1 %6552 }
 0x62a   :  { %10253 = vmatprep.mubr.msk.f32.mxu1 %vm6590_vm7, %v6380_v7 }
 0x62d   :  { %10254 = vmatmul.mubr.msk.f32.gmra.mrb[230].mxu1 %vm6590_vm7, %v6381_v54  ;;  %v12937_v13 = vpop.permute.xlu1 %6472 }
 0x62e   :  { %10256 = vmatprep.mubr.msk.f32.mxu1 %vm6590_vm7, %v6382_v58 }
 0x631   :  { %10257 = vmatmul.mubr.msk.f32.gmra.mrb[232].mxu1 %vm6590_vm7, %v6383_v44  ;;  %v12941_v5 = vpop.permute.xlu1 %6562 }
 0x632   :  { %10259 = vmatprep.mubr.msk.f32.mxu1 %vm6590_vm7, %v6384_v33 }
 0x635   :  { %10260 = vmatmul.mubr.msk.f32.gmra.mrb[234].mxu1 %vm6590_vm7, %v6385_v8  ;;  %v12945_v63 = vpop.permute.xlu1 %6482 }
 0x636   :  { %10262 = vmatprep.mubr.msk.f32.mxu1 %vm6590_vm7, %v6386_v60 }
 0x639   :  { %10263 = vmatmul.mubr.msk.f32.gmra.mrb[236].mxu1 %vm6590_vm7, %v6387_v25 }
 0x63a   :  { %10265 = vmatprep.mubr.msk.f32.mxu1 %vm6590_vm7, %v6388_v39 }
 0x63d   :  { %10266 = vmatmul.mubr.msk.f32.gmra.mrb[238].mxu1 %vm6590_vm7, %v6389_v0 }
 0x63e   :  { %10268 = vmatprep.mubr.msk.f32.mxu1 %vm6590_vm7, %v6390_v14 }
 0x641   :  { %10269 = vmatmul.mubr.msk.f32.gmra.mrb[240].mxu1 %vm6590_vm7, %v6391_v61 }
 0x642   :  { %10271 = vmatprep.mubr.msk.f32.mxu1 %vm6590_vm7, %v6392_v19  ;;  %v12947_v19 = vpop.permute.xlu0 %6577 }
 0x645   :  { %10272 = vmatmul.mubr.msk.f32.gmra.mrb[242].mxu1 %vm6590_vm7, %v6393_v48 }
 0x646   :  { %10274 = vmatprep.mubr.msk.f32.mxu1 %vm6590_vm7, %v6394_v15 }
 0x649   :  { %10275 = vmatmul.mubr.msk.f32.gmra.mrb[244].mxu1 %vm6590_vm7, %v6395_v20  ;;  %v12949_v20 = vpop.permute.xlu1 %6572 }
 0x64a   :  { %10277 = vmatprep.mubr.msk.f32.mxu1 %vm6590_vm7, %v6396_v17 }
 0x64d   :  { %10278 = vmatmul.mubr.msk.f32.gmra.mrb[246].mxu1 %vm6590_vm7, %v6397_v47 }
 0x64e   :  { %7336 = vmatprep.mubr.f32.mxu1 %v7201_v52 }
 0x6e4   :  { %v10234_v49 = vpop.f32.mrb[216].mxu1 }
 0x6e5   :  { %v6759_v27 = vadd.f32 %v10234_v49, %v6438_v4  ;;  %v6753_v43 = vpop.f32.mrb[217].mxu1 }
 0x6e6   :  { %v6754_v56 = vadd.f32 %v6753_v43, %v6433_v24 }
 0x6e7   :  { %v6945_v62 = vmul.f32 0.044715, %v6759_v27  ;;  %v12951_v52 = vmul.f32 0.5, %v6759_v27 }
 0x6e8   :  { %v6944_v28 = vmul.f32 0.044715, %v6754_v56  ;;  %v10237_v31 = vpop.f32.mrb[218].mxu1 }
 0x6e9   :  { %v6977_v53 = vmul.f32 %v6945_v62, %v6759_v27  ;;  %v6769_v41 = vadd.f32 %v10237_v31, %v6448_v21  ;;  %v6763_v30 = vpop.f32.mrb[219].mxu1 }
 0x6ea   :  { %v6976_v7 = vmul.f32 %v6944_v28, %v6754_v56  ;;  %v6764_v54 = vadd.f32 %v6763_v30, %v6443_v16  ;;  %v12953_v28 = vmul.f32 0.5, %v6754_v56 }
 0x6eb   :  { %v7009_v58 = vmul.f32 %v6977_v53, %v6759_v27  ;;  %v6947_v44 = vmul.f32 0.044715, %v6769_v41 }
 0x6ec   :  { %v7008_v33 = vmul.f32 %v6976_v7, %v6754_v56  ;;  %v6946_v8 = vmul.f32 0.044715, %v6764_v54  ;;  %v10240_v60 = vpop.f32.mrb[220].mxu1 }
 0x6ed   :  { %v7041_v25 = vadd.f32 %v7009_v58, %v6759_v27  ;;  %v6979_v39 = vmul.f32 %v6947_v44, %v6769_v41  ;;  %v6779_v0 = vadd.f32 %v10240_v60, %v6458_v23  ;;  %v6773_v14 = vpop.f32.mrb[221].mxu1 }
 0x6ee   :  { %v7040_v61 = vadd.f32 %v7008_v33, %v6754_v56  ;;  %v6978_v48 = vmul.f32 %v6946_v8, %v6764_v54  ;;  %v6774_v15 = vadd.f32 %v6773_v14, %v6453_v3  ;;  %v12955_v3 = vmul.f32 0.5, %v6769_v41  ;;  %v6498_v8 = vpop.permute.xlu0 %6497 }
 0x6ef   :  { %v7073_v17 = vmul.f32 0.7978846, %v7041_v25  ;;  %v7011_v47 = vmul.f32 %v6979_v39, %v6769_v41  ;;  %v6949_v24 = vmul.f32 0.044715, %v6779_v0  ;;  %v12957_v39 = vmul.f32 0.5, %v6764_v54 }
 0x6f0   :  { %v7010_v4 = vmul.f32 %v6978_v48, %v6764_v54  ;;  %v6948_v16 = vmul.f32 0.044715, %v6774_v15  ;;  %v10243_v21 = vpop.f32.mrb[222].mxu1  ;;  %v7072_v31 = vmul.f32 0.7978846, %v7040_v61 }
 0x6f1   :  { %v7043_v49 = vadd.f32 %v7011_v47, %v6769_v41  ;;  %v6981_v43 = vmul.f32 %v6949_v24, %v6779_v0  ;;  %v6789_v62 = vadd.f32 %v10243_v21, %v6468_v57  ;;  %v6783_v23 = vpop.f32.mrb[223].mxu1  ;;  %10865 = vtanh.f32 %v7073_v17  ;;  %v6493_v57 = vpop.permute.xlu1 %6492 }
 0x6f2   :  { %v6980_v53 = vmul.f32 %v6948_v16, %v6774_v15  ;;  %v6784_v30 = vadd.f32 %v6783_v23, %v6463_v37  ;;  %v7042_v7 = vadd.f32 %v7010_v4, %v6764_v54  ;;  %v12959_v47 = vmul.f32 0.5, %v6779_v0 }
 0x6f3   :  { %v7013_v58 = vmul.f32 %v6981_v43, %v6779_v0  ;;  %v6951_v44 = vmul.f32 0.044715, %v6789_v62  ;;  %v7075_v33 = vmul.f32 0.7978846, %v7043_v49  ;;  %10867 = vtanh.f32 %v7072_v31 }
 0x6f4   :  { %v7012_v60 = vmul.f32 %v6980_v53, %v6774_v15  ;;  %v6950_v27 = vmul.f32 0.044715, %v6784_v30  ;;  %v10246_v25 = vpop.f32.mrb[224].mxu1  ;;  %v7074_v24 = vmul.f32 0.7978846, %v7042_v7  ;;  %v12962_v21 = vmul.f32 0.5, %v6774_v15 }
 0x6f5   :  { %v7045_v14 = vadd.f32 %v7013_v58, %v6779_v0  ;;  %v6983_v56 = vmul.f32 %v6951_v44, %v6789_v62  ;;  %v6799_v48 = vadd.f32 %v10246_v25, %v6478_v46  ;;  %v6793_v61 = vpop.f32.mrb[225].mxu1  ;;  %10869 = vtanh.f32 %v7075_v33  ;;  %v12972_v33 = vpop.permute.xlu1 %6582 }
 0x6f6   :  { %v7044_v37 = vadd.f32 %v7012_v60, %v6774_v15  ;;  %v6982_v41 = vmul.f32 %v6950_v27, %v6784_v30  ;;  %v6794_v17 = vadd.f32 %v6793_v61, %v12937_v13  ;;  %v12964_v23 = vmul.f32 0.5, %v6789_v62  ;;  %v12967_v60 = vpop.permute.xlu0 %6587 }
 0x6f7   :  { %v7015_v4 = vmul.f32 %v6983_v56, %v6789_v62  ;;  %v6953_v16 = vmul.f32 0.044715, %v6799_v48  ;;  %v7077_v46 = vmul.f32 0.7978846, %v7045_v14  ;;  %10871 = vtanh.f32 %v7074_v24 }
 0x6f8   :  { %v7014_v54 = vmul.f32 %v6982_v41, %v6784_v30  ;;  %v6952_v49 = vmul.f32 0.044715, %v6794_v17  ;;  %v10249_v43 = vpop.f32.mrb[226].mxu1  ;;  %v7076_v44 = vmul.f32 0.7978846, %v7044_v37  ;;  %v12974_v56 = vmul.f32 0.5, %v6784_v30 }
 0x6f9   :  { %v7047_v53 = vadd.f32 %v7015_v4, %v6789_v62  ;;  %v6985_v0 = vmul.f32 %v6953_v16, %v6799_v48  ;;  %v6809_v31 = vadd.f32 %v10249_v43, %v12943_v38  ;;  %v6803_v58 = vpop.f32.mrb[227].mxu1  ;;  %v12977_v61 = vmul.f32 0.5, %v6794_v17 }
 0x6fa   :  { %v7046_v13 = vadd.f32 %v7014_v54, %v6784_v30  ;;  %v6984_v7 = vmul.f32 %v6952_v49, %v6794_v17  ;;  %v12970_v15 = vadd.f32 %v6803_v58, %v12945_v63  ;;  %v12979_v37 = vmul.f32 0.5, %v6799_v48  ;;  %v6508_v10 = vpop.permute.xlu0 %6507 }
 0x6fb   :  { %v7017_v27 = vmul.f32 %v6985_v0, %v6799_v48  ;;  %v6955_v25 = vmul.f32 0.044715, %v6809_v31  ;;  %v10866_v41 = vpop.eup %10865  ;;  %10873 = vtanh.f32 %v7077_v46  ;;  %v7079_v4 = vmul.f32 0.7978846, %v7047_v53 }
 0x6fc   :  { %v7016_v62 = vmul.f32 %v6984_v7, %v6794_v17  ;;  %v6954_v14 = vmul.f32 0.044715, %v12970_v15  ;;  %v10252_v38 = vpop.f32.mrb[228].mxu1  ;;  %10875 = vtanh.f32 %v7076_v44  ;;  %v7078_v24 = vmul.f32 0.7978846, %v7046_v13  ;;  %v6503_v13 = vpop.permute.xlu1 %6502 }
 0x6fd   :  { %v6987_v63 = vmul.f32 %v6955_v25, %v6809_v31  ;;  %v12981_v16 = vadd.f32 %v10252_v38, %v6498_v8  ;;  %v6813_v54 = vpop.f32.mrb[229].mxu1  ;;  %v7049_v43 = vadd.f32 %v7017_v27, %v6799_v48  ;;  %v12987_v7 = vmul.f32 0.5, %v6809_v31  ;;  %v10868_v6 = vpop.eup %10867 }
 0x6fe   :  { %v6986_v30 = vmul.f32 %v6954_v14, %v12970_v15  ;;  %v12984_v49 = vadd.f32 %v6813_v54, %v6493_v57  ;;  %v7048_v46 = vadd.f32 %v7016_v62, %v6794_v17  ;;  %v7137_v44 = vadd.f32 1.0, %v10866_v41 }
 0x6ff   :  { %v7019_v0 = vmul.f32 %v6987_v63, %v6809_v31  ;;  %v6957_v58 = vmul.f32 0.044715, %v12981_v16  ;;  %10877 = vtanh.f32 %v7079_v4  ;;  %v12994_v38 = vpop.eup %10869  ;;  %v7081_v54 = vmul.f32 0.7978846, %v7049_v43 }
 0x700   :  { %v7018_v53 = vmul.f32 %v6986_v30, %v12970_v15  ;;  %v6956_v8 = vmul.f32 0.044715, %v12984_v49  ;;  %v10255_v25 = vpop.f32.mrb[230].mxu1  ;;  %10879 = vtanh.f32 %v7078_v24  ;;  %v7080_v30 = vmul.f32 0.7978846, %v7048_v46 }
 0x701   :  { %v7051_v14 = vadd.f32 %v7019_v0, %v6809_v31  ;;  %v6989_v57 = vmul.f32 %v6957_v58, %v12981_v16  ;;  %v12992_v48 = vadd.f32 %v10255_v25, %v6508_v10  ;;  %v6823_v27 = vpop.f32.mrb[231].mxu1  ;;  %v7136_v31 = vadd.f32 1.0, %v10868_v6 }
 0x702   :  { %v7050_v63 = vadd.f32 %v7018_v53, %v12970_v15  ;;  %v6988_v17 = vmul.f32 %v6956_v8, %v12984_v49  ;;  %v12998_v62 = vadd.f32 %v6823_v27, %v6503_v13  ;;  %v13005_v24 = vmul.f32 %v7137_v44, %v12951_v52  ;;  %v10872_v53 = vpop.eup %10871 }
 0x703   :  { %v7021_v41 = vmul.f32 %v6989_v57, %v12981_v16  ;;  %v6959_v4 = vmul.f32 0.044715, %v12992_v48  ;;  %v7083_v25 = vmul.f32 0.7978846, %v7051_v14  ;;  %10881 = vtanh.f32 %v7081_v54 }
 0x704   :  { %v7020_v10 = vmul.f32 %v6988_v17, %v12984_v49  ;;  %v6958_v0 = vmul.f32 0.044715, %v12998_v62  ;;  %v10258_v58 = vpop.f32.mrb[232].mxu1  ;;  %v7082_v6 = vmul.f32 0.7978846, %v7050_v63  ;;  %10883 = vtanh.f32 %v7080_v30 }
 0x705   :  { %v7053_v8 = vadd.f32 %v7021_v41, %v12981_v16  ;;  %v6991_v43 = vmul.f32 %v6959_v4, %v12992_v48  ;;  %v13010_v13 = vadd.f32 %v10258_v58, %v12914_v9  ;;  %v6833_v57 = vpop.f32.mrb[233].mxu1  ;;  %v13017_v52 = vpop.eup %10873  ;;  %v13022_v41 = vmul.f32 %v7136_v31, %v12953_v28 }
 0x706   :  { %v7052_v46 = vadd.f32 %v7020_v10, %v12984_v49  ;;  %v6990_v27 = vmul.f32 %v6958_v0, %v12998_v62  ;;  %v13015_v17 = vadd.f32 %v6833_v57, %v12920_v34  ;;  %v13024_v9 = vpop.eup %10875  ;;  %10885 = vtanh.f32 %v7083_v25 }
 0x707   :  { %v7023_v44 = vmul.f32 %v6991_v43, %v12992_v48  ;;  %v6961_v14 = vmul.f32 0.044715, %v13010_v13  ;;  %v7085_v63 = vmul.f32 0.7978846, %v7053_v8  ;;  %10887 = vtanh.f32 %v7082_v6 }
 0x708   :  { %v7022_v4 = vmul.f32 %v6990_v27, %v12998_v62  ;;  %v6960_v10 = vmul.f32 0.044715, %v13015_v17  ;;  %v10261_v34 = vpop.f32.mrb[234].mxu1  ;;  %v7084_v0 = vmul.f32 0.7978846, %v7052_v46 }
 0x709   :  { %v6993_v54 = vmul.f32 %v6961_v14, %v13010_v13  ;;  %v13030_v58 = vadd.f32 %v10261_v34, %v12918_v29  ;;  %v6843_v43 = vpop.f32.mrb[235].mxu1  ;;  %v7055_v28 = vadd.f32 %v7023_v44, %v12992_v48  ;;  %v13037_v8 = vpop.eup %10877  ;;  %10889 = vtanh.f32 %v7085_v63 }
 0x70a   :  { %v6992_v31 = vmul.f32 %v6960_v10, %v13015_v17  ;;  %v13035_v30 = vadd.f32 %v6843_v43, %v12916_v45  ;;  %v7054_v57 = vadd.f32 %v7022_v4, %v12998_v62  ;;  %v13044_v27 = vpop.eup %10879  ;;  %v7138_v14 = vadd.f32 1.0, %v10872_v53 }
 0x70b   :  { %v7025_v25 = vmul.f32 %v6993_v54, %v13010_v13  ;;  %v6963_v46 = vmul.f32 0.044715, %v13030_v58  ;;  %10891 = vtanh.f32 %v7084_v0  ;;  %v7087_v43 = vmul.f32 0.7978846, %v7055_v28 }
 0x70c   :  { %v7024_v6 = vmul.f32 %v6992_v31, %v13015_v17  ;;  %v6962_v44 = vmul.f32 0.044715, %v13035_v30  ;;  %v10264_v45 = vpop.f32.mrb[236].mxu1  ;;  %v7086_v51 = vmul.f32 0.7978846, %v7054_v57  ;;  %v7139_v28 = vadd.f32 1.0, %v12994_v38 }
 0x70d   :  { %v6995_v10 = vmul.f32 %v6963_v46, %v13030_v58  ;;  %v13050_v4 = vadd.f32 %v10264_v45, %v12922_v35  ;;  %v6853_v34 = vpop.f32.mrb[237].mxu1  ;;  %v7057_v54 = vadd.f32 %v7025_v25, %v13010_v13 }
 0x70e   :  { %v6994_v29 = vmul.f32 %v6962_v44, %v13035_v30  ;;  %v13055_v63 = vadd.f32 %v6853_v34, %v12924_v36  ;;  %v7056_v31 = vadd.f32 %v7024_v6, %v13015_v17  ;;  %v13063_v44 = vpop.eup %10881 }
 0x70f   :  { %v7027_v53 = vmul.f32 %v6995_v10, %v13030_v58  ;;  %v6965_v0 = vmul.f32 0.044715, %v13050_v4  ;;  %v7089_v46 = vmul.f32 0.7978846, %v7057_v54  ;;  %v13070_v34 = vpop.eup %10883 }
 0x710   :  { %v7026_v35 = vmul.f32 %v6994_v29, %v13035_v30  ;;  %v6964_v45 = vmul.f32 0.044715, %v13055_v63  ;;  %v10267_v32 = vpop.f32.mrb[238].mxu1  ;;  %v7088_v25 = vmul.f32 0.7978846, %v7056_v31  ;;  %v13077_v31 = vpop.eup %10885 }
 0x711   :  { %v6997_v36 = vmul.f32 %v6965_v0, %v13050_v4  ;;  %v13067_v6 = vadd.f32 %v10267_v32, %v12926_v40  ;;  %v6863_v57 = vpop.f32.mrb[239].mxu1  ;;  %10893 = vtanh.f32 %v7089_v46  ;;  %v7059_v10 = vadd.f32 %v7027_v53, %v13030_v58  ;;  %v13083_v53 = vpop.eup %10887 }
 0x712   :  { %v6996_v29 = vmul.f32 %v6964_v45, %v13055_v63  ;;  %v13074_v54 = vadd.f32 %v6863_v57, %v12928_v59  ;;  %10895 = vtanh.f32 %v7088_v25  ;;  %v7058_v38 = vadd.f32 %v7026_v35, %v13035_v30 }
 0x713   :  { %10897 = vtanh.f32 %v7087_v43  ;;  %v7029_v32 = vmul.f32 %v6997_v36, %v13050_v4  ;;  %v7091_v40 = vmul.f32 0.7978846, %v7059_v10  ;;  %v13081_v0 = vmul.f32 %v7138_v14, %v12957_v39  ;;  %v13095_v14 = vpop.eup %10889 }
 0x714   :  { %v7028_v46 = vmul.f32 %v6996_v29, %v13055_v63  ;;  %v6966_v45 = vmul.f32 0.044715, %v13074_v54  ;;  %v10270_v59 = vpop.f32.mrb[240].mxu1  ;;  %v7090_v57 = vmul.f32 0.7978846, %v7058_v38  ;;  %v13088_v25 = vmul.f32 %v7139_v28, %v12955_v3 }
 0x715   :  { %v13091_v35 = vadd.f32 %v10270_v59, %v12933_v1  ;;  %v6873_v43 = vpop.f32.mrb[241].mxu1  ;;  %v6928_v36 = vmul.f32 0.5, %v13015_v17  ;;  %v6929_v39 = vmul.f32 0.5, %v13010_v13  ;;  %10899 = vtanh.f32 %v7091_v40  ;;  %v13103_v28 = vpop.eup %10891 }
 0x716   :  { %v6967_v10 = vmul.f32 0.044715, %v13067_v6  ;;  %v13099_v29 = vadd.f32 %v6873_v43, %v12935_v55  ;;  %10901 = vtanh.f32 %v7090_v57  ;;  %v6930_v17 = vmul.f32 0.5, %v13035_v30 }
 0x717   :  { %10903 = vtanh.f32 %v7086_v51  ;;  %v6969_v1 = vmul.f32 0.044715, %v13091_v35  ;;  %v7060_v13 = vadd.f32 %v7028_v46, %v13055_v63  ;;  %v6998_v38 = vmul.f32 %v6966_v45, %v13074_v54 }
 0x718   :  { %v10273_v40 = vpop.f32.mrb[242].mxu1  ;;  %v6931_v59 = vmul.f32 0.5, %v13030_v58  ;;  %v7061_v55 = vadd.f32 %v7029_v32, %v13050_v4  ;;  %v7140_v57 = vadd.f32 1.0, %v13024_v9  ;;  %v6968_v43 = vmul.f32 0.044715, %v13099_v29 }
 0x719   :  { %v13114_v3 = vadd.f32 %v10273_v40, %v12939_v11  ;;  %v6883_v51 = vpop.f32.mrb[243].mxu1  ;;  %v7092_v22 = vmul.f32 0.7978846, %v7060_v13  ;;  %v7141_v30 = vadd.f32 1.0, %v13017_v52  ;;  %v6999_v46 = vmul.f32 %v6967_v10, %v13067_v6 }
 0x71a   :  { %v13119_v45 = vadd.f32 %v6883_v51, %v12941_v5  ;;  %v7093_v2 = vmul.f32 0.7978846, %v7061_v55  ;;  %v13122_v58 = vmul.f32 %v7140_v57, %v12962_v21  ;;  %v7001_v9 = vmul.f32 %v6969_v1, %v13091_v35 }
 0x71b   :  { %v10894_v32 = vpop.eup %10893  ;;  %v6971_v18 = vmul.f32 0.044715, %v13114_v3  ;;  %10905 = vtanh.f32 %v7092_v22  ;;  %v13127_v11 = vmul.f32 %v7141_v30, %v12959_v47  ;;  %v7030_v52 = vmul.f32 %v6998_v38, %v13074_v54 }
 0x71c   :  { %v10896_v13 = vpop.eup %10895  ;;  %v10276_v10 = vpop.f32.mrb[244].mxu1  ;;  %v7153_v40 = vadd.f32 1.0, %v10894_v32  ;;  %v6932_v5 = vmul.f32 0.5, %v13055_v63  ;;  %10907 = vtanh.f32 %v7093_v2  ;;  %v7000_v21 = vmul.f32 %v6968_v43, %v13099_v29 }
 0x71d   :  { %v13131_v55 = vpop.eup %10897  ;;  %v13135_v1 = vadd.f32 %v10276_v10, %v12947_v19  ;;  %v6893_v57 = vpop.f32.mrb[245].mxu1  ;;  %v7152_v22 = vadd.f32 1.0, %v10896_v13  ;;  %v7031_v51 = vmul.f32 %v6999_v46, %v13067_v6  ;;  %v6970_v38 = vmul.f32 0.044715, %v13119_v45 }
 0x71e   :  { %v13142_v30 = vadd.f32 %v6893_v57, %v12949_v20  ;;  %v7185_v2 = vmul.f32 %v7153_v40, %v6929_v39  ;;  %v7033_v32 = vmul.f32 %v7001_v9, %v13091_v35  ;;  %v7003_v43 = vmul.f32 %v6971_v18, %v13114_v3 }
 0x71f   :  { %v10900_v63 = vpop.eup %10899  ;;  %v7184_v19 = vmul.f32 %v7152_v22, %v6928_v36  ;;  %v6933_v10 = vmul.f32 0.5, %v13050_v4  ;;  %v6973_v26 = vmul.f32 0.044715, %v13135_v1  ;;  %v7062_v50 = vadd.f32 %v7030_v52, %v13074_v54 }
 0x720   :  { %v10902_v13 = vpop.eup %10901  ;;  %v6972_v47 = vmul.f32 0.044715, %v13142_v30  ;;  %v10279_v46 = vpop.f32.mrb[246].mxu1  ;;  %v7155_v12 = vadd.f32 1.0, %v10900_v63  ;;  %v7032_v39 = vmul.f32 %v7000_v21, %v13099_v29  ;;  %v7002_v4 = vmul.f32 %v6970_v38, %v13119_v45 }
 0x721   :  { %v13150_v20 = vpop.eup %10903  ;;  %v13154_v9 = vadd.f32 %v10279_v46, %v12967_v60  ;;  %v6903_v18 = vpop.f32.mrb[247].mxu1  ;;  %v10336_v36 = vpack.c.bf16 %v7185_v2, %v7184_v19  ;;  %v7154_v40 = vadd.f32 1.0, %v10902_v13  ;;  %v7063_v63 = vadd.f32 %v7031_v51, %v13067_v6 }
 0x722   :  { %v13158_v57 = vadd.f32 %v6903_v18, %v12972_v33  ;;  %v7187_v22 = vmul.f32 %v7155_v12, %v6931_v59  ;;  %v7035_v52 = vmul.f32 %v7003_v43, %v13114_v3  ;;  %v13163_v21 = vmul.f32 0.5, %v13074_v54 }
 0x723   :  { %10337 = vmatprep.subr.bf16.mxu1 %v10336_v36  ;;  %v7186_v42 = vmul.f32 %v7154_v40, %v6930_v17  ;;  %v7094_v60 = vmul.f32 0.7978846, %v7062_v50  ;;  %v7005_v46 = vmul.f32 %v6973_v26, %v13135_v1  ;;  %v7004_v2 = vmul.f32 %v6972_v47, %v13142_v30 }
 0x724   :  { %v13968_v38 = vpack.c.bf16 %v13005_v24, %v13022_v41  ;;  %v7095_v33 = vmul.f32 0.7978846, %v7063_v63  ;;  %v7142_v12 = vadd.f32 1.0, %v13044_v27  ;;  %v6975_v51 = vmul.f32 0.044715, %v13154_v9 }
 0x725   :  { %v10906_v59 = vpop.eup %10905  ;;  %v10340_v43 = vpack.c.bf16 %v7187_v22, %v7186_v42  ;;  %10909 = vtanh.f32 %v7094_v60  ;;  %v7143_v54 = vadd.f32 1.0, %v13037_v8  ;;  %v6974_v50 = vmul.f32 0.044715, %v13158_v57 }
 0x726   :  { %10339 = vmatpush3.bf16.msra.mxu1 %v13968_v38  ;;  %v10908_v17 = vpop.eup %10907  ;;  %v7156_v26 = vadd.f32 1.0, %v10906_v59  ;;  %10911 = vtanh.f32 %v7095_v33  ;;  %v13175_v47 = vmul.f32 %v7142_v12, %v12974_v56  ;;  %v7034_v24 = vmul.f32 %v7002_v4, %v13119_v45 }
 0x727   :  { %10341 = vmatprep.subr.bf16.mxu1 %v10340_v43  ;;  %v7157_v41 = vadd.f32 1.0, %v10908_v17  ;;  %v6935_v27 = vmul.f32 0.5, %v13067_v6  ;;  %v13180_v19 = vmul.f32 %v7143_v54, %v12964_v23  ;;  %v7037_v42 = vmul.f32 %v7005_v46, %v13135_v1 }
 0x728   :  { %v7036_v8 = vmul.f32 %v7004_v2, %v13142_v30  ;;  %v13969_v13 = vpack.c.bf16 %v13088_v25, %v13081_v0  ;;  %v7188_v18 = vmul.f32 %v7156_v26, %v6932_v5  ;;  %v7064_v56 = vadd.f32 %v7032_v39, %v13099_v29 }
 0x729   :  { %v7189_v36 = vmul.f32 %v7157_v41, %v6933_v10  ;;  %v10350_v40 = vpack.c.bf16 %v13180_v19, %v13175_v47  ;;  %v7065_v6 = vadd.f32 %v7033_v32, %v13091_v35  ;;  %v7144_v23 = vadd.f32 1.0, %v13070_v34 }
 0x72a   :  { %10343 = vmatpush3.bf16.msra.mxu1 %v13969_v13  ;;  %v7007_v4 = vmul.f32 %v6975_v51, %v13154_v9  ;;  %v7006_v22 = vmul.f32 %v6974_v50, %v13158_v57  ;;  %v7096_v63 = vmul.f32 0.7978846, %v7064_v56  ;;  %v7145_v60 = vadd.f32 1.0, %v13063_v44 }
 0x72b   :  { %v10344_v0 = vpack.c.bf16 %v7189_v36, %v7188_v18  ;;  %v7097_v25 = vmul.f32 0.7978846, %v7065_v6  ;;  %v13196_v5 = vmul.f32 %v7144_v23, %v12977_v61  ;;  %v7066_v10 = vadd.f32 %v7034_v24, %v13119_v45 }
 0x72c   :  { %10913 = vtanh.f32 %v7096_v63  ;;  %v13200_v39 = vmul.f32 %v7145_v60, %v12979_v37  ;;  %v7067_v34 = vadd.f32 %v7035_v52, %v13114_v3  ;;  %v6922_v32 = vmul.f32 0.5, %v12970_v15 }
 0x72d   :  { %10345 = vmatprep.subr.bf16.mxu1 %v10344_v0  ;;  %10915 = vtanh.f32 %v7097_v25  ;;  %v7098_v46 = vmul.f32 0.7978846, %v7066_v10  ;;  %v7146_v44 = vadd.f32 1.0, %v13083_v53  ;;  %v7147_v2 = vadd.f32 1.0, %v13077_v31 }
 0x72e   :  { %v7039_v61 = vmul.f32 %v7007_v4, %v13154_v9  ;;  %v7038_v38 = vmul.f32 %v7006_v22, %v13158_v57  ;;  %v13970_v33 = vpack.c.bf16 %v13127_v11, %v13122_v58  ;;  %v10354_v37 = vpack.c.bf16 %v13200_v39, %v13196_v5 }
 0x72f   :  { %v7099_v52 = vmul.f32 0.7978846, %v7067_v34  ;;  %v10910_v15 = vpop.eup %10909  ;;  %10917 = vtanh.f32 %v7098_v46  ;;  %v13213_v12 = vmul.f32 %v7146_v44, %v6922_v32  ;;  %v13216_v53 = vmul.f32 %v7147_v2, %v12987_v7 }
 0x730   :  { %10347 = vmatpush3.bf16.msra.mxu1 %v13970_v33  ;;  %v7068_v31 = vadd.f32 %v7036_v8, %v13142_v30  ;;  %v10912_v59 = vpop.eup %10911  ;;  %v7158_v51 = vadd.f32 1.0, %v10910_v15  ;;  %v7069_v43 = vadd.f32 %v7037_v42, %v13135_v1  ;;  %v6924_v58 = vmul.f32 0.5, %v12984_v49 }
 0x731   :  { %10919 = vtanh.f32 %v7099_v52  ;;  %v7159_v11 = vadd.f32 1.0, %v10912_v59  ;;  %v10358_v54 = vpack.c.bf16 %v13216_v53, %v13213_v12  ;;  %v6925_v50 = vmul.f32 0.5, %v12981_v16 }
 0x732   :  { %v7100_v17 = vmul.f32 0.7978846, %v7068_v31  ;;  %v7190_v26 = vmul.f32 %v7158_v51, %v13163_v21  ;;  %v7101_v7 = vmul.f32 0.7978846, %v7069_v43  ;;  %v7148_v24 = vadd.f32 1.0, %v13103_v28 }
 0x733   :  { %v7149_v41 = vadd.f32 1.0, %v13095_v14  ;;  %v7191_v8 = vmul.f32 %v7159_v11, %v6935_v27  ;;  %v7070_v49 = vadd.f32 %v7038_v38, %v13158_v57  ;;  %v7071_v56 = vadd.f32 %v7039_v61, %v13154_v9  ;;  %v7204_v11 = vld [vmem:[%s13908_s8 + $0x20] sm:$0xff] }
 0x734   :  { %10921 = vtanh.f32 %v7100_v17  ;;  %v7180_v42 = vmul.f32 %v7148_v24, %v6924_v58  ;;  %v6926_v36 = vmul.f32 0.5, %v12998_v62  ;;  %v6927_v16 = vmul.f32 0.5, %v12992_v48  ;;  %v7203_v58 = vld [vmem:[%s13908_s8 + $0x18] sm:$0xff]  ;;  %v7206_v17 = vld [vmem:[%s13908_s8 + $0x30] sm:$0xff] }
 0x735   :  { %10923 = vtanh.f32 %v7101_v7  ;;  %v7181_v13 = vmul.f32 %v7149_v41, %v6925_v50  ;;  %v10348_v18 = vpack.c.bf16 %v7191_v8, %v7190_v26  ;;  %v7102_v23 = vmul.f32 0.7978846, %v7070_v49  ;;  %v7209_v50 = vld [vmem:[%s13908_s8 + $0x48] sm:$0xff]  ;;  %v7208_v26 = vld [vmem:[%s13908_s8 + $0x40] sm:$0xff]  ;;  %v7211_v7 = vld [vmem:[%s13908_s8 + $0x58] sm:$0xff] }
 0x736   :  { %v10914_v21 = vpop.eup %10913  ;;  %v7150_v28 = vadd.f32 1.0, %v13150_v20  ;;  %v7151_v14 = vadd.f32 1.0, %v13131_v55  ;;  %v6936_v4 = vmul.f32 0.5, %v13099_v29  ;;  %v6937_v22 = vmul.f32 0.5, %v13091_v35  ;;  %v7210_v24 = vld [vmem:[%s13908_s8 + $0x50] sm:$0xff]  ;;  %v7213_v41 = vld [vmem:[%s13908_s8 + $0x68] sm:$0xff] }
 0x737   :  { %v10362_v6 = vpack.c.bf16 %v7181_v13, %v7180_v42  ;;  %v10916_v27 = vpop.eup %10915  ;;  %10349 = vmatprep.subr.bf16.mxu1 %v10348_v18  ;;  %v7160_v63 = vadd.f32 1.0, %v10914_v21  ;;  %v7103_v60 = vmul.f32 0.7978846, %v7071_v56  ;;  %10925 = vtanh.f32 %v7102_v23  ;;  %v7212_v8 = vld [vmem:[%s13908_s8 + $0x60] sm:$0xff]  ;;  %v7215_v42 = vld [vmem:[%s13908_s8 + $0x78] sm:$0xff]  ;;  %v7214_v13 = vld [vmem:[%s13908_s8 + $0x70] sm:$0xff] }
 0x738   :  { %10351 = vmatpush3.bf16.msra.mxu1 %v10350_v40  ;;  %v7161_v48 = vadd.f32 1.0, %v10916_v27  ;;  %v7182_v62 = vmul.f32 %v7150_v28, %v6926_v36  ;;  %v7183_v0 = vmul.f32 %v7151_v14, %v6927_v16  ;;  %v6938_v34 = vmul.f32 0.5, %v13119_v45  ;;  %v7217_v49 = vld [vmem:[%s13908_s8 + $0x88] sm:$0xff]  ;;  %v7216_v18 = vld [vmem:[%s13908_s8 + $0x80] sm:$0xff]  ;;  %v13972_v27 = vld [vmem:[#allocation9_spill] sm:$0xff] }
 0x739   :  { %v10918_v25 = vpop.eup %10917  ;;  %v7192_v20 = vmul.f32 %v7160_v63, %v6936_v4  ;;  %10927 = vtanh.f32 %v7103_v60  ;;  %v6939_v35 = vmul.f32 0.5, %v13114_v3  ;;  %v6940_v61 = vmul.f32 0.5, %v13142_v30  ;;  %v7235_v63 = vpop.permute.xlu0 %7234 }
 0x73a   :  { %v7193_v10 = vmul.f32 %v7161_v48, %v6937_v22  ;;  %v7162_v29 = vadd.f32 1.0, %v10918_v25  ;;  %v10366_v32 = vpack.c.bf16 %v7183_v0, %v7182_v62  ;;  %v6941_v45 = vmul.f32 0.5, %v13135_v1  ;;  %v7200_v1 = vld [vmem:[%s13908_s8] sm:$0xff] }
 0x73b   :  { %v10920_v55 = vpop.eup %10919  ;;  %v6942_v59 = vmul.f32 0.5, %v13158_v57  ;;  %v6943_v30 = vmul.f32 0.5, %v13154_v9  ;;  %v7202_v9 = vld [vmem:[%s13908_s8 + $0x10] sm:$0xff]  ;;  %v7205_v57 = vld [vmem:[%s13908_s8 + $0x28] sm:$0xff]  ;;  %v13971_v56 = vmov 0.0   ;;  %v13973_v25 = vld [vmem:[#allocation10_spill] sm:$0xff] }
 0x73c   :  { %v7163_v46 = vadd.f32 1.0, %v10920_v55  ;;  %v10352_v44 = vpack.c.bf16 %v7193_v10, %v7192_v20  ;;  %v7194_v2 = vmul.f32 %v7162_v29, %v6938_v34 }
 0x73e   :  { %v10922_v47 = vpop.eup %10921  ;;  %v7195_v19 = vmul.f32 %v7163_v46, %v6939_v35  ;;  %10353 = vmatprep.subr.bf16.mxu1 %v10352_v44  ;;  %v13974_v46 = vld [vmem:[#allocation11_spill] sm:$0xff] }
 0x73f   :  { %v10924_v40 = vpop.eup %10923  ;;  %v7164_v38 = vadd.f32 1.0, %v10922_v47  ;;  %10355 = vmatpush3.bf16.msra.mxu1 %v10354_v37  ;;  %v7245_v47 = vpop.permute.xlu0 %7244 }
 0x740   :  { %v10356_v33 = vpack.c.bf16 %v7195_v19, %v7194_v2  ;;  %v7165_v52 = vadd.f32 1.0, %v10924_v40 }
 0x741   :  { %v7196_v15 = vmul.f32 %v7164_v38, %v6940_v61  ;;  %v10926_v12 = vpop.eup %10925 }
 0x742   :  { %10357 = vmatprep.subr.bf16.mxu1 %v10356_v33  ;;  %v7197_v3 = vmul.f32 %v7165_v52, %v6941_v45  ;;  %v7166_v51 = vadd.f32 1.0, %v10926_v12  ;;  %v13975_v33 = vld [vmem:[#allocation12_spill] sm:$0xff] }
 0x743   :  { %v10928_v53 = vpop.eup %10927  ;;  %10359 = vmatpush3.bf16.msra.mxu1 %v10358_v54  ;;  %v7207_v54 = vld [vmem:[%s13908_s8 + $0x38] sm:$0xff] }
 0x744   :  { %v10360_v31 = vpack.c.bf16 %v7197_v3, %v7196_v15  ;;  %v7167_v43 = vadd.f32 1.0, %v10928_v53  ;;  %v7198_v5 = vmul.f32 %v7166_v51, %v6942_v59  ;;  %v13976_v59 = vld [vmem:[#allocation13_spill] sm:$0xff] }
 0x746   :  { %10361 = vmatprep.subr.bf16.mxu1 %v10360_v31  ;;  %v7199_v39 = vmul.f32 %v7167_v43, %v6943_v30  ;;  %v7255_v43 = vpop.permute.xlu0 %7254 }
 0x747   :  { %10363 = vmatpush3.bf16.msra.mxu1 %v10362_v6  ;;  %v7230_v6 = vpop.permute.xlu1 %7229 }
 0x748   :  { %v10364_v37 = vpack.c.bf16 %v7199_v39, %v7198_v5 }
 0x74a   :  { %10365 = vmatprep.subr.bf16.mxu1 %v10364_v37 }
 0x74b   :  { %10367 = vmatpush3.bf16.msra.mxu1 %v10366_v32  ;;  %v7240_v10 = vpop.permute.xlu1 %7239 }
 0x74e   :  { %7337 = vmatmul.mubr.f32.vlgmr.msra.gmra.mrb[248].mxu1 %v7200_v1 }
 0x74f   :  { %7341 = vmatprep.mubr.f32.mxu1 %v7203_v58  ;;  %v7250_v15 = vpop.permute.xlu1 %7249  ;;  %v13977_v58 = vld [vmem:[#allocation14_spill] sm:$0xff] }
 0x752   :  { %7342 = vmatmul.mubr.f32.gmra.mrb[250].mxu1 %v7202_v9 }
 0x753   :  { %7346 = vmatprep.mubr.f32.mxu1 %v7205_v57 }
 0x756   :  { %7347 = vmatmul.mubr.f32.gmra.mrb[252].mxu1 %v7204_v11  ;;  %v7260_v11 = vpop.permute.xlu1 %7259 }
 0x757   :  { %7351 = vmatprep.mubr.f32.mxu1 %v7207_v54 }
 0x75a   :  { %7352 = vmatmul.mubr.f32.gmra.mrb[254].mxu1 %v7206_v17 }
 0x75b   :  { %7356 = vmatprep.mubr.f32.mxu1 %v7209_v50 }
 0x75e   :  { %7357 = vmatmul.mubr.f32.gmra.mrb[0].mxu1 %v7208_v26 }
 0x75f   :  { %7361 = vmatprep.mubr.f32.mxu1 %v7211_v7  ;;  %v13978_v7 = vld [vmem:[#allocation15_spill] sm:$0xff] }
 0x762   :  { %7362 = vmatmul.mubr.f32.gmra.mrb[2].mxu1 %v7210_v24 }
 0x763   :  { %7366 = vmatprep.mubr.f32.mxu1 %v7213_v41 }
 0x766   :  { %7367 = vmatmul.mubr.f32.gmra.mrb[4].mxu1 %v7212_v8  ;;  %v7265_v8 = vpop.permute.xlu0 %7264 }
 0x767   :  { %7371 = vmatprep.mubr.f32.mxu1 %v7215_v42 }
 0x76a   :  { %7372 = vmatmul.mubr.f32.gmra.mrb[6].mxu1 %v7214_v13 }
 0x76b   :  { %7376 = vmatprep.mubr.f32.mxu1 %v7217_v49 }
 0x76e   :  { %7377 = vmatmul.mubr.f32.gmra.mrb[8].mxu1 %v7216_v18 }
 0x76f   :  { %7659 = vmatprep.mubr.f32.mxu1 %v13971_v56 }
 0x821   :  { %v9611_v36 = vpop.f32.mrb[248].mxu1 }
 0x822   :  { %v9612_v16 = vpop.f32.mrb[249].mxu1 }
 0x823   :  { %v9613_v21 = vadd.f32 %v9612_v16, %v9611_v36  ;;  %v13979_v36 = vld [vmem:[#allocation16_spill] sm:$0xff] }
 0x825   :  { %v7339_v23 = vadd.f32 %v9613_v21, %v7230_v6  ;;  %v9614_v28 = vpop.f32.mrb[250].mxu1  ;;  %v7270_v6 = vpop.permute.xlu1 %7269 }
 0x826   :  { %v9615_v14 = vpop.f32.mrb[251].mxu1 }
 0x827   :  { %v13300_v4 = vadd.f32 %v7339_v23, %v13972_v27  ;;  %v9616_v22 = vadd.f32 %v9615_v14, %v9614_v28  ;;  %v13980_v14 = vld [vmem:[#allocation17_spill] sm:$0xff] }
 0x829   :  { %v7344_v60 = vadd.f32 %v9616_v22, %v7235_v63  ;;  %v9617_v48 = vpop.f32.mrb[252].mxu1  ;;  %v7393_v62 = vsel %vm6217_vm6, %v13300_v4, 0.0 }
 0x82a   :  { %v9618_v0 = vpop.f32.mrb[253].mxu1  ;;  %7394 = vadd.xlane.f32.xlu0 %v7393_v62 }
 0x82b   :  { %v13305_v20 = vadd.f32 %v7344_v60, %v13973_v25  ;;  %v9619_v55 = vadd.f32 %v9618_v0, %v9617_v48 }
 0x82d   :  { %v7349_v34 = vadd.f32 %v9619_v55, %v7240_v10  ;;  %v9620_v29 = vpop.f32.mrb[254].mxu1  ;;  %v7396_v32 = vsel %vm6217_vm6, %v13305_v20, 0.0 }
 0x82e   :  { %v9621_v35 = vpop.f32.mrb[255].mxu1  ;;  %7397 = vadd.xlane.f32.xlu1 %v7396_v32 }
 0x82f   :  { %v13310_v44 = vadd.f32 %v7349_v34, %v13974_v46  ;;  %v9622_v2 = vadd.f32 %v9621_v35, %v9620_v29 }
 0x831   :  { %v7354_v19 = vadd.f32 %v9622_v2, %v7245_v47  ;;  %v9623_v40 = vpop.f32.mrb[0].mxu1  ;;  %v7399_v61 = vsel %vm6217_vm6, %v13310_v44, 0.0 }
 0x832   :  { %v9624_v38 = vpop.f32.mrb[1].mxu1  ;;  %7400 = vadd.xlane.f32.xlu0 %v7399_v61 }
 0x833   :  { %v13315_v45 = vadd.f32 %v7354_v19, %v13975_v33  ;;  %v9625_v52 = vadd.f32 %v9624_v38, %v9623_v40 }
 0x835   :  { %v7359_v3 = vadd.f32 %v9625_v52, %v7250_v15  ;;  %v9626_v12 = vpop.f32.mrb[2].mxu1  ;;  %v7402_v53 = vsel %vm6217_vm6, %v13315_v45, 0.0 }
 0x836   :  { %v9627_v31 = vpop.f32.mrb[3].mxu1  ;;  %7403 = vadd.xlane.f32.xlu0 %v7402_v53 }
 0x837   :  { %v13320_v51 = vadd.f32 %v7359_v3, %v13976_v59  ;;  %v9628_v30 = vadd.f32 %v9627_v31, %v9626_v12 }
 0x839   :  { %v7364_v5 = vadd.f32 %v9628_v30, %v7255_v43  ;;  %v9629_v39 = vpop.f32.mrb[4].mxu1  ;;  %v7405_v37 = vsel %vm6217_vm6, %v13320_v51, 0.0 }
 0x83a   :  { %v9630_v1 = vpop.f32.mrb[5].mxu1  ;;  %7406 = vadd.xlane.f32.xlu1 %v7405_v37 }
 0x83b   :  { %v13325_v9 = vadd.f32 %v7364_v5, %v13977_v58  ;;  %v9631_v57 = vadd.f32 %v9630_v1, %v9629_v39 }
 0x83d   :  { %v7369_v54 = vadd.f32 %v9631_v57, %v7260_v11  ;;  %v9632_v17 = vpop.f32.mrb[6].mxu1  ;;  %v7408_v50 = vsel %vm6217_vm6, %v13325_v9, 0.0 }
 0x83e   :  { %v9633_v26 = vpop.f32.mrb[7].mxu1  ;;  %7409 = vadd.xlane.f32.xlu0 %v7408_v50 }
 0x83f   :  { %v13330_v24 = vadd.f32 %v7369_v54, %v13978_v7  ;;  %v9634_v41 = vadd.f32 %v9633_v26, %v9632_v17 }
 0x841   :  { %v7374_v42 = vadd.f32 %v9634_v41, %v7265_v8  ;;  %v9635_v13 = vpop.f32.mrb[8].mxu1  ;;  %v7411_v49 = vsel %vm6217_vm6, %v13330_v24, 0.0 }
 0x842   :  { %v9636_v18 = vpop.f32.mrb[9].mxu1  ;;  %7412 = vadd.xlane.f32.xlu1 %v7411_v49  ;;  %v7541_v49 = vld [vmem:[%s13912_s12 + $0x8] sm:$0xff] }
 0x843   :  { %v13335_v16 = vadd.f32 %v7374_v42, %v13979_v36  ;;  %v9637_v21 = vadd.f32 %v9636_v18, %v9635_v13  ;;  %v7543_v18 = vld [vmem:[%s13912_s12 + $0x18] sm:$0xff]  ;;  %v7540_v36 = vld [vmem:[%s13912_s12] sm:$0xff] }
 0x845   :  { %v7379_v23 = vadd.f32 %v9637_v21, %v7270_v6  ;;  %v7414_v28 = vsel %vm6217_vm6, %v13335_v16, 0.0  ;;  %v10368_v21 = vpack.c.bf16 %v7543_v18, %v7541_v49  ;;  %v7542_v6 = vld [vmem:[%s13912_s12 + $0x10] sm:$0xff]  ;;  %v13467_v49 = vld [vmem:[%s13911_s11] ss:$0 sm:$0xff] }
 0x846   :  { %7415 = vadd.xlane.f32.xlu0 %v7414_v28  ;;  %v7545_v28 = vld [vmem:[%s13912_s12 + $0x28] sm:$0xff] }
 0x847   :  { %v13340_v27 = vadd.f32 %v7379_v23, %v13980_v14  ;;  %v10370_v23 = vpack.c.bf16 %v7542_v6, %v7540_v36  ;;  %10369 = vmatprep.subr.bf16.mxu1 %v10368_v21  ;;  %v7547_v14 = vld [vmem:[%s13912_s12 + $0x38] sm:$0xff] }
 0x849   :  { %v7417_v22 = vsel %vm6217_vm6, %v13340_v27, 0.0  ;;  %10371 = vmatpush1.bf16.msra.mxu1 %v10370_v23 }
 0x84a   :  { %7418 = vadd.xlane.f32.xlu1 %v7417_v22  ;;  %v7544_v22 = vld [vmem:[%s13912_s12 + $0x20] sm:$0xff] }
 0x8b7   :  { %v7395_v63 = vpop.xlane.xlu0 %7394 }
 0x8b8   :  { %v7420_v60 = vmul.f32 0.015625, %v7395_v63  ;;  %v10372_v63 = vpack.c.bf16 %v7547_v14, %v7545_v28 }
 0x8ba   :  { %v13345_v48 = vsub.f32 %v13300_v4, %v7420_v60  ;;  %v7546_v60 = vld [vmem:[%s13912_s12 + $0x30] sm:$0xff]  ;;  %10373 = vmatprep.subr.bf16.mxu1 %v10372_v63 }
 0x8bb   :  { %v7398_v62 = vpop.xlane.xlu1 %7397 }
 0x8bc   :  { %v7421_v0 = vmul.f32 0.015625, %v7398_v62  ;;  %v7438_v25 = vmul.f32 %v13345_v48, %v13345_v48  ;;  %v10374_v62 = vpack.c.bf16 %v7546_v60, %v7544_v22 }
 0x8be   :  { %v13350_v55 = vsub.f32 %v13305_v20, %v7421_v0  ;;  %v7447_v10 = vsel %vm6217_vm6, %v7438_v25, 0.0  ;;  %10375 = vmatpush1.bf16.msra.mxu1 %v10374_v62  ;;  %v7549_v0 = vld [vmem:[%s13912_s12 + $0x48] sm:$0xff]  ;;  %v7551_v25 = vld [vmem:[%s13912_s12 + $0x58] sm:$0xff] }
 0x8bf   :  { %7448 = vadd.xlane.f32.xlu0 %v7447_v10  ;;  %v7401_v34 = vpop.xlane.xlu0 %7400  ;;  %v7548_v10 = vld [vmem:[%s13912_s12 + $0x40] sm:$0xff] }
 0x8c0   :  { %v7422_v29 = vmul.f32 0.015625, %v7401_v34  ;;  %v7439_v32 = vmul.f32 %v13350_v55, %v13350_v55  ;;  %v10376_v34 = vpack.c.bf16 %v7551_v25, %v7549_v0 }
 0x8c2   :  { %v13356_v35 = vsub.f32 %v13310_v44, %v7422_v29  ;;  %v7450_v46 = vsel %vm6217_vm6, %v7439_v32, 0.0  ;;  %v7550_v29 = vld [vmem:[%s13912_s12 + $0x50] sm:$0xff]  ;;  %10377 = vmatprep.subr.bf16.mxu1 %v10376_v34 }
 0x8c3   :  { %7451 = vadd.xlane.f32.xlu1 %v7450_v46  ;;  %v7404_v2 = vpop.xlane.xlu0 %7403  ;;  %v10378_v32 = vpack.c.bf16 %v7550_v29, %v7548_v10  ;;  %v7553_v46 = vld [vmem:[%s13912_s12 + $0x68] sm:$0xff] }
 0x8c4   :  { %v7423_v47 = vmul.f32 0.015625, %v7404_v2  ;;  %v7440_v19 = vmul.f32 %v13356_v35, %v13356_v35  ;;  %v7555_v2 = vld [vmem:[%s13912_s12 + $0x78] sm:$0xff] }
 0x8c5   :  { %10379 = vmatpush1.bf16.msra.mxu1 %v10378_v32 }
 0x8c6   :  { %v13362_v40 = vsub.f32 %v13315_v45, %v7423_v47  ;;  %v7453_v61 = vsel %vm6217_vm6, %v7440_v19, 0.0  ;;  %v7552_v47 = vld [vmem:[%s13912_s12 + $0x60] sm:$0xff]  ;;  %v10380_v19 = vpack.c.bf16 %v7555_v2, %v7553_v46 }
 0x8c7   :  { %v7407_v38 = vpop.xlane.xlu1 %7406  ;;  %7454 = vadd.xlane.f32.xlu0 %v7453_v61  ;;  %v7554_v61 = vld [vmem:[%s13912_s12 + $0x70] sm:$0xff] }
 0x8c8   :  { %v7424_v33 = vmul.f32 0.015625, %v7407_v38  ;;  %v7441_v52 = vmul.f32 %v13362_v40, %v13362_v40  ;;  %v10382_v38 = vpack.c.bf16 %v7554_v61, %v7552_v47  ;;  %10381 = vmatprep.subr.bf16.mxu1 %v10380_v19 }
 0x8ca   :  { %v13368_v15 = vsub.f32 %v13320_v51, %v7424_v33  ;;  %v7456_v3 = vsel %vm6217_vm6, %v7441_v52, 0.0  ;;  %10383 = vmatpush1.bf16.msra.mxu1 %v10382_v38  ;;  %v7892_v33 = vld [vmem:[%s13914_s14 + $0x80] sm:$0xff]  ;;  %v7893_v52 = vld [vmem:[%s13914_s14 + $0x88] sm:$0xff] }
 0x8cb   :  { %7457 = vadd.xlane.f32.xlu1 %v7456_v3  ;;  %v7410_v12 = vpop.xlane.xlu0 %7409  ;;  %v10384_v3 = vpack.c.bf16 %v7893_v52, %v7892_v33 }
 0x8cc   :  { %v7425_v53 = vmul.f32 0.015625, %v7410_v12  ;;  %v7442_v31 = vmul.f32 %v13368_v15, %v13368_v15 }
 0x8cd   :  { %10385 = vmatprep.subr.bf16.mxu1 %v10384_v3 }
 0x8ce   :  { %v13374_v59 = vsub.f32 %v13325_v9, %v7425_v53  ;;  %v7459_v30 = vsel %vm6217_vm6, %v7442_v31, 0.0 }
 0x8cf   :  { %v7413_v43 = vpop.xlane.xlu1 %7412  ;;  %7460 = vadd.xlane.f32.xlu0 %v7459_v30 }
 0x8d0   :  { %v7426_v5 = vmul.f32 0.015625, %v7413_v43  ;;  %v7443_v39 = vmul.f32 %v13374_v59, %v13374_v59 }
 0x8d2   :  { %v13380_v37 = vsub.f32 %v13330_v24, %v7426_v5  ;;  %v7462_v1 = vsel %vm6217_vm6, %v7443_v39, 0.0 }
 0x8d3   :  { %7463 = vadd.xlane.f32.xlu1 %v7462_v1  ;;  %v7416_v58 = vpop.xlane.xlu0 %7415 }
 0x8d4   :  { %v7427_v57 = vmul.f32 0.015625, %v7416_v58  ;;  %v7444_v11 = vmul.f32 %v13380_v37, %v13380_v37 }
 0x8d6   :  { %v13386_v54 = vsub.f32 %v13335_v16, %v7427_v57  ;;  %v7465_v17 = vsel %vm6217_vm6, %v7444_v11, 0.0 }
 0x8d7   :  { %v7419_v50 = vpop.xlane.xlu1 %7418  ;;  %7466 = vadd.xlane.f32.xlu0 %v7465_v17 }
 0x8d8   :  { %v7428_v26 = vmul.f32 0.015625, %v7419_v50  ;;  %v7445_v7 = vmul.f32 %v13386_v54, %v13386_v54  ;;  %v13455_v50 = vld [vmem:[%s13910_s10] ss:$0 sm:$0xff] }
 0x8da   :  { %v13392_v41 = vsub.f32 %v13340_v27, %v7428_v26  ;;  %v7468_v8 = vsel %vm6217_vm6, %v7445_v7, 0.0 }
 0x8db   :  { %7469 = vadd.xlane.f32.xlu1 %v7468_v8 }
 0x8dc   :  { %v7446_v42 = vmul.f32 %v13392_v41, %v13392_v41 }
 0x8de   :  { %v7471_v13 = vsel %vm6217_vm6, %v7446_v42, 0.0  ;;  %v7876_v42 = vld [vmem:[%s13914_s14] sm:$0xff] }
 0x8df   :  { %7472 = vadd.xlane.f32.xlu0 %v7471_v13  ;;  %v7877_v13 = vld [vmem:[%s13914_s14 + $0x8] sm:$0xff] }
 0x8e0   :  { %v10386_v6 = vpack.c.bf16 %v7877_v13, %v7876_v42  ;;  %v7895_v13 = vld [vmem:[%s13914_s14 + $0x98] sm:$0xff] }
 0x94c   :  { %v7449_v12 = vpop.xlane.xlu0 %7448 }
 0x94d   :  { %v7474_v53 = vmul.f32 0.015625, %v7449_v12 }
 0x94f   :  { %v7483_v31 = vadd.f32 1e-05, %v7474_v53 }
 0x950   :  { %v7452_v30 = vpop.xlane.xlu1 %7451 }
 0x951   :  { %10929 = vrsqrt.f32 %v7483_v31  ;;  %v7475_v43 = vmul.f32 0.015625, %v7452_v30 }
 0x953   :  { %v7484_v5 = vadd.f32 1e-05, %v7475_v43 }
 0x954   :  { %v7455_v39 = vpop.xlane.xlu0 %7454 }
 0x955   :  { %10931 = vrsqrt.f32 %v7484_v5  ;;  %v7476_v1 = vmul.f32 0.015625, %v7455_v39 }
 0x957   :  { %v7485_v58 = vadd.f32 1e-05, %v7476_v1 }
 0x958   :  { %v7458_v57 = vpop.xlane.xlu1 %7457 }
 0x959   :  { %10933 = vrsqrt.f32 %v7485_v58  ;;  %v7477_v11 = vmul.f32 0.015625, %v7458_v57 }
 0x95b   :  { %v10930_v17 = vpop.eup %10929  ;;  %v7486_v26 = vadd.f32 1e-05, %v7477_v11 }
 0x95c   :  { %v7501_v7 = vmul.f32 %v10930_v17, %v13345_v48  ;;  %v7461_v8 = vpop.xlane.xlu0 %7460 }
 0x95d   :  { %10935 = vrsqrt.f32 %v7486_v26  ;;  %v7478_v18 = vmul.f32 0.015625, %v7461_v8 }
 0x95e   :  { %v7516_v36 = vmul.f32 %v13455_v50, %v7501_v7 }
 0x95f   :  { %v10932_v21 = vpop.eup %10931  ;;  %v7487_v48 = vadd.f32 1e-05, %v7478_v18  ;;  %v7879_v18 = vld [vmem:[%s13914_s14 + $0x18] sm:$0xff] }
 0x960   :  { %v7531_v23 = vadd.f32 %v13467_v49, %v7516_v36  ;;  %v7502_v28 = vmul.f32 %v10932_v21, %v13350_v55  ;;  %v7464_v14 = vpop.xlane.xlu1 %7463  ;;  %v7897_v36 = vld [vmem:[%s13914_s14 + $0xa8] sm:$0xff] }
 0x961   :  { %10937 = vrsqrt.f32 %v7487_v48  ;;  %v7479_v22 = vmul.f32 0.015625, %v7464_v14  ;;  %v7899_v14 = vld [vmem:[%s13914_s14 + $0xb8] sm:$0xff] }
 0x962   :  { %v7517_v63 = vmul.f32 %v13455_v50, %v7502_v28  ;;  %8862 = vmatmul.mubr.msk.f32.vlgmr.msra.gmra.mrb[10].mxu1 %vm6217_vm6, %v7531_v23  ;;  %v7881_v23 = vld [vmem:[%s13914_s14 + $0x28] sm:$0xff]  ;;  %v7898_v28 = vld [vmem:[%s13914_s14 + $0xb0] sm:$0xff] }
 0x963   :  { %v10934_v60 = vpop.eup %10933  ;;  %v7488_v62 = vadd.f32 1e-05, %v7479_v22  ;;  %7665 = vmatprep.mubr.f32.mxu1 %v13971_v56  ;;  %10387 = vmatpush3.bf16.msra.mxu1 %v10386_v6  ;;  %v7880_v6 = vld [vmem:[%s13914_s14 + $0x20] sm:$0xff] }
 0x964   :  { %v7532_v0 = vadd.f32 %v13467_v49, %v7517_v63  ;;  %v7503_v25 = vmul.f32 %v10934_v60, %v13356_v35  ;;  %v7467_v10 = vpop.xlane.xlu0 %7466  ;;  %v10394_v22 = vpack.c.bf16 %v7881_v23, %v7880_v6  ;;  %v10396_v63 = vpack.c.bf16 %v7899_v14, %v7898_v28  ;;  %v7882_v60 = vld [vmem:[%s13914_s14 + $0x30] sm:$0xff] }
 0x965   :  { %10939 = vrsqrt.f32 %v7488_v62  ;;  %v7480_v34 = vmul.f32 0.015625, %v7467_v10  ;;  %v7883_v62 = vld [vmem:[%s13914_s14 + $0x38] sm:$0xff] }
 0x966   :  { %v7518_v55 = vmul.f32 %v13455_v50, %v7503_v25  ;;  %8863 = vmatmul.mubr.msk.f32.gmra.mrb[12].mxu1 %vm6217_vm6, %v7532_v0  ;;  %v7900_v0 = vld [vmem:[%s13914_s14 + $0xc0] sm:$0xff]  ;;  %v7901_v25 = vld [vmem:[%s13914_s14 + $0xc8] sm:$0xff]  ;;  %v10398_v10 = vpack.c.bf16 %v7883_v62, %v7882_v60 }
 0x967   :  { %v10936_v29 = vpop.eup %10935  ;;  %v7489_v32 = vadd.f32 1e-05, %v7480_v34  ;;  %7671 = vmatprep.mubr.f32.mxu1 %v13971_v56  ;;  %v10400_v34 = vpack.c.bf16 %v7901_v25, %v7900_v0 }
 0x968   :  { %v7533_v46 = vadd.f32 %v13467_v49, %v7518_v55  ;;  %v7504_v2 = vmul.f32 %v10936_v29, %v13362_v40  ;;  %v7470_v47 = vpop.xlane.xlu1 %7469  ;;  %v7884_v55 = vld [vmem:[%s13914_s14 + $0x40] sm:$0xff]  ;;  %v7885_v29 = vld [vmem:[%s13914_s14 + $0x48] sm:$0xff] }
 0x969   :  { %10941 = vrsqrt.f32 %v7489_v32  ;;  %v7481_v19 = vmul.f32 0.015625, %v7470_v47  ;;  %v7902_v32 = vld [vmem:[%s13914_s14 + $0xd0] sm:$0xff] }
 0x96a   :  { %v7519_v35 = vmul.f32 %v13455_v50, %v7504_v2  ;;  %8864 = vmatmul.mubr.msk.f32.gmra.mrb[14].mxu1 %vm6217_vm6, %v7533_v46  ;;  %v7903_v46 = vld [vmem:[%s13914_s14 + $0xd8] sm:$0xff]  ;;  %v10402_v2 = vpack.c.bf16 %v7885_v29, %v7884_v55 }
 0x96b   :  { %v10938_v61 = vpop.eup %10937  ;;  %v7490_v38 = vadd.f32 1e-05, %v7481_v19  ;;  %7677 = vmatprep.mubr.f32.mxu1 %v13971_v56  ;;  %v10404_v47 = vpack.c.bf16 %v7903_v46, %v7902_v32  ;;  %v7886_v19 = vld [vmem:[%s13914_s14 + $0x50] sm:$0xff] }
 0x96c   :  { %v7534_v33 = vadd.f32 %v13467_v49, %v7519_v35  ;;  %v7505_v52 = vmul.f32 %v10938_v61, %v13368_v15  ;;  %v7473_v3 = vpop.xlane.xlu0 %7472  ;;  %v7887_v35 = vld [vmem:[%s13914_s14 + $0x58] sm:$0xff]  ;;  %v7904_v61 = vld [vmem:[%s13914_s14 + $0xe0] sm:$0xff] }
 0x96d   :  { %10943 = vrsqrt.f32 %v7490_v38  ;;  %v7482_v12 = vmul.f32 0.015625, %v7473_v3  ;;  %v7905_v38 = vld [vmem:[%s13914_s14 + $0xe8] sm:$0xff]  ;;  %v7888_v3 = vld [vmem:[%s13914_s14 + $0x60] sm:$0xff] }
 0x96e   :  { %v7520_v40 = vmul.f32 %v13455_v50, %v7505_v52  ;;  %8865 = vmatmul.mubr.msk.f32.gmra.mrb[16].mxu1 %vm6217_vm6, %v7534_v33  ;;  %v10406_v33 = vpack.c.bf16 %v7887_v35, %v7886_v19  ;;  %v10408_v52 = vpack.c.bf16 %v7905_v38, %v7904_v61 }
 0x96f   :  { %v10940_v53 = vpop.eup %10939  ;;  %v7491_v31 = vadd.f32 1e-05, %v7482_v12  ;;  %7683 = vmatprep.mubr.f32.mxu1 %v13971_v56  ;;  %v7889_v12 = vld [vmem:[%s13914_s14 + $0x68] sm:$0xff] }
 0x970   :  { %v7535_v30 = vadd.f32 %v13467_v49, %v7520_v40  ;;  %v7506_v43 = vmul.f32 %v10940_v53, %v13374_v59  ;;  %v7906_v40 = vld [vmem:[%s13914_s14 + $0xf0] sm:$0xff]  ;;  %v7907_v53 = vld [vmem:[%s13914_s14 + $0xf8] sm:$0xff] }
 0x971   :  { %10945 = vrsqrt.f32 %v7491_v31  ;;  %v10410_v31 = vpack.c.bf16 %v7889_v12, %v7888_v3 }
 0x972   :  { %v7521_v5 = vmul.f32 %v13455_v50, %v7506_v43  ;;  %8866 = vmatmul.mubr.msk.f32.gmra.mrb[18].mxu1 %vm6217_vm6, %v7535_v30  ;;  %v10412_v30 = vpack.c.bf16 %v7907_v53, %v7906_v40  ;;  %v7890_v43 = vld [vmem:[%s13914_s14 + $0x70] sm:$0xff] }
 0x973   :  { %v10942_v15 = vpop.eup %10941  ;;  %7689 = vmatprep.mubr.f32.mxu1 %v13971_v56 }
 0x974   :  { %v7536_v39 = vadd.f32 %v13467_v49, %v7521_v5  ;;  %v7507_v1 = vmul.f32 %v10942_v15, %v13380_v37  ;;  %v7891_v5 = vld [vmem:[%s13914_s14 + $0x78] sm:$0xff] }
 0x975   :  { %v10414_v15 = vpack.c.bf16 %v7891_v5, %v7890_v43 }
 0x976   :  { %v7522_v58 = vmul.f32 %v13455_v50, %v7507_v1  ;;  %8867 = vmatmul.mubr.msk.f32.gmra.mrb[20].mxu1 %vm6217_vm6, %v7536_v39  ;;  %v13981_v39 = vld [vmem:[#allocation8_spill] sm:$0xff] }
 0x977   :  { %v10944_v57 = vpop.eup %10943  ;;  %7695 = vmatprep.mubr.f32.mxu1 %v13971_v56  ;;  %v7560_v1 = vsub.s32 0, %v13981_v39 }
 0x978   :  { %v7537_v59 = vadd.f32 %v13467_v49, %v7522_v58  ;;  %v7508_v11 = vmul.f32 %v10944_v57, %v13386_v54  ;;  %v7894_v54 = vld [vmem:[%s13914_s14 + $0x90] sm:$0xff]  ;;  %v7556_v58 = vld [vmem:[%s13913_s13] sm:$0x3]  ;;  %v7564_v57 = vsub.s32 1, %v13981_v39 }
 0x97a   :  { %v7523_v17 = vmul.f32 %v13455_v50, %v7508_v11  ;;  %8868 = vmatmul.mubr.msk.f32.gmra.mrb[22].mxu1 %vm6217_vm6, %v7537_v59  ;;  %v13601_v59 = vrot.slane %v7556_v58, %v7560_v1  ;;  %v13603_v11 = vrot.slane %v7556_v58, %v7564_v57 }
 0x97b   :  { %v10946_v26 = vpop.eup %10945  ;;  %7701 = vmatprep.mubr.f32.mxu1 %v13971_v56 }
 0x97c   :  { %v7538_v37 = vadd.f32 %v13467_v49, %v7523_v17  ;;  %v7509_v7 = vmul.f32 %v10946_v26, %v13392_v41  ;;  %v7878_v41 = vld [vmem:[%s13914_s14 + $0x10] sm:$0xff] }
 0x97d   :  { %v10390_v21 = vpack.c.bf16 %v7879_v18, %v7878_v41 }
 0x97e   :  { %v7524_v8 = vmul.f32 %v13455_v50, %v7509_v7  ;;  %8869 = vmatmul.mubr.msk.f32.gmra.mrb[24].mxu1 %vm6217_vm6, %v7538_v37  ;;  %v10388_v50 = vpack.c.bf16 %v7895_v13, %v7894_v54 }
 0x97f   :  { %7707 = vmatprep.mubr.f32.mxu1 %v13971_v56 }
 0x980   :  { %v7539_v42 = vadd.f32 %v13467_v49, %v7524_v8  ;;  %v7896_v49 = vld [vmem:[%s13914_s14 + $0xa0] sm:$0xff]  ;;  %10389 = vmatprep.subr.bf16.mxu1 %v10388_v50 }
 0x981   :  { %v10392_v48 = vpack.c.bf16 %v7897_v36, %v7896_v49  ;;  %10391 = vmatpush3.bf16.msra.mxu1 %v10390_v21 }
 0x982   :  { %8870 = vmatmul.mubr.msk.f32.gmra.mrb[26].mxu1 %vm6217_vm6, %v7539_v42 }
 0x983   :  { %10393 = vmatprep.subr.bf16.mxu1 %v10392_v48 }
 0x985   :  { %10395 = vmatpush3.bf16.msra.mxu1 %v10394_v22 }
 0x986   :  { %10397 = vmatprep.subr.bf16.mxu1 %v10396_v63 }
 0x989   :  { %10399 = vmatpush3.bf16.msra.mxu1 %v10398_v10 }
 0x98a   :  { %10401 = vmatprep.subr.bf16.mxu1 %v10400_v34 }
 0x98d   :  { %10403 = vmatpush3.bf16.msra.mxu1 %v10402_v2 }
 0x98e   :  { %10405 = vmatprep.subr.bf16.mxu1 %v10404_v47 }
 0x991   :  { %10407 = vmatpush3.bf16.msra.mxu1 %v10406_v33 }
 0x992   :  { %10409 = vmatprep.subr.bf16.mxu1 %v10408_v52 }
 0x995   :  { %10411 = vmatpush3.bf16.msra.mxu1 %v10410_v31 }
 0x996   :  { %10413 = vmatprep.subr.bf16.mxu1 %v10412_v30 }
 0x999   :  { %10415 = vmatpush3.bf16.msra.mxu1 %v10414_v15 }
 0xa35   :  { %v7661_v17 = vpop.f32.mrb[10].mxu1 }
 0xa36   :  { %v13606_v26 = vadd.f32 %v7661_v17, %v13601_v59  ;;  %v7663_v37 = vpop.f32.mrb[11].mxu1 }
 0xa37   :  { %v13609_v7 = vadd.f32 %v7663_v37, %v13603_v11 }
 0xa38   :  { %v7732_v8 = vmul.f32 0.044715, %v13606_v26 }
 0xa39   :  { %v7733_v42 = vmul.f32 0.044715, %v13609_v7  ;;  %v7667_v54 = vpop.f32.mrb[12].mxu1 }
 0xa3a   :  { %v7750_v13 = vmul.f32 %v7732_v8, %v13606_v26  ;;  %v13615_v41 = vadd.f32 %v7667_v54, %v13601_v59  ;;  %v7669_v50 = vpop.f32.mrb[13].mxu1 }
 0xa3b   :  { %v7751_v18 = vmul.f32 %v7733_v42, %v13609_v7  ;;  %v13619_v49 = vadd.f32 %v7669_v50, %v13603_v11 }
 0xa3c   :  { %v7768_v36 = vmul.f32 %v7750_v13, %v13606_v26  ;;  %v7734_v21 = vmul.f32 0.044715, %v13615_v41 }
 0xa3d   :  { %v7735_v48 = vmul.f32 0.044715, %v13619_v49  ;;  %v7673_v6 = vpop.f32.mrb[14].mxu1  ;;  %v7769_v23 = vmul.f32 %v7751_v18, %v13609_v7 }
 0xa3e   :  { %v7786_v28 = vadd.f32 %v7768_v36, %v13606_v26  ;;  %v7752_v14 = vmul.f32 %v7734_v21, %v13615_v41  ;;  %v13628_v22 = vadd.f32 %v7673_v6, %v13601_v59  ;;  %v7675_v63 = vpop.f32.mrb[15].mxu1 }
 0xa3f   :  { %v7753_v60 = vmul.f32 %v7735_v48, %v13619_v49  ;;  %v13632_v62 = vadd.f32 %v7675_v63, %v13603_v11  ;;  %v7787_v0 = vadd.f32 %v7769_v23, %v13609_v7 }
 0xa40   :  { %v7804_v25 = vmul.f32 0.7978846, %v7786_v28  ;;  %v7770_v10 = vmul.f32 %v7752_v14, %v13615_v41  ;;  %v7736_v34 = vmul.f32 0.044715, %v13628_v22 }
 0xa41   :  { %v7737_v55 = vmul.f32 0.044715, %v13632_v62  ;;  %v7679_v29 = vpop.f32.mrb[16].mxu1  ;;  %v7805_v32 = vmul.f32 0.7978846, %v7787_v0  ;;  %v7771_v46 = vmul.f32 %v7753_v60, %v13619_v49  ;;  %v7714_v0 = vmul.f32 0.5, %v13606_v26 }
 0xa42   :  { %10947 = vtanh.f32 %v7804_v25  ;;  %v7788_v2 = vadd.f32 %v7770_v10, %v13615_v41  ;;  %v7754_v47 = vmul.f32 %v7736_v34, %v13628_v22  ;;  %v13642_v19 = vadd.f32 %v7679_v29, %v13601_v59  ;;  %v7681_v35 = vpop.f32.mrb[17].mxu1 }
 0xa43   :  { %v7755_v61 = vmul.f32 %v7737_v55, %v13632_v62  ;;  %v13646_v38 = vadd.f32 %v7681_v35, %v13603_v11  ;;  %10949 = vtanh.f32 %v7805_v32  ;;  %v7789_v33 = vadd.f32 %v7771_v46, %v13619_v49 }
 0xa44   :  { %v7806_v52 = vmul.f32 0.7978846, %v7788_v2  ;;  %v7772_v3 = vmul.f32 %v7754_v47, %v13628_v22  ;;  %v7738_v12 = vmul.f32 0.044715, %v13642_v19  ;;  %v7716_v2 = vmul.f32 0.5, %v13615_v41 }
 0xa45   :  { %v7739_v40 = vmul.f32 0.044715, %v13646_v38  ;;  %v7685_v53 = vpop.f32.mrb[18].mxu1  ;;  %v7807_v31 = vmul.f32 0.7978846, %v7789_v33  ;;  %v7773_v30 = vmul.f32 %v7755_v61, %v13632_v62  ;;  %v7715_v35 = vmul.f32 0.5, %v13609_v7 }
 0xa46   :  { %10951 = vtanh.f32 %v7806_v52  ;;  %v7790_v43 = vadd.f32 %v7772_v3, %v13628_v22  ;;  %v7756_v5 = vmul.f32 %v7738_v12, %v13642_v19  ;;  %v13656_v15 = vadd.f32 %v7685_v53, %v13601_v59  ;;  %v7687_v39 = vpop.f32.mrb[19].mxu1 }
 0xa47   :  { %v7757_v1 = vmul.f32 %v7739_v40, %v13646_v38  ;;  %v13660_v58 = vadd.f32 %v7687_v39, %v13603_v11  ;;  %10953 = vtanh.f32 %v7807_v31  ;;  %v7791_v57 = vadd.f32 %v7773_v30, %v13632_v62 }
 0xa48   :  { %v7808_v17 = vmul.f32 0.7978846, %v7790_v43  ;;  %v7774_v37 = vmul.f32 %v7756_v5, %v13642_v19  ;;  %v7740_v8 = vmul.f32 0.044715, %v13656_v15 }
 0xa49   :  { %v7741_v42 = vmul.f32 0.044715, %v13660_v58  ;;  %v7691_v54 = vpop.f32.mrb[20].mxu1  ;;  %v7809_v13 = vmul.f32 0.7978846, %v7791_v57  ;;  %v7775_v50 = vmul.f32 %v7757_v1, %v13646_v38  ;;  %v7717_v1 = vmul.f32 0.5, %v13619_v49 }
 0xa4a   :  { %10955 = vtanh.f32 %v7808_v17  ;;  %v7792_v18 = vadd.f32 %v7774_v37, %v13642_v19  ;;  %v7758_v36 = vmul.f32 %v7740_v8, %v13656_v15  ;;  %v13670_v21 = vadd.f32 %v7691_v54, %v13601_v59  ;;  %v7693_v48 = vpop.f32.mrb[21].mxu1 }
 0xa4b   :  { %10957 = vtanh.f32 %v7809_v13  ;;  %v7793_v6 = vadd.f32 %v7775_v50, %v13646_v38  ;;  %v7759_v25 = vmul.f32 %v7741_v42, %v13660_v58  ;;  %v13683_v47 = vadd.f32 %v7693_v48, %v13603_v11 }
 0xa4c   :  { %v10948_v23 = vpop.eup %10947  ;;  %v7810_v28 = vmul.f32 0.7978846, %v7792_v18  ;;  %v7776_v14 = vmul.f32 %v7758_v36, %v13656_v15  ;;  %v7742_v63 = vmul.f32 0.044715, %v13670_v21  ;;  %v7718_v57 = vmul.f32 0.5, %v13628_v22 }
 0xa4d   :  { %v10950_v60 = vpop.eup %10949  ;;  %v7697_v10 = vpop.f32.mrb[22].mxu1  ;;  %v7811_v34 = vmul.f32 0.7978846, %v7793_v6  ;;  %v7840_v55 = vadd.f32 1.0, %v10948_v23  ;;  %v7777_v30 = vmul.f32 %v7759_v25, %v13660_v58  ;;  %v7743_v17 = vmul.f32 0.044715, %v13683_v47 }
 0xa4e   :  { %10959 = vtanh.f32 %v7810_v28  ;;  %v7760_v29 = vmul.f32 %v7742_v63, %v13670_v21  ;;  %v13679_v32 = vadd.f32 %v7697_v10, %v13601_v59  ;;  %v7699_v46 = vpop.f32.mrb[23].mxu1  ;;  %v7841_v26 = vadd.f32 1.0, %v10950_v60 }
 0xa4f   :  { %v7794_v33 = vadd.f32 %v7776_v14, %v13656_v15  ;;  %v13690_v12 = vadd.f32 %v7699_v46, %v13603_v11  ;;  %10961 = vtanh.f32 %v7811_v34  ;;  %v7858_v43 = vmul.f32 %v7840_v55, %v7714_v0 }
 0xa50   :  { %v10952_v61 = vpop.eup %10951  ;;  %v7778_v52 = vmul.f32 %v7760_v29, %v13670_v21  ;;  %v7744_v3 = vmul.f32 0.044715, %v13679_v32  ;;  %v7859_v31 = vmul.f32 %v7841_v26, %v7715_v35  ;;  %v7795_v23 = vadd.f32 %v7777_v30, %v13660_v58 }
 0xa51   :  { %v10954_v40 = vpop.eup %10953  ;;  %v7703_v53 = vpop.f32.mrb[24].mxu1  ;;  %v7842_v41 = vadd.f32 1.0, %v10952_v61  ;;  %v7812_v54 = vmul.f32 0.7978846, %v7794_v33  ;;  %v7745_v50 = vmul.f32 0.044715, %v13690_v12  ;;  %v7761_v25 = vmul.f32 %v7743_v17, %v13683_v47 }
 0xa52   :  { %v7762_v7 = vmul.f32 %v7744_v3, %v13679_v32  ;;  %v13695_v5 = vadd.f32 %v7703_v53, %v13601_v59  ;;  %v7705_v39 = vpop.f32.mrb[25].mxu1  ;;  %7972 = vmatprep.mubr.f32.mxu1 %v7859_v31  ;;  %v7843_v8 = vadd.f32 1.0, %v10954_v40  ;;  %v7796_v13 = vadd.f32 %v7778_v52, %v13670_v21 }
 0xa53   :  { %v13701_v37 = vadd.f32 %v7705_v39, %v13603_v11  ;;  %7973 = vmatmul.mubr.f32.vlgmr.msra.gmra.mrb[28].mxu1 %v7858_v43  ;;  %v7860_v6 = vmul.f32 %v7842_v41, %v7716_v2  ;;  %v7719_v34 = vmul.f32 0.5, %v13632_v62  ;;  %10963 = vtanh.f32 %v7812_v54 }
 0xa54   :  { %v10956_v42 = vpop.eup %10955  ;;  %v7746_v18 = vmul.f32 0.044715, %v13695_v5  ;;  %v7780_v49 = vmul.f32 %v7762_v7, %v13679_v32  ;;  %v7861_v48 = vmul.f32 %v7843_v8, %v7717_v1  ;;  %v7814_v46 = vmul.f32 0.7978846, %v7796_v13 }
 0xa55   :  { %v10958_v36 = vpop.eup %10957  ;;  %v7709_v22 = vpop.f32.mrb[26].mxu1  ;;  %v7747_v14 = vmul.f32 0.044715, %v13701_v37  ;;  %v7844_v0 = vadd.f32 1.0, %v10956_v42  ;;  %v7763_v2 = vmul.f32 %v7745_v50, %v13690_v12  ;;  %v7813_v33 = vmul.f32 0.7978846, %v7795_v23 }
 0xa56   :  { %v7764_v28 = vmul.f32 %v7746_v18, %v13695_v5  ;;  %v13711_v63 = vadd.f32 %v7709_v22, %v13601_v59  ;;  %v7711_v60 = vpop.f32.mrb[27].mxu1  ;;  %7977 = vmatprep.mubr.f32.mxu1 %v7861_v48  ;;  %v7845_v55 = vadd.f32 1.0, %v10958_v36  ;;  %v7779_v31 = vmul.f32 %v7761_v25, %v13683_v47 }
 0xa57   :  { %v13715_v10 = vadd.f32 %v7711_v60, %v13603_v11  ;;  %7978 = vmatmul.mubr.f32.gmra.mrb[30].mxu1 %v7860_v6  ;;  %v7798_v11 = vadd.f32 %v7780_v49, %v13679_v32  ;;  %v7765_v52 = vmul.f32 %v7747_v14, %v13701_v37  ;;  %v7862_v3 = vmul.f32 %v7844_v0, %v7718_v57 }
 0xa58   :  { %v10960_v29 = vpop.eup %10959  ;;  %v7748_v35 = vmul.f32 0.044715, %v13711_v63  ;;  %v7782_v59 = vmul.f32 %v7764_v28, %v13695_v5  ;;  %v7863_v61 = vmul.f32 %v7845_v55, %v7719_v34  ;;  %10965 = vtanh.f32 %v7813_v33 }
 0xa59   :  { %v7749_v26 = vmul.f32 0.044715, %v13715_v10  ;;  %v10962_v40 = vpop.eup %10961  ;;  %v7846_v53 = vadd.f32 1.0, %v10960_v29  ;;  %v7720_v41 = vmul.f32 0.5, %v13642_v19  ;;  %v7721_v43 = vmul.f32 0.5, %v13646_v38 }
 0xa5a   :  { %v7766_v62 = vmul.f32 %v7748_v35, %v13711_v63  ;;  %7982 = vmatprep.mubr.f32.mxu1 %v7863_v61  ;;  %v7847_v7 = vadd.f32 1.0, %v10962_v40  ;;  %10967 = vtanh.f32 %v7814_v46  ;;  %v7800_v39 = vadd.f32 %v7782_v59, %v13695_v5 }
 0xa5b   :  { %v7767_v30 = vmul.f32 %v7749_v26, %v13715_v10  ;;  %7983 = vmatmul.mubr.f32.gmra.mrb[32].mxu1 %v7862_v3  ;;  %v7797_v1 = vadd.f32 %v7779_v31, %v13683_v47  ;;  %v7781_v57 = vmul.f32 %v7763_v2, %v13690_v12  ;;  %v7816_v17 = vmul.f32 0.7978846, %v7798_v11 }
 0xa5c   :  { %v7784_v8 = vmul.f32 %v7766_v62, %v13711_v63  ;;  %v7865_v42 = vmul.f32 %v7847_v7, %v7721_v43  ;;  %v7783_v54 = vmul.f32 %v7765_v52, %v13701_v37  ;;  %v7864_v19 = vmul.f32 %v7846_v53, %v7720_v41 }
 0xa5d   :  { %v7815_v13 = vmul.f32 0.7978846, %v7797_v1  ;;  %v7799_v50 = vadd.f32 %v7781_v57, %v13690_v12  ;;  %v7785_v18 = vmul.f32 %v7767_v30, %v13715_v10  ;;  %v7818_v36 = vmul.f32 0.7978846, %v7800_v39  ;;  %v10964_v22 = vpop.eup %10963 }
 0xa5e   :  { %7987 = vmatprep.mubr.f32.mxu1 %v7865_v42  ;;  %v7801_v38 = vadd.f32 %v7783_v54, %v13701_v37  ;;  %v7802_v48 = vadd.f32 %v7784_v8, %v13711_v63  ;;  %v7848_v60 = vadd.f32 1.0, %v10964_v22  ;;  %v7723_v25 = vmul.f32 0.5, %v13660_v58 }
 0xa5f   :  { %7988 = vmatmul.mubr.f32.gmra.mrb[34].mxu1 %v7864_v19  ;;  %10969 = vtanh.f32 %v7815_v13  ;;  %v7817_v49 = vmul.f32 0.7978846, %v7799_v50  ;;  %v7803_v23 = vadd.f32 %v7785_v18, %v13715_v10  ;;  %v7722_v29 = vmul.f32 0.5, %v13656_v15 }
 0xa60   :  { %10971 = vtanh.f32 %v7816_v17  ;;  %v7819_v6 = vmul.f32 0.7978846, %v7801_v38  ;;  %v7820_v0 = vmul.f32 0.7978846, %v7802_v48  ;;  %v7725_v61 = vmul.f32 0.5, %v13683_v47 }
 0xa61   :  { %10973 = vtanh.f32 %v7817_v49  ;;  %v7821_v28 = vmul.f32 0.7978846, %v7803_v23  ;;  %v7866_v2 = vmul.f32 %v7848_v60, %v7722_v29  ;;  %v7724_v52 = vmul.f32 0.5, %v13670_v21 }
 0xa62   :  { %10975 = vtanh.f32 %v7819_v6  ;;  %v10966_v14 = vpop.eup %10965  ;;  %v7727_v3 = vmul.f32 0.5, %v13690_v12  ;;  %v7729_v7 = vmul.f32 0.5, %v13701_v37  ;;  %v7726_v47 = vmul.f32 0.5, %v13679_v32 }
 0xa63   :  { %10977 = vtanh.f32 %v7818_v36  ;;  %v7849_v34 = vadd.f32 1.0, %v10966_v14  ;;  %v7731_v12 = vmul.f32 0.5, %v13715_v10  ;;  %v7728_v8 = vmul.f32 0.5, %v13695_v5  ;;  %v8871_v5 = vld [vmem:[%s13915_s15] ss:$0 sm:$0xff] }
 0xa64   :  { %10979 = vtanh.f32 %v7821_v28  ;;  %v10968_v55 = vpop.eup %10967  ;;  %v7730_v37 = vmul.f32 0.5, %v13711_v63 }
 0xa65   :  { %v7867_v46 = vmul.f32 %v7849_v34, %v7723_v25  ;;  %10981 = vtanh.f32 %v7820_v0  ;;  %v7850_v59 = vadd.f32 1.0, %v10968_v55 }
 0xa67   :  { %7992 = vmatprep.mubr.f32.mxu1 %v7867_v46  ;;  %v7868_v53 = vmul.f32 %v7850_v59, %v7724_v52 }
 0xa68   :  { %7993 = vmatmul.mubr.f32.gmra.mrb[36].mxu1 %v7866_v2 }
 0xa69   :  { %v10970_v35 = vpop.eup %10969 }
 0xa6a   :  { %v10972_v26 = vpop.eup %10971  ;;  %v7851_v33 = vadd.f32 1.0, %v10970_v35 }
 0xa6b   :  { %v10974_v11 = vpop.eup %10973  ;;  %v7852_v31 = vadd.f32 1.0, %v10972_v26 }
 0xa6c   :  { %v10976_v58 = vpop.eup %10975  ;;  %v7869_v62 = vmul.f32 %v7851_v33, %v7725_v61  ;;  %v7853_v40 = vadd.f32 1.0, %v10974_v11 }
 0xa6d   :  { %v10978_v15 = vpop.eup %10977  ;;  %v7855_v41 = vadd.f32 1.0, %v10976_v58  ;;  %v7870_v1 = vmul.f32 %v7852_v31, %v7726_v47 }
 0xa6e   :  { %v10980_v30 = vpop.eup %10979  ;;  %7997 = vmatprep.mubr.f32.mxu1 %v7869_v62  ;;  %v7871_v43 = vmul.f32 %v7853_v40, %v7727_v3  ;;  %v7854_v57 = vadd.f32 1.0, %v10978_v15 }
 0xa6f   :  { %7998 = vmatmul.mubr.f32.gmra.mrb[38].mxu1 %v7868_v53  ;;  %v7873_v39 = vmul.f32 %v7855_v41, %v7729_v7  ;;  %v7857_v21 = vadd.f32 1.0, %v10980_v30  ;;  %v10982_v17 = vpop.eup %10981 }
 0xa70   :  { %8002 = vmatprep.mubr.f32.mxu1 %v7871_v43  ;;  %v7872_v54 = vmul.f32 %v7854_v57, %v7728_v8  ;;  %v7856_v19 = vadd.f32 1.0, %v10982_v17 }
 0xa71   :  { %v7875_v42 = vmul.f32 %v7857_v21, %v7731_v12 }
 0xa72   :  { %v7874_v32 = vmul.f32 %v7856_v19, %v7730_v37 }
 0xa73   :  { %8003 = vmatmul.mubr.f32.gmra.mrb[40].mxu1 %v7870_v1 }
 0xa74   :  { %8007 = vmatprep.mubr.f32.mxu1 %v7873_v39 }
 0xa77   :  { %8008 = vmatmul.mubr.f32.gmra.mrb[42].mxu1 %v7872_v54 }
 0xa78   :  { %8012 = vmatprep.mubr.f32.mxu1 %v7875_v42 }
 0xa7b   :  { %8013 = vmatmul.mubr.f32.gmra.mrb[44].mxu1 %v7874_v32 }
 0xa7c   :  { %10298 = vmatprep.mubr.msk.f32.mxu1 %vm11005_vm4, %v13971_v56 }
 0xb26   :  { %v9670_v13 = vpop.f32.mrb[28].mxu1 }
 0xb27   :  { %v9671_v50 = vpop.f32.mrb[29].mxu1 }
 0xb28   :  { %v9672_v38 = vadd.f32 %v9671_v50, %v9670_v13 }
 0xb2a   :  { %v8018_v10 = vadd.f32 %v9672_v38, %v13300_v4  ;;  %v9673_v18 = vpop.f32.mrb[30].mxu1 }
 0xb2b   :  { %v9674_v36 = vpop.f32.mrb[31].mxu1 }
 0xb2c   :  { %v9675_v49 = vadd.f32 %v9674_v36, %v9673_v18  ;;  %v8034_v63 = vadd.f32 %v8871_v5, %v8018_v10 }
 0xb2e   :  { %v8019_v22 = vadd.f32 %v9675_v49, %v13305_v20  ;;  %v9676_v48 = vpop.f32.mrb[32].mxu1  ;;  %v8045_v6 = vsel %vm6217_vm6, %v8034_v63, 0.0 }
 0xb2f   :  { %v9677_v23 = vpop.f32.mrb[33].mxu1  ;;  %8046 = vadd.xlane.f32.xlu1 %v8045_v6 }
 0xb30   :  { %v9678_v28 = vadd.f32 %v9677_v23, %v9676_v48  ;;  %v8035_v14 = vadd.f32 %v8871_v5, %v8019_v22 }
 0xb32   :  { %v8020_v60 = vadd.f32 %v9678_v28, %v13310_v44  ;;  %v8048_v0 = vsel %vm6217_vm6, %v8035_v14, 0.0  ;;  %v9679_v25 = vpop.f32.mrb[34].mxu1 }
 0xb33   :  { %8049 = vadd.xlane.f32.xlu0 %v8048_v0  ;;  %v9680_v4 = vpop.f32.mrb[35].mxu1 }
 0xb34   :  { %v8036_v34 = vadd.f32 %v8871_v5, %v8020_v60  ;;  %v9681_v55 = vadd.f32 %v9680_v4, %v9679_v25 }
 0xb36   :  { %v8051_v29 = vsel %vm6217_vm6, %v8036_v34, 0.0  ;;  %v8021_v20 = vadd.f32 %v9681_v55, %v13315_v45 }
 0xb37   :  { %8052 = vadd.xlane.f32.xlu1 %v8051_v29 }
 0xb38   :  { %v8037_v46 = vadd.f32 %v8871_v5, %v8021_v20 }
 0xb3a   :  { %v8054_v2 = vsel %vm6217_vm6, %v8037_v46, 0.0 }
 0xb3b   :  { %8055 = vadd.xlane.f32.xlu0 %v8054_v2  ;;  %v9682_v35 = vpop.f32.mrb[36].mxu1 }
 0xb3c   :  { %v9683_v59 = vpop.f32.mrb[37].mxu1 }
 0xb3d   :  { %v9684_v26 = vadd.f32 %v9683_v59, %v9682_v35 }
 0xb3f   :  { %v8022_v44 = vadd.f32 %v9684_v26, %v13320_v51 }
 0xb41   :  { %v8038_v33 = vadd.f32 %v8871_v5, %v8022_v44 }
 0xb42   :  { %v9685_v61 = vpop.f32.mrb[38].mxu1 }
 0xb43   :  { %v9686_v11 = vpop.f32.mrb[39].mxu1  ;;  %v8057_v58 = vsel %vm6217_vm6, %v8038_v33, 0.0 }
 0xb44   :  { %v9687_v52 = vadd.f32 %v9686_v11, %v9685_v61  ;;  %8058 = vadd.xlane.f32.xlu1 %v8057_v58 }
 0xb46   :  { %v8023_v62 = vadd.f32 %v9687_v52, %v13325_v9  ;;  %v9688_v45 = vpop.f32.mrb[40].mxu1 }
 0xb47   :  { %v9689_v3 = vpop.f32.mrb[41].mxu1 }
 0xb48   :  { %v9690_v40 = vadd.f32 %v9689_v3, %v9688_v45  ;;  %v8039_v15 = vadd.f32 %v8871_v5, %v8023_v62 }
 0xb4a   :  { %v8024_v53 = vadd.f32 %v9690_v40, %v13330_v24  ;;  %v9691_v31 = vpop.f32.mrb[42].mxu1  ;;  %v8060_v41 = vsel %vm6217_vm6, %v8039_v15, 0.0  ;;  %v11006_v40 = vmov 0.0|0.0  }
 0xb4b   :  { %v9692_v30 = vpop.f32.mrb[43].mxu1  ;;  %8061 = vadd.xlane.f32.xlu0 %v8060_v41  ;;  %10416 = vmatprep.subr.bf16.mxu1 %v11006_v40 }
 0xb4c   :  { %v9693_v51 = vadd.f32 %v9692_v30, %v9691_v31  ;;  %v8040_v43 = vadd.f32 %v8871_v5, %v8024_v53 }
 0xb4e   :  { %v8025_v7 = vadd.f32 %v9693_v51, %v13335_v16  ;;  %v9694_v47 = vpop.f32.mrb[44].mxu1  ;;  %v8063_v39 = vsel %vm6217_vm6, %v8040_v43, 0.0 }
 0xb4f   :  { %8064 = vadd.xlane.f32.xlu1 %v8063_v39  ;;  %v9695_v9 = vpop.f32.mrb[45].mxu1 }
 0xb50   :  { %v9696_v21 = vadd.f32 %v9695_v9, %v9694_v47  ;;  %v8041_v1 = vadd.f32 %v8871_v5, %v8025_v7 }
 0xb52   :  { %v8026_v57 = vadd.f32 %v9696_v21, %v13340_v27  ;;  %v8066_v24 = vsel %vm6217_vm6, %v8041_v1, 0.0 }
 0xb53   :  { %8067 = vadd.xlane.f32.xlu0 %v8066_v24  ;;  %v13822_v24 = vld [vmem:[%s13916_s16] ss:$0 sm:$0xff] }
 0xb54   :  { %v8042_v17 = vadd.f32 %v8871_v5, %v8026_v57 }
 0xb56   :  { %v8069_v12 = vsel %vm6217_vm6, %v8042_v17, 0.0 }
 0xb57   :  { %8070 = vadd.xlane.f32.xlu1 %v8069_v12 }
 0xbbc   :  { %v8047_v8 = vpop.xlane.xlu1 %8046 }
 0xbbd   :  { %v8072_v42 = vmul.f32 0.015625, %v8047_v8 }
 0xbbf   :  { %v13772_v54 = vsub.f32 %v8034_v63, %v8072_v42  ;;  %v13829_v42 = vld [vmem:[%s13917_s17] ss:$0 sm:$0xff] }
 0xbc0   :  { %v8050_v16 = vpop.xlane.xlu0 %8049 }
 0xbc1   :  { %v8073_v19 = vmul.f32 0.015625, %v8050_v16  ;;  %v8090_v37 = vmul.f32 %v13772_v54, %v13772_v54 }
 0xbc3   :  { %v13776_v32 = vsub.f32 %v8035_v14, %v8073_v19  ;;  %v8099_v27 = vsel %vm6217_vm6, %v8090_v37, 0.0 }
 0xbc4   :  { %8100 = vadd.xlane.f32.xlu0 %v8099_v27  ;;  %v8053_v13 = vpop.xlane.xlu1 %8052 }
 0xbc5   :  { %v8074_v50 = vmul.f32 0.015625, %v8053_v13  ;;  %v8091_v38 = vmul.f32 %v13776_v32, %v13776_v32 }
 0xbc7   :  { %v13781_v5 = vsub.f32 %v8036_v34, %v8074_v50  ;;  %v8102_v10 = vsel %vm6217_vm6, %v8091_v38, 0.0 }
 0xbc8   :  { %8103 = vadd.xlane.f32.xlu1 %v8102_v10  ;;  %v8056_v18 = vpop.xlane.xlu0 %8055 }
 0xbc9   :  { %v8092_v36 = vmul.f32 %v13781_v5, %v13781_v5  ;;  %v8075_v49 = vmul.f32 0.015625, %v8056_v18 }
 0xbcb   :  { %v8105_v63 = vsel %vm6217_vm6, %v8092_v36, 0.0  ;;  %v13787_v22 = vsub.f32 %v8037_v46, %v8075_v49 }
 0xbcc   :  { %8106 = vadd.xlane.f32.xlu0 %v8105_v63 }
 0xbcd   :  { %v8093_v48 = vmul.f32 %v13787_v22, %v13787_v22 }
 0xbcf   :  { %v8108_v6 = vsel %vm6217_vm6, %v8093_v48, 0.0 }
 0xbd0   :  { %8109 = vadd.xlane.f32.xlu1 %v8108_v6 }
 0xbd1   :  { %v8059_v23 = vpop.xlane.xlu1 %8058 }
 0xbd2   :  { %v8076_v28 = vmul.f32 0.015625, %v8059_v23 }
 0xbd4   :  { %v13792_v14 = vsub.f32 %v8038_v33, %v8076_v28 }
 0xbd6   :  { %v8094_v60 = vmul.f32 %v13792_v14, %v13792_v14 }
 0xbd8   :  { %v8062_v0 = vpop.xlane.xlu0 %8061  ;;  %v8111_v4 = vsel %vm6217_vm6, %v8094_v60, 0.0 }
 0xbd9   :  { %v8077_v25 = vmul.f32 0.015625, %v8062_v0  ;;  %8112 = vadd.xlane.f32.xlu0 %v8111_v4 }
 0xbdb   :  { %v13797_v34 = vsub.f32 %v8039_v15, %v8077_v25 }
 0xbdc   :  { %v8065_v55 = vpop.xlane.xlu1 %8064 }
 0xbdd   :  { %v8078_v29 = vmul.f32 0.015625, %v8065_v55  ;;  %v8095_v20 = vmul.f32 %v13797_v34, %v13797_v34 }
 0xbdf   :  { %v13801_v46 = vsub.f32 %v8040_v43, %v8078_v29  ;;  %v8114_v2 = vsel %vm6217_vm6, %v8095_v20, 0.0 }
 0xbe0   :  { %v8068_v35 = vpop.xlane.xlu0 %8067  ;;  %8115 = vadd.xlane.f32.xlu1 %v8114_v2 }
 0xbe1   :  { %v8079_v59 = vmul.f32 0.015625, %v8068_v35  ;;  %v8096_v26 = vmul.f32 %v13801_v46, %v13801_v46 }
 0xbe3   :  { %v13806_v44 = vsub.f32 %v8041_v1, %v8079_v59  ;;  %v8117_v61 = vsel %vm6217_vm6, %v8096_v26, 0.0 }
 0xbe4   :  { %8118 = vadd.xlane.f32.xlu0 %v8117_v61  ;;  %v8071_v33 = vpop.xlane.xlu1 %8070 }
 0xbe5   :  { %v8080_v11 = vmul.f32 0.015625, %v8071_v33  ;;  %v8097_v52 = vmul.f32 %v13806_v44, %v13806_v44 }
 0xbe7   :  { %v13811_v58 = vsub.f32 %v8042_v17, %v8080_v11  ;;  %v8120_v62 = vsel %vm6217_vm6, %v8097_v52, 0.0 }
 0xbe8   :  { %8121 = vadd.xlane.f32.xlu1 %v8120_v62 }
 0xbe9   :  { %v8098_v45 = vmul.f32 %v13811_v58, %v13811_v58 }
 0xbeb   :  { %v8123_v3 = vsel %vm6217_vm6, %v8098_v45, 0.0 }
 0xbec   :  { %8124 = vadd.xlane.f32.xlu0 %v8123_v3 }
 0xc51   :  { %v8101_v15 = vpop.xlane.xlu0 %8100 }
 0xc52   :  { %v8126_v53 = vmul.f32 0.015625, %v8101_v15 }
 0xc54   :  { %v8135_v31 = vadd.f32 1e-05, %v8126_v53 }
 0xc55   :  { %v8104_v41 = vpop.xlane.xlu1 %8103 }
 0xc56   :  { %10983 = vrsqrt.f32 %v8135_v31  ;;  %v8127_v30 = vmul.f32 0.015625, %v8104_v41 }
 0xc58   :  { %v8136_v51 = vadd.f32 1e-05, %v8127_v30 }
 0xc59   :  { %v8107_v43 = vpop.xlane.xlu0 %8106 }
 0xc5a   :  { %10985 = vrsqrt.f32 %v8136_v51  ;;  %v8128_v7 = vmul.f32 0.015625, %v8107_v43 }
 0xc5c   :  { %v8137_v47 = vadd.f32 1e-05, %v8128_v7 }
 0xc5d   :  { %v8110_v39 = vpop.xlane.xlu1 %8109 }
 0xc5e   :  { %10987 = vrsqrt.f32 %v8137_v47  ;;  %v8129_v9 = vmul.f32 0.015625, %v8110_v39  ;;  %v8267_v47 = vld [vmem:[%s13919_s19 + $0x8] sm:$0xff] }
 0xc60   :  { %v10984_v21 = vpop.eup %10983  ;;  %v8138_v57 = vadd.f32 1e-05, %v8129_v9 }
 0xc61   :  { %v8153_v1 = vmul.f32 %v10984_v21, %v13772_v54  ;;  %v8268_v21 = vld [vmem:[%s13919_s19 + $0x10] sm:$0xff] }
 0xc62   :  { %10989 = vrsqrt.f32 %v8138_v57 }
 0xc63   :  { %v8168_v8 = vmul.f32 %v13822_v24, %v8153_v1  ;;  %v8269_v1 = vld [vmem:[%s13919_s19 + $0x18] sm:$0xff] }
 0xc64   :  { %v10986_v17 = vpop.eup %10985  ;;  %v10432_v57 = vpack.c.bf16 %v8269_v1, %v8268_v21 }
 0xc65   :  { %v8154_v12 = vmul.f32 %v10986_v17, %v13776_v32  ;;  %v8183_v27 = vadd.f32 %v13829_v42, %v8168_v8  ;;  %v8271_v17 = vld [vmem:[%s13919_s19 + $0x28] sm:$0xff]  ;;  %v8272_v8 = vld [vmem:[%s13919_s19 + $0x30] sm:$0xff] }
 0xc66   :  { %v8113_v19 = vpop.xlane.xlu0 %8112 }
 0xc67   :  { %v8169_v16 = vmul.f32 %v13822_v24, %v8154_v12  ;;  %v8130_v37 = vmul.f32 0.015625, %v8113_v19  ;;  %v8875_v19 = vld [vmem:[%s13920_s20] ss:$0 sm:$0xff] }
 0xc68   :  { %v10988_v54 = vpop.eup %10987 }
 0xc69   :  { %v8184_v13 = vadd.f32 %v13829_v42, %v8169_v16  ;;  %v8155_v50 = vmul.f32 %v10988_v54, %v13781_v5  ;;  %v8139_v38 = vadd.f32 1e-05, %v8130_v37 }
 0xc6b   :  { %v10417_v32 = vpack.c.bf16 %v8184_v13, %v8183_v27  ;;  %10991 = vrsqrt.f32 %v8139_v38  ;;  %v8170_v49 = vmul.f32 %v13822_v24, %v8155_v50 }
 0xc6c   :  { %v10990_v10 = vpop.eup %10989 }
 0xc6d   :  { %10418 = vmatpush3.bf16.msra.mxu1 %v10417_v32  ;;  %v8156_v18 = vmul.f32 %v10990_v10, %v13787_v22  ;;  %v8116_v36 = vpop.xlane.xlu1 %8115  ;;  %v8185_v28 = vadd.f32 %v13829_v42, %v8170_v49 }
 0xc6e   :  { %10419 = vmatprep.subr.bf16.mxu1 %v11006_v40  ;;  %v8131_v63 = vmul.f32 0.015625, %v8116_v36 }
 0xc6f   :  { %v8171_v48 = vmul.f32 %v13822_v24, %v8156_v18 }
 0xc70   :  { %v8140_v6 = vadd.f32 1e-05, %v8131_v63 }
 0xc71   :  { %v8119_v23 = vpop.xlane.xlu0 %8118  ;;  %v8186_v5 = vadd.f32 %v13829_v42, %v8171_v48 }
 0xc72   :  { %10993 = vrsqrt.f32 %v8140_v6  ;;  %v8132_v60 = vmul.f32 0.015625, %v8119_v23 }
 0xc73   :  { %v10420_v0 = vpack.c.bf16 %v8186_v5, %v8185_v28 }
 0xc74   :  { %v8141_v25 = vadd.f32 1e-05, %v8132_v60 }
 0xc75   :  { %v8122_v4 = vpop.xlane.xlu1 %8121  ;;  %10421 = vmatpush3.bf16.msra.mxu1 %v10420_v0  ;;  %v10992_v22 = vpop.eup %10991 }
 0xc76   :  { %10995 = vrsqrt.f32 %v8141_v25  ;;  %v8133_v55 = vmul.f32 0.015625, %v8122_v4  ;;  %10422 = vmatprep.subr.bf16.mxu1 %v11006_v40  ;;  %v8157_v20 = vmul.f32 %v10992_v22, %v13792_v14 }
 0xc78   :  { %v8142_v29 = vadd.f32 1e-05, %v8133_v55  ;;  %v8172_v33 = vmul.f32 %v13822_v24, %v8157_v20 }
 0xc79   :  { %v8125_v2 = vpop.xlane.xlu0 %8124 }
 0xc7a   :  { %10997 = vrsqrt.f32 %v8142_v29  ;;  %v8134_v35 = vmul.f32 0.015625, %v8125_v2  ;;  %v8187_v45 = vadd.f32 %v13829_v42, %v8172_v33 }
 0xc7c   :  { %v10994_v59 = vpop.eup %10993  ;;  %v8143_v26 = vadd.f32 1e-05, %v8134_v35 }
 0xc7d   :  { %v8158_v61 = vmul.f32 %v10994_v59, %v13797_v34 }
 0xc7e   :  { %10999 = vrsqrt.f32 %v8143_v26 }
 0xc7f   :  { %v8173_v11 = vmul.f32 %v13822_v24, %v8158_v61 }
 0xc80   :  { %v10996_v52 = vpop.eup %10995 }
 0xc81   :  { %v8159_v62 = vmul.f32 %v10996_v52, %v13801_v46  ;;  %v8188_v3 = vadd.f32 %v13829_v42, %v8173_v11 }
 0xc83   :  { %v10423_v14 = vpack.c.bf16 %v8188_v3, %v8187_v45  ;;  %v8174_v31 = vmul.f32 %v13822_v24, %v8159_v62 }
 0xc84   :  { %v10998_v15 = vpop.eup %10997 }
 0xc85   :  { %v8160_v53 = vmul.f32 %v10998_v15, %v13806_v44  ;;  %10424 = vmatpush3.bf16.msra.mxu1 %v10423_v14  ;;  %v8189_v30 = vadd.f32 %v13829_v42, %v8174_v31  ;;  %v8266_v44 = vld [vmem:[%s13919_s19] sm:$0xff] }
 0xc86   :  { %10425 = vmatprep.subr.bf16.mxu1 %v11006_v40  ;;  %v10429_v9 = vpack.c.bf16 %v8267_v47, %v8266_v44 }
 0xc87   :  { %v8175_v34 = vmul.f32 %v13822_v24, %v8160_v53 }
 0xc88   :  { %v11000_v41 = vpop.eup %10999 }
 0xc89   :  { %v8190_v46 = vadd.f32 %v13829_v42, %v8175_v34  ;;  %v8161_v51 = vmul.f32 %v11000_v41, %v13811_v58  ;;  %v8192_v58 = vld [vmem:[%s13918_s18] sm:$0xff] }
 0xc8b   :  { %v10426_v43 = vpack.c.bf16 %v8190_v46, %v8189_v30  ;;  %v8176_v7 = vmul.f32 %v13822_v24, %v8161_v51  ;;  %v8270_v24 = vld [vmem:[%s13919_s19 + $0x20] sm:$0xff] }
 0xc8c   :  { %v10435_v12 = vpack.c.bf16 %v8271_v17, %v8270_v24 }
 0xc8d   :  { %10427 = vmatpush3.bf16.msra.mxu1 %v10426_v43  ;;  %v8191_v39 = vadd.f32 %v13829_v42, %v8176_v7 }
 0xc8e   :  { %10296 = vmatprep.subr.mxu1 %v13971_v56 }
 0xc91   :  { %10297 = vmatpush3.msra.mxu1 %v8191_v39 }
 0xc92   :  { %10299 = vmatmul.mubr.msk.f32.vlgmr.msra.gmra.mrb[46].mxu1 %vm6590_vm7, %v8192_v58  ;;  %10428 = vmatprep.subr.bf16.mxu1 %v11006_v40 }
 0xc93   :  { %10430 = vmatpush3.bf16.msra.mxu1 %v10429_v9  ;;  %10317 = vmatprep.mubr.msk.f32.mxu1 %vm11005_vm4, %v13971_v56  ;;  %v8273_v56 = vld [vmem:[%s13919_s19 + $0x38] sm:$0xff] }
 0xc94   :  { %10431 = vmatprep.subr.bf16.mxu1 %v11006_v40  ;;  %v10438_v42 = vpack.c.bf16 %v8273_v56, %v8272_v8 }
 0xc97   :  { %10433 = vmatpush3.bf16.msra.mxu1 %v10432_v57 }
 0xc98   :  { %10434 = vmatprep.subr.bf16.mxu1 %v11006_v40 }
 0xc9b   :  { %10436 = vmatpush3.bf16.msra.mxu1 %v10435_v12 }
 0xc9c   :  { %10437 = vmatprep.subr.bf16.mxu1 %v11006_v40 }
 0xc9f   :  { %10439 = vmatpush3.bf16.msra.mxu1 %v10438_v42 }
 0xd65   :  { %v8262_v16 = vpop.f32.mrb[46].mxu1 }
 0xd66   :  { %v10300_v54 = vpop.f32.mrb[47].mxu1  ;;  %10318 = vmatmul.mubr.msk.f32.vlgmr.msra.gmra.mrb[48].mxu1 %vm6217_vm6, %v8262_v16 }
 0xe39   :  { %v8350_v37 = vpop.f32.mrb[48].mxu1 }
 0xe3a   :  { %v8351_v27 = vadd.f32 %v8875_v19, %v8350_v37  ;;  %v10319_v13 = vpop.f32.mrb[49].mxu1 }
 0xe3c   :  { %8354 = vst [vmem:[%s13923_s23] sm:$0xff] %v8351_v27 }

</bundles_post_ra>
